<compile_context>
chip_gen: v5e
topology: v5e:2x2
jax: 0.10.0
libtpu: 0.0.40
codegen_flags: <defaults>
</compile_context>

<pallas_src>
import math

import jax
import jax.numpy as jnp
import numpy as np
from jax.experimental import pallas as pl
from jax.experimental.pallas import tpu as pltpu

# ----- hyperparameters (EpsilonTheta defaults at small scale) -----
TARGET_DIM = 16        # L   (sequence length of inputs)
COND_LENGTH = 8        # CL
TIME_EMB_DIM = 16      # dim (embedding table width is 2*dim = 32)
RESIDUAL_LAYERS = 8    # NL
RESIDUAL_CHANNELS = 8  # RC
DILATION_CYCLE = 2
RESIDUAL_HIDDEN = 64   # HID
MAX_STEPS = 500
BATCH = 2

L = TARGET_DIM
L2 = L // 2
CL = COND_LENGTH
LP = L + 4             # length after the circular-pad-2 pointwise convs
LQ = LP - 2            # length after skip_projection (valid k=3)
RC = RESIDUAL_CHANNELS
HID = RESIDUAL_HIDDEN
NL = RESIDUAL_LAYERS
DIM2 = 2 * TIME_EMB_DIM

DILS_PER_LAYER = [2 ** (i % DILATION_CYCLE) for i in range(NL)]
DILS = sorted(set(DILS_PER_LAYER))             # distinct dilations (here [1, 2])
DIL_IDX = [DILS.index(d) for d in DILS_PER_LAYER]


# ---------------------------------------------------------------------------
# Pallas kernel: entire EpsilonTheta forward for `bb` batch elements per step.
# ---------------------------------------------------------------------------
def _make_kernel(bb):
  blp = bb * LP

  def kernel(
      x_ref,       # (1, 1, bb*L)        raw inputs, batch packed along lanes
      cond_ref,    # (1, bb, CL)         conditioner, batch on sublanes
      emb_ref,     # (1, DIM2, bb)       gathered diffusion-step embeddings (batch on lanes)
      shifts_ref,  # (NDIL, 2, blp, blp) block-diag circular shift matrices (-d, +d)
      de_w1_ref,   # (HID, DIM2)
      de_w2_ref,   # (HID, HID)
      de_b_ref,    # (HID, 2)            [:,0]=b1, [:,1]=b2
      cu_w1t_ref,  # (CL, L2)
      cu_w2t_ref,  # (L2, L)
      cu_b_ref,    # (2, L)              row0[:L2]=b1, row1=b2
      inproj_ref,  # (RC, 2)             [:,0]=w, [:,1]=b
      dil_w_ref,   # (NL, 2RC, 3RC)      fused 3-tap dilated-conv weights
      op_w_ref,    # (NL, 2RC, RC)
      lvec_ref,    # (NL*2RC, 4)         cols: dil_b, cp_w, cp_b, op_b
      dfp_w_ref,   # (NL*RC, HID)
      dfp_b_ref,   # (NL*RC, 1)
      sk_ref,      # (RC, 3RC+1)         packed skip-proj weights | bias
      fo_ref,      # (3RC+1, 1)          packed output-proj weights ; bias
      out_ref,     # (1, 1, bb*L)
  ):
    f32 = jnp.float32
    leaky = lambda v: jnp.where(v >= 0, v, 0.4 * v)           # F.leaky_relu(., 0.4)
    silu = lambda v: v * jax.nn.sigmoid(v)                    # F.silu
    dot = lambda a, b: jnp.dot(a, b, preferred_element_type=f32)

    # --- circular pad by 2 within each batch segment (lane slices + concat) ---
    def circular_pad2(row, seg):
      parts = []
      for b in range(bb):
        s = row[:, b * seg:(b + 1) * seg]
        parts.append(jnp.concatenate([s[:, seg - 2:], s, s[:, :2]], axis=1))
      return jnp.concatenate(parts, axis=1)                   # (rows, bb*(seg+4))

    # --- input projection: 1x1 conv (1 -> RC), circular pad 2, leaky relu ---
    x_pad = circular_pad2(x_ref[0], L)                        # (1, blp)
    x = leaky(inproj_ref[:, 0:1] * x_pad + inproj_ref[:, 1:2])  # (RC, blp)

    # --- DiffusionEmbedding MLP (batch on lanes) ---
    emb = emb_ref[0]                                          # (DIM2, bb)
    h1 = silu(dot(de_w1_ref[...], emb) + de_b_ref[:, 0:1])    # (HID, bb)
    h2 = silu(dot(de_w2_ref[...], h1) + de_b_ref[:, 1:2])     # (HID, bb)

    # --- all per-layer diffusion projections in ONE hoisted matmul ---
    dstep_all = dot(dfp_w_ref[...], h2) + dfp_b_ref[...]      # (NL*RC, bb)
    dstep_all = jnp.concatenate(                              # expand per batch segment
        [jnp.broadcast_to(dstep_all[:, b:b + 1], (NL * RC, LP)) for b in range(bb)],
        axis=1)                                               # (NL*RC, blp)

    # --- CondUpsampler (batch on sublanes), then relayout + circular pad ---
    c_in = cond_ref[0]                                        # (bb, CL)
    c1 = leaky(dot(c_in, cu_w1t_ref[...]) + cu_b_ref[0:1, :L2])     # (bb, L2)
    c2 = leaky(dot(c1, cu_w2t_ref[...]) + cu_b_ref[1:2, :])         # (bb, L)
    cond_pad = jnp.concatenate(
        [jnp.concatenate([c2[b:b + 1, L - 2:], c2[b:b + 1, :], c2[b:b + 1, :2]],
                         axis=1) for b in range(bb)], axis=1)       # (1, blp)

    # --- all per-layer conditioner projections (hoisted broadcast mul) ---
    cond_all = lvec_ref[:, 1:2] * cond_pad + lvec_ref[:, 2:3]       # (NL*2RC, blp)
    dil_b_all = lvec_ref[:, 0:1]
    op_b_all = lvec_ref[:, 3:4]

    # --- residual stack (unrolled) ---
    skip_sum = jnp.zeros((RC, blp), f32)
    inv_sqrt2 = 1.0 / math.sqrt(2.0)
    for l in range(NL):
      di = DIL_IDX[l]
      y = x + dstep_all[l * RC:(l + 1) * RC, :]               # (RC, blp)
      # fused 3-tap dilated circular conv: 2 block-diag shifts + 1 MXU matmul
      y_m = dot(y, shifts_ref[di, 0])                         # y[(i - d) mod LP]
      y_p = dot(y, shifts_ref[di, 1])                         # y[(i + d) mod LP]
      y3 = jnp.concatenate([y_m, y, y_p], axis=0)             # (3RC, blp)
      z = (dot(dil_w_ref[l], y3)
           + dil_b_all[l * 2 * RC:(l + 1) * 2 * RC, :]
           + cond_all[l * 2 * RC:(l + 1) * 2 * RC, :])        # (2RC, blp)
      g = jax.nn.sigmoid(z[:RC, :]) * jnp.tanh(z[RC:, :])     # (RC, blp)
      w = leaky(dot(op_w_ref[l], g)
                + op_b_all[l * 2 * RC:(l + 1) * 2 * RC, :])   # (2RC, blp)
      x = (x + w[:RC, :]) * inv_sqrt2
      skip_sum = skip_sum + w[RC:, :]

    s = skip_sum * (1.0 / math.sqrt(float(NL)))

    # --- skip_projection: valid conv k=3 (LP -> LP-2), fused into one matmul ---
    s3 = jnp.concatenate(
        [jnp.concatenate([s[:, b * LP + k: b * LP + k + LQ] for b in range(bb)],
                         axis=1) for k in range(3)], axis=0)        # (3RC, bb*LQ)
    z = leaky(dot(sk_ref[:, :3 * RC], s3) + sk_ref[:, 3 * RC:])     # (RC, bb*LQ)

    # --- output_projection: valid conv k=3, RC -> 1 (LP-2 -> L) ---
    z3 = jnp.concatenate(
        [jnp.concatenate([z[:, b * LQ + k: b * LQ + k + L] for b in range(bb)],
                         axis=1) for k in range(3)], axis=0)        # (3RC, bb*L)
    o = jnp.sum(fo_ref[:3 * RC, :] * z3, axis=0, keepdims=True) + fo_ref[3 * RC:, :]
    out_ref[0] = o                                                  # (1, bb*L) lane-dense

  return kernel


# ---------------------------------------------------------------------------
# Glue: shift matrices, parameter packing, pallas_call wrapper.
# ---------------------------------------------------------------------------
def _block_diag_circular_shift(bb, seg_len, offset):
  # per-segment circular gather: (y @ M)[:, b*seg + i] = y[:, b*seg + (i + offset) % seg]
  cols = (jnp.arange(seg_len) + offset) % seg_len
  base = (jnp.arange(seg_len)[:, None] == cols[None, :]).astype(jnp.float32)
  return jnp.kron(jnp.eye(bb, dtype=jnp.float32), base)


def build_embedding(dim, max_steps):
  steps = jnp.arange(max_steps, dtype=jnp.float32)[:, None]
  dims = jnp.arange(dim, dtype=jnp.float32)[None, :]
  table = steps * 10.0 ** (dims * 4.0 / dim)
  return jnp.concatenate([jnp.sin(table), jnp.cos(table)], axis=1)   # (max_steps, 2*dim)


def init_params(key):
  def nrm(k, shape, scale):
    return scale * jax.random.normal(k, shape, dtype=jnp.float32)

  keys = iter(jax.random.split(key, 64))
  p = {}
  p["in_w"] = nrm(next(keys), (RC, 1, 1), 0.5)
  p["in_b"] = nrm(next(keys), (RC,), 0.1)
  p["de_w1"] = nrm(next(keys), (HID, DIM2), 0.2)
  p["de_b1"] = nrm(next(keys), (HID,), 0.1)
  p["de_w2"] = nrm(next(keys), (HID, HID), 0.1)
  p["de_b2"] = nrm(next(keys), (HID,), 0.1)
  p["cu_w1"] = nrm(next(keys), (L2, CL), 0.3)
  p["cu_b1"] = nrm(next(keys), (L2,), 0.1)
  p["cu_w2"] = nrm(next(keys), (L, L2), 0.3)
  p["cu_b2"] = nrm(next(keys), (L,), 0.1)
  layers = []
  for _ in range(NL):
    lk = jax.random.split(next(keys), 8)
    layers.append(dict(
        dil_w=nrm(lk[0], (2 * RC, RC, 3), 0.2),
        dil_b=nrm(lk[1], (2 * RC,), 0.1),
        dfp_w=nrm(lk[2], (RC, HID), 0.1),
        dfp_b=nrm(lk[3], (RC,), 0.1),
        cp_w=nrm(lk[4], (2 * RC, 1, 1), 0.5),
        cp_b=nrm(lk[5], (2 * RC,), 0.1),
        op_w=nrm(lk[6], (2 * RC, RC, 1), 0.2),
        op_b=nrm(lk[7], (2 * RC,), 0.1),
    ))
  p["layers"] = layers
  p["sk_w"] = nrm(next(keys), (RC, RC, 3), 0.2)
  p["sk_b"] = nrm(next(keys), (RC,), 0.1)
  # TODO(synk): reference module zero-inits output_projection.weight; random here for a non-trivial check
  p["fo_w"] = nrm(next(keys), (1, RC, 3), 0.2)
  p["fo_b"] = nrm(next(keys), (1,), 0.1)
  return p


def pack_kernel_args(params, inputs, time, cond, table, bb):
  B = inputs.shape[0]
  nsteps = B // bb
  Ls = params["layers"]

  x_rows = inputs.reshape(nsteps, 1, bb * L)                      # batch-major lane rows
  cond_in = cond[:, 0, :].reshape(nsteps, bb, CL)
  emb = table[time].reshape(nsteps, bb, DIM2).transpose(0, 2, 1)  # (nsteps, DIM2, bb)

  shifts = jnp.stack([jnp.stack([_block_diag_circular_shift(bb, LP, -d),
                                 _block_diag_circular_shift(bb, LP, d)])
                      for d in DILS])                             # (NDIL, 2, blp, blp)

  de_b = jnp.stack([params["de_b1"], params["de_b2"]], axis=1)    # (HID, 2)
  cu_b = jnp.stack([jnp.pad(params["cu_b1"], (0, L - L2)), params["cu_b2"]])  # (2, L)
  inproj = jnp.stack([params["in_w"][:, 0, 0], params["in_b"]], axis=1)       # (RC, 2)

  dil_w = jnp.stack([jnp.concatenate([q["dil_w"][:, :, k] for k in range(3)], axis=1)
                     for q in Ls])                                # (NL, 2RC, 3RC)
  op_w = jnp.stack([q["op_w"][:, :, 0] for q in Ls])              # (NL, 2RC, RC)
  lvec = jnp.concatenate(
      [jnp.stack([q["dil_b"], q["cp_w"][:, 0, 0], q["cp_b"], q["op_b"]], axis=1)
       for q in Ls], axis=0)                                      # (NL*2RC, 4)
  dfp_w = jnp.concatenate([q["dfp_w"] for q in Ls], axis=0)       # (NL*RC, HID)
  dfp_b = jnp.concatenate([q["dfp_b"] for q in Ls], axis=0)[:, None]  # (NL*RC, 1)

  sk = jnp.concatenate([params["sk_w"][:, :, k] for k in range(3)]
                       + [params["sk_b"][:, None]], axis=1)       # (RC, 3RC+1)
  fo = jnp.concatenate([params["fo_w"][0, :, k] for k in range(3)]
                       + [params["fo_b"]])[:, None]               # (3RC+1, 1)

  return [x_rows, cond_in, emb, shifts,
          params["de_w1"], params["de_w2"], de_b,
          params["cu_w1"].T, params["cu_w2"].T, cu_b, inproj,
          dil_w, op_w, lvec, dfp_w, dfp_b, sk, fo]


def epsilon_theta_pallas(params, inputs, time, cond, table):
  B = inputs.shape[0]
  # pack as many batch elements per grid step as fit in 128 lanes of padded length
  bb = max(1, min(B, 128 // LP))
  while B % bb:
    bb -= 1
  nsteps = B // bb

  args = pack_kernel_args(params, inputs, time, cond, table, bb)
  kernel = _make_kernel(bb)

  def const_spec(shape):
    nd = len(shape)
    return pl.BlockSpec(tuple(shape), lambda g, _n=nd: (0,) * _n)

  in_specs = [
      pl.BlockSpec((1, 1, bb * L), lambda g: (g, 0, 0)),      # x rows
      pl.BlockSpec((1, bb, CL), lambda g: (g, 0, 0)),         # cond
      pl.BlockSpec((1, DIM2, bb), lambda g: (g, 0, 0)),       # diffusion embedding rows
  ] + [const_spec(a.shape) for a in args[3:]]

  out = pl.pallas_call(
      kernel,
      out_shape=jax.ShapeDtypeStruct((nsteps, 1, bb * L), jnp.float32),
      grid=(nsteps,),
      in_specs=in_specs,
      out_specs=pl.BlockSpec((1, 1, bb * L), lambda g: (g, 0, 0)),
      compiler_params=pltpu.CompilerParams(dimension_semantics=("parallel",)),
  )(*args)
  return out.reshape(B, L)[:, None, :]   # (B, 1, target_dim) -- matches PyTorch NCL output


# ---------------------------------------------------------------------------
# Pure-JAX reference (independent implementation of the PyTorch semantics).
# ---------------------------------------------------------------------------
def _leaky(x):
  return jnp.where(x >= 0, x, 0.4 * x)


def _silu(x):
  return x * jax.nn.sigmoid(x)


def _conv1d(x, w, b, padding=0, dilation=1, circular=False):
  # x: (B, Cin, Lin), w: (Cout, Cin, K)
  if padding > 0:
    mode = "wrap" if circular else "constant"
    x = jnp.pad(x, ((0, 0), (0, 0), (padding, padding)), mode=mode)
  K = w.shape[2]
  Lout = x.shape[2] - dilation * (K - 1)
  out = jnp.zeros((x.shape[0], w.shape[0], Lout), jnp.float32)
  for k in range(K):
    out = out + jnp.einsum("oc,bcl->bol", w[:, :, k],
                           x[:, :, k * dilation:k * dilation + Lout])
  return out + b[None, :, None]


def epsilon_theta_reference(params, inputs, time, cond, table):
  x = _leaky(_conv1d(inputs, params["in_w"], params["in_b"], padding=2, circular=True))
  d = table[time]
  d = _silu(d @ params["de_w1"].T + params["de_b1"])
  d = _silu(d @ params["de_w2"].T + params["de_b2"])
  c = cond[:, 0, :]
  c = _leaky(c @ params["cu_w1"].T + params["cu_b1"])
  c = _leaky(c @ params["cu_w2"].T + params["cu_b2"])
  cond_up = c[:, None, :]
  skips = []
  for l, q in enumerate(params["layers"]):
    dil = 2 ** (l % DILATION_CYCLE)
    dstep = (d @ q["dfp_w"].T + q["dfp_b"])[:, :, None]
    conditioner = _conv1d(cond_up, q["cp_w"], q["cp_b"], padding=2, circular=True)
    y = x + dstep
    y = _conv1d(y, q["dil_w"], q["dil_b"], padding=dil, dilation=dil, circular=True) + conditioner
    gate, filt = y[:, :RC, :], y[:, RC:, :]
    y = jax.nn.sigmoid(gate) * jnp.tanh(filt)
    y = _leaky(_conv1d(y, q["op_w"], q["op_b"]))
    residual, skip = y[:, :RC, :], y[:, RC:, :]
    x = (x + residual) / math.sqrt(2.0)
    skips.append(skip)
  x = sum(skips) / math.sqrt(float(NL))
  x = _leaky(_conv1d(x, params["sk_w"], params["sk_b"]))
  x = _conv1d(x, params["fo_w"], params["fo_b"])
  return x


if __name__ == "__main__":
  key = jax.random.PRNGKey(0)
  kp, kx, kc = jax.random.split(key, 3)

  params = init_params(kp)
  table = build_embedding(TIME_EMB_DIM, MAX_STEPS)

  inputs = jax.random.normal(kx, (BATCH, 1, TARGET_DIM), dtype=jnp.float32)
  cond = jax.random.normal(kc, (BATCH, 1, COND_LENGTH), dtype=jnp.float32)
  time = jnp.array([3, 11], dtype=jnp.int32)

  out = epsilon_theta_pallas(params, inputs, time, cond, table)
  out = jax.block_until_ready(out)

  with jax.default_matmul_precision("float32"):
    ref = epsilon_theta_reference(params, inputs, time, cond, table)
  ref = jax.block_until_ready(ref)

  assert out.shape == (BATCH, 1, TARGET_DIM)
  np.testing.assert_allclose(np.asarray(out), np.asarray(ref), rtol=2e-2, atol=2e-2)

  print("KERNEL_OK")
</pallas_src>

<mosaic_0001>
module attributes {stable_mosaic.version = 11 : i64} {
  func.func @kernel(%arg0: i32, %arg1: memref<1x1x32xf32, #tpu.memory_space<vmem>>, %arg2: memref<1x2x8xf32, #tpu.memory_space<vmem>>, %arg3: memref<1x32x2xf32, #tpu.memory_space<vmem>>, %arg4: memref<2x2x40x40xf32, #tpu.memory_space<vmem>>, %arg5: memref<64x32xf32, #tpu.memory_space<vmem>>, %arg6: memref<64x64xf32, #tpu.memory_space<vmem>>, %arg7: memref<64x2xf32, #tpu.memory_space<vmem>>, %arg8: memref<8x8xf32, #tpu.memory_space<vmem>>, %arg9: memref<8x16xf32, #tpu.memory_space<vmem>>, %arg10: memref<2x16xf32, #tpu.memory_space<vmem>>, %arg11: memref<8x2xf32, #tpu.memory_space<vmem>>, %arg12: memref<8x16x24xf32, #tpu.memory_space<vmem>>, %arg13: memref<8x16x8xf32, #tpu.memory_space<vmem>>, %arg14: memref<128x4xf32, #tpu.memory_space<vmem>>, %arg15: memref<64x64xf32, #tpu.memory_space<vmem>>, %arg16: memref<64x1xf32, #tpu.memory_space<vmem>>, %arg17: memref<8x25xf32, #tpu.memory_space<vmem>>, %arg18: memref<25x1xf32, #tpu.memory_space<vmem>>, %arg19: memref<1x1x32xf32, #tpu.memory_space<vmem>>) attributes {dimension_semantics = [#tpu.dimension_semantics<parallel>], iteration_bounds = array<i64: 1>, scalar_prefetch = 0 : i64, scratch_operands = 0 : i64, tpu.core_type = #tpu.core_type<tc>, window_params = [{transform_indices = @transform_0, window_bounds = array<i64: 1, 1, 32>}, {transform_indices = @transform_1, window_bounds = array<i64: 1, 2, 8>}, {transform_indices = @transform_2, window_bounds = array<i64: 1, 32, 2>}, {pipeline_mode = #tpu.pipeline_mode<synchronous>, transform_indices = @transform_3, window_bounds = array<i64: 2, 2, 40, 40>}, {pipeline_mode = #tpu.pipeline_mode<synchronous>, transform_indices = @transform_4, window_bounds = array<i64: 64, 32>}, {pipeline_mode = #tpu.pipeline_mode<synchronous>, transform_indices = @transform_5, window_bounds = array<i64: 64, 64>}, {pipeline_mode = #tpu.pipeline_mode<synchronous>, transform_indices = @transform_6, window_bounds = array<i64: 64, 2>}, {pipeline_mode = #tpu.pipeline_mode<synchronous>, transform_indices = @transform_7, window_bounds = array<i64: 8, 8>}, {pipeline_mode = #tpu.pipeline_mode<synchronous>, transform_indices = @transform_8, window_bounds = array<i64: 8, 16>}, {pipeline_mode = #tpu.pipeline_mode<synchronous>, transform_indices = @transform_9, window_bounds = array<i64: 2, 16>}, {pipeline_mode = #tpu.pipeline_mode<synchronous>, transform_indices = @transform_10, window_bounds = array<i64: 8, 2>}, {pipeline_mode = #tpu.pipeline_mode<synchronous>, transform_indices = @transform_11, window_bounds = array<i64: 8, 16, 24>}, {pipeline_mode = #tpu.pipeline_mode<synchronous>, transform_indices = @transform_12, window_bounds = array<i64: 8, 16, 8>}, {pipeline_mode = #tpu.pipeline_mode<synchronous>, transform_indices = @transform_13, window_bounds = array<i64: 128, 4>}, {pipeline_mode = #tpu.pipeline_mode<synchronous>, transform_indices = @transform_14, window_bounds = array<i64: 64, 64>}, {pipeline_mode = #tpu.pipeline_mode<synchronous>, transform_indices = @transform_15, window_bounds = array<i64: 64, 1>}, {pipeline_mode = #tpu.pipeline_mode<synchronous>, transform_indices = @transform_16, window_bounds = array<i64: 8, 25>}, {pipeline_mode = #tpu.pipeline_mode<synchronous>, transform_indices = @transform_17, window_bounds = array<i64: 25, 1>}, {transform_indices = @transform_18, window_bounds = array<i64: 1, 1, 32>}]} {
    %c0 = arith.constant 0 : index
    %c0_0 = arith.constant 0 : index
    %c0_1 = arith.constant 0 : index
    %0 = vector.load %arg1[%c0, %c0_0, %c0_1] : memref<1x1x32xf32, #tpu.memory_space<vmem>>, vector<1x1x32xf32>
    %1 = vector.shape_cast %0 : vector<1x1x32xf32> to vector<1x32xf32>
    %2 = vector.extract_strided_slice %1 {offsets = [0, 0], sizes = [1, 16], strides = [1, 1]} : vector<1x32xf32> to vector<1x16xf32>
    %3 = vector.extract_strided_slice %2 {offsets = [0, 14], sizes = [1, 2], strides = [1, 1]} : vector<1x16xf32> to vector<1x2xf32>
    %4 = vector.extract_strided_slice %2 {offsets = [0, 0], sizes = [1, 2], strides = [1, 1]} : vector<1x16xf32> to vector<1x2xf32>
    %5 = tpu.concatenate %3, %2, %4 in 1 : vector<1x2xf32>, vector<1x16xf32>, vector<1x2xf32> -> vector<1x20xf32>
    %6 = vector.extract_strided_slice %1 {offsets = [0, 16], sizes = [1, 16], strides = [1, 1]} : vector<1x32xf32> to vector<1x16xf32>
    %7 = vector.extract_strided_slice %6 {offsets = [0, 14], sizes = [1, 2], strides = [1, 1]} : vector<1x16xf32> to vector<1x2xf32>
    %8 = vector.extract_strided_slice %6 {offsets = [0, 0], sizes = [1, 2], strides = [1, 1]} : vector<1x16xf32> to vector<1x2xf32>
    %9 = tpu.concatenate %7, %6, %8 in 1 : vector<1x2xf32>, vector<1x16xf32>, vector<1x2xf32> -> vector<1x20xf32>
    %10 = tpu.concatenate %5, %9 in 1 : vector<1x20xf32>, vector<1x20xf32> -> vector<1x40xf32>
    %c0_2 = arith.constant 0 : index
    %c0_3 = arith.constant 0 : index
    %11 = vector.load %arg11[%c0_2, %c0_3] : memref<8x2xf32, #tpu.memory_space<vmem>>, vector<8x1xf32>
    %12 = vector.broadcast %11 : vector<8x1xf32> to vector<8x40xf32>
    %13 = vector.broadcast %10 : vector<1x40xf32> to vector<8x40xf32>
    %14 = arith.mulf %12, %13 : vector<8x40xf32>
    %c0_4 = arith.constant 0 : index
    %c1 = arith.constant 1 : index
    %15 = vector.load %arg11[%c0_4, %c1] : memref<8x2xf32, #tpu.memory_space<vmem>>, vector<8x1xf32>
    %16 = vector.broadcast %15 : vector<8x1xf32> to vector<8x40xf32>
    %17 = arith.addf %14, %16 : vector<8x40xf32>
    %cst = arith.constant 0.000000e+00 : f32
    %18 = vector.broadcast %cst : f32 to vector<8x40xf32>
    %19 = arith.cmpf oge, %17, %18 : vector<8x40xf32>
    %cst_5 = arith.constant 4.000000e-01 : f32
    %20 = vector.broadcast %cst_5 : f32 to vector<8x40xf32>
    %21 = arith.mulf %20, %17 : vector<8x40xf32>
    %22 = arith.select %19, %17, %21 : vector<8x40xi1>, vector<8x40xf32>
    %c0_6 = arith.constant 0 : index
    %c0_7 = arith.constant 0 : index
    %c0_8 = arith.constant 0 : index
    %23 = vector.load %arg3[%c0_6, %c0_7, %c0_8] : memref<1x32x2xf32, #tpu.memory_space<vmem>>, vector<1x32x2xf32>
    %24 = vector.shape_cast %23 : vector<1x32x2xf32> to vector<32x2xf32>
    %c0_9 = arith.constant 0 : index
    %c0_10 = arith.constant 0 : index
    %25 = vector.load %arg5[%c0_9, %c0_10] : memref<64x32xf32, #tpu.memory_space<vmem>>, vector<64x32xf32>
    %cst_11 = arith.constant dense<0.000000e+00> : vector<64x2xf32>
    %26 = tpu.matmul %25, %24, %cst_11 {dimension_numbers = #tpu.dot_dimension_numbers<[1], [0], [0], [1], [0, 0, 1, 1], [], []>} : vector<64x32xf32>, vector<32x2xf32>, vector<64x2xf32> -> vector<64x2xf32>
    %c0_12 = arith.constant 0 : index
    %c0_13 = arith.constant 0 : index
    %27 = vector.load %arg7[%c0_12, %c0_13] : memref<64x2xf32, #tpu.memory_space<vmem>>, vector<64x1xf32>
    %28 = vector.broadcast %27 : vector<64x1xf32> to vector<64x2xf32>
    %29 = arith.addf %26, %28 : vector<64x2xf32>
    %30 = arith.negf %29 : vector<64x2xf32>
    %31 = math.exp %30 : vector<64x2xf32>
    %cst_14 = arith.constant 1.000000e+00 : f32
    %32 = vector.broadcast %cst_14 : f32 to vector<64x2xf32>
    %33 = arith.addf %32, %31 : vector<64x2xf32>
    %34 = arith.divf %32, %33 : vector<64x2xf32>
    %35 = arith.mulf %29, %34 : vector<64x2xf32>
    %c0_15 = arith.constant 0 : index
    %c0_16 = arith.constant 0 : index
    %36 = vector.load %arg6[%c0_15, %c0_16] : memref<64x64xf32, #tpu.memory_space<vmem>>, vector<64x64xf32>
    %cst_17 = arith.constant dense<0.000000e+00> : vector<64x2xf32>
    %37 = tpu.matmul %36, %35, %cst_17 {dimension_numbers = #tpu.dot_dimension_numbers<[1], [0], [0], [1], [0, 0, 1, 1], [], []>} : vector<64x64xf32>, vector<64x2xf32>, vector<64x2xf32> -> vector<64x2xf32>
    %c0_18 = arith.constant 0 : index
    %c1_19 = arith.constant 1 : index
    %38 = vector.load %arg7[%c0_18, %c1_19] : memref<64x2xf32, #tpu.memory_space<vmem>>, vector<64x1xf32>
    %39 = vector.broadcast %38 : vector<64x1xf32> to vector<64x2xf32>
    %40 = arith.addf %37, %39 : vector<64x2xf32>
    %41 = arith.negf %40 : vector<64x2xf32>
    %42 = math.exp %41 : vector<64x2xf32>
    %cst_20 = arith.constant 1.000000e+00 : f32
    %43 = vector.broadcast %cst_20 : f32 to vector<64x2xf32>
    %44 = arith.addf %43, %42 : vector<64x2xf32>
    %45 = arith.divf %43, %44 : vector<64x2xf32>
    %46 = arith.mulf %40, %45 : vector<64x2xf32>
    %c0_21 = arith.constant 0 : index
    %c0_22 = arith.constant 0 : index
    %47 = vector.load %arg15[%c0_21, %c0_22] : memref<64x64xf32, #tpu.memory_space<vmem>>, vector<64x64xf32>
    %cst_23 = arith.constant dense<0.000000e+00> : vector<64x2xf32>
    %48 = tpu.matmul %47, %46, %cst_23 {dimension_numbers = #tpu.dot_dimension_numbers<[1], [0], [0], [1], [0, 0, 1, 1], [], []>} : vector<64x64xf32>, vector<64x2xf32>, vector<64x2xf32> -> vector<64x2xf32>
    %c0_24 = arith.constant 0 : index
    %c0_25 = arith.constant 0 : index
    %49 = vector.load %arg16[%c0_24, %c0_25] : memref<64x1xf32, #tpu.memory_space<vmem>>, vector<64x1xf32>
    %50 = vector.broadcast %49 : vector<64x1xf32> to vector<64x2xf32>
    %51 = arith.addf %48, %50 : vector<64x2xf32>
    %52 = vector.extract_strided_slice %51 {offsets = [0, 0], sizes = [64, 1], strides = [1, 1]} : vector<64x2xf32> to vector<64x1xf32>
    %53 = vector.shape_cast %52 : vector<64x1xf32> to vector<64x1xf32>
    %54 = vector.broadcast %53 : vector<64x1xf32> to vector<64x20xf32>
    %55 = vector.extract_strided_slice %51 {offsets = [0, 1], sizes = [64, 1], strides = [1, 1]} : vector<64x2xf32> to vector<64x1xf32>
    %56 = vector.shape_cast %55 : vector<64x1xf32> to vector<64x1xf32>
    %57 = vector.broadcast %56 : vector<64x1xf32> to vector<64x20xf32>
    %58 = tpu.concatenate %54, %57 in 1 : vector<64x20xf32>, vector<64x20xf32> -> vector<64x40xf32>
    %c0_26 = arith.constant 0 : index
    %c0_27 = arith.constant 0 : index
    %c0_28 = arith.constant 0 : index
    %59 = vector.load %arg2[%c0_26, %c0_27, %c0_28] : memref<1x2x8xf32, #tpu.memory_space<vmem>>, vector<1x2x8xf32>
    %60 = vector.shape_cast %59 : vector<1x2x8xf32> to vector<2x8xf32>
    %c0_29 = arith.constant 0 : index
    %c0_30 = arith.constant 0 : index
    %61 = vector.load %arg8[%c0_29, %c0_30] : memref<8x8xf32, #tpu.memory_space<vmem>>, vector<8x8xf32>
    %cst_31 = arith.constant dense<0.000000e+00> : vector<2x8xf32>
    %62 = tpu.matmul %60, %61, %cst_31 {dimension_numbers = #tpu.dot_dimension_numbers<[1], [0], [0], [1], [0, 0, 1, 1], [], []>} : vector<2x8xf32>, vector<8x8xf32>, vector<2x8xf32> -> vector<2x8xf32>
    %c0_32 = arith.constant 0 : index
    %c0_33 = arith.constant 0 : index
    %63 = vector.load %arg10[%c0_32, %c0_33] : memref<2x16xf32, #tpu.memory_space<vmem>>, vector<1x8xf32>
    %64 = vector.broadcast %63 : vector<1x8xf32> to vector<2x8xf32>
    %65 = arith.addf %62, %64 : vector<2x8xf32>
    %cst_34 = arith.constant 0.000000e+00 : f32
    %66 = vector.broadcast %cst_34 : f32 to vector<2x8xf32>
    %67 = arith.cmpf oge, %65, %66 : vector<2x8xf32>
    %cst_35 = arith.constant 4.000000e-01 : f32
    %68 = vector.broadcast %cst_35 : f32 to vector<2x8xf32>
    %69 = arith.mulf %68, %65 : vector<2x8xf32>
    %70 = arith.select %67, %65, %69 : vector<2x8xi1>, vector<2x8xf32>
    %c0_36 = arith.constant 0 : index
    %c0_37 = arith.constant 0 : index
    %71 = vector.load %arg9[%c0_36, %c0_37] : memref<8x16xf32, #tpu.memory_space<vmem>>, vector<8x16xf32>
    %cst_38 = arith.constant dense<0.000000e+00> : vector<2x16xf32>
    %72 = tpu.matmul %70, %71, %cst_38 {dimension_numbers = #tpu.dot_dimension_numbers<[1], [0], [0], [1], [0, 0, 1, 1], [], []>} : vector<2x8xf32>, vector<8x16xf32>, vector<2x16xf32> -> vector<2x16xf32>
    %c1_39 = arith.constant 1 : index
    %c0_40 = arith.constant 0 : index
    %73 = vector.load %arg10[%c1_39, %c0_40] : memref<2x16xf32, #tpu.memory_space<vmem>>, vector<1x16xf32>
    %74 = vector.broadcast %73 : vector<1x16xf32> to vector<2x16xf32>
    %75 = arith.addf %72, %74 : vector<2x16xf32>
    %cst_41 = arith.constant 0.000000e+00 : f32
    %76 = vector.broadcast %cst_41 : f32 to vector<2x16xf32>
    %77 = arith.cmpf oge, %75, %76 : vector<2x16xf32>
    %cst_42 = arith.constant 4.000000e-01 : f32
    %78 = vector.broadcast %cst_42 : f32 to vector<2x16xf32>
    %79 = arith.mulf %78, %75 : vector<2x16xf32>
    %80 = arith.select %77, %75, %79 : vector<2x16xi1>, vector<2x16xf32>
    %81 = vector.extract_strided_slice %80 {offsets = [0, 14], sizes = [1, 2], strides = [1, 1]} : vector<2x16xf32> to vector<1x2xf32>
    %82 = vector.extract_strided_slice %80 {offsets = [0, 0], sizes = [1, 16], strides = [1, 1]} : vector<2x16xf32> to vector<1x16xf32>
    %83 = vector.extract_strided_slice %80 {offsets = [0, 0], sizes = [1, 2], strides = [1, 1]} : vector<2x16xf32> to vector<1x2xf32>
    %84 = tpu.concatenate %81, %82, %83 in 1 : vector<1x2xf32>, vector<1x16xf32>, vector<1x2xf32> -> vector<1x20xf32>
    %85 = vector.extract_strided_slice %80 {offsets = [1, 14], sizes = [1, 2], strides = [1, 1]} : vector<2x16xf32> to vector<1x2xf32>
    %86 = vector.extract_strided_slice %80 {offsets = [1, 0], sizes = [1, 16], strides = [1, 1]} : vector<2x16xf32> to vector<1x16xf32>
    %87 = vector.extract_strided_slice %80 {offsets = [1, 0], sizes = [1, 2], strides = [1, 1]} : vector<2x16xf32> to vector<1x2xf32>
    %88 = tpu.concatenate %85, %86, %87 in 1 : vector<1x2xf32>, vector<1x16xf32>, vector<1x2xf32> -> vector<1x20xf32>
    %89 = tpu.concatenate %84, %88 in 1 : vector<1x20xf32>, vector<1x20xf32> -> vector<1x40xf32>
    %c0_43 = arith.constant 0 : index
    %c1_44 = arith.constant 1 : index
    %90 = vector.load %arg14[%c0_43, %c1_44] : memref<128x4xf32, #tpu.memory_space<vmem>>, vector<128x1xf32>
    %91 = vector.broadcast %90 : vector<128x1xf32> to vector<128x40xf32>
    %92 = vector.broadcast %89 : vector<1x40xf32> to vector<128x40xf32>
    %93 = arith.mulf %91, %92 : vector<128x40xf32>
    %c0_45 = arith.constant 0 : index
    %c2 = arith.constant 2 : index
    %94 = vector.load %arg14[%c0_45, %c2] : memref<128x4xf32, #tpu.memory_space<vmem>>, vector<128x1xf32>
    %95 = vector.broadcast %94 : vector<128x1xf32> to vector<128x40xf32>
    %96 = arith.addf %93, %95 : vector<128x40xf32>
    %c0_46 = arith.constant 0 : index
    %c0_47 = arith.constant 0 : index
    %97 = vector.load %arg14[%c0_46, %c0_47] : memref<128x4xf32, #tpu.memory_space<vmem>>, vector<128x1xf32>
    %c0_48 = arith.constant 0 : index
    %c3 = arith.constant 3 : index
    %98 = vector.load %arg14[%c0_48, %c3] : memref<128x4xf32, #tpu.memory_space<vmem>>, vector<128x1xf32>
    %cst_49 = arith.constant 0.000000e+00 : f32
    %99 = vector.broadcast %cst_49 : f32 to vector<8x40xf32>
    %100 = vector.extract_strided_slice %58 {offsets = [0, 0], sizes = [8, 40], strides = [1, 1]} : vector<64x40xf32> to vector<8x40xf32>
    %101 = arith.addf %22, %100 : vector<8x40xf32>
    %c0_50 = arith.constant 0 : index
    %c0_51 = arith.constant 0 : index
    %c0_52 = arith.constant 0 : index
    %c0_53 = arith.constant 0 : index
    %102 = vector.load %arg4[%c0_50, %c0_51, %c0_52, %c0_53] : memref<2x2x40x40xf32, #tpu.memory_space<vmem>>, vector<1x1x40x40xf32>
    %103 = vector.shape_cast %102 : vector<1x1x40x40xf32> to vector<40x40xf32>
    %cst_54 = arith.constant dense<0.000000e+00> : vector<8x40xf32>
    %104 = tpu.matmul %101, %103, %cst_54 {dimension_numbers = #tpu.dot_dimension_numbers<[1], [0], [0], [1], [0, 0, 1, 1], [], []>} : vector<8x40xf32>, vector<40x40xf32>, vector<8x40xf32> -> vector<8x40xf32>
    %c0_55 = arith.constant 0 : index
    %c1_56 = arith.constant 1 : index
    %c0_57 = arith.constant 0 : index
    %c0_58 = arith.constant 0 : index
    %105 = vector.load %arg4[%c0_55, %c1_56, %c0_57, %c0_58] : memref<2x2x40x40xf32, #tpu.memory_space<vmem>>, vector<1x1x40x40xf32>
    %106 = vector.shape_cast %105 : vector<1x1x40x40xf32> to vector<40x40xf32>
    %cst_59 = arith.constant dense<0.000000e+00> : vector<8x40xf32>
    %107 = tpu.matmul %101, %106, %cst_59 {dimension_numbers = #tpu.dot_dimension_numbers<[1], [0], [0], [1], [0, 0, 1, 1], [], []>} : vector<8x40xf32>, vector<40x40xf32>, vector<8x40xf32> -> vector<8x40xf32>
    %108 = tpu.concatenate %104, %101, %107 in 0 : vector<8x40xf32>, vector<8x40xf32>, vector<8x40xf32> -> vector<24x40xf32>
    %c0_60 = arith.constant 0 : index
    %c0_61 = arith.constant 0 : index
    %c0_62 = arith.constant 0 : index
    %109 = vector.load %arg12[%c0_60, %c0_61, %c0_62] : memref<8x16x24xf32, #tpu.memory_space<vmem>>, vector<1x16x24xf32>
    %110 = vector.shape_cast %109 : vector<1x16x24xf32> to vector<16x24xf32>
    %cst_63 = arith.constant dense<0.000000e+00> : vector<16x40xf32>
    %111 = tpu.matmul %110, %108, %cst_63 {dimension_numbers = #tpu.dot_dimension_numbers<[1], [0], [0], [1], [0, 0, 1, 1], [], []>} : vector<16x24xf32>, vector<24x40xf32>, vector<16x40xf32> -> vector<16x40xf32>
    %112 = vector.extract_strided_slice %97 {offsets = [0, 0], sizes = [16, 1], strides = [1, 1]} : vector<128x1xf32> to vector<16x1xf32>
    %113 = vector.broadcast %112 : vector<16x1xf32> to vector<16x40xf32>
    %114 = arith.addf %111, %113 : vector<16x40xf32>
    %115 = vector.extract_strided_slice %96 {offsets = [0, 0], sizes = [16, 40], strides = [1, 1]} : vector<128x40xf32> to vector<16x40xf32>
    %116 = arith.addf %114, %115 : vector<16x40xf32>
    %117 = vector.extract_strided_slice %116 {offsets = [0, 0], sizes = [8, 40], strides = [1, 1]} : vector<16x40xf32> to vector<8x40xf32>
    %118 = arith.negf %117 : vector<8x40xf32>
    %119 = math.exp %118 : vector<8x40xf32>
    %cst_64 = arith.constant 1.000000e+00 : f32
    %120 = vector.broadcast %cst_64 : f32 to vector<8x40xf32>
    %121 = arith.addf %120, %119 : vector<8x40xf32>
    %122 = arith.divf %120, %121 : vector<8x40xf32>
    %123 = vector.extract_strided_slice %116 {offsets = [8, 0], sizes = [8, 40], strides = [1, 1]} : vector<16x40xf32> to vector<8x40xf32>
    %124 = math.tanh %123 : vector<8x40xf32>
    %125 = arith.mulf %122, %124 : vector<8x40xf32>
    %c0_65 = arith.constant 0 : index
    %c0_66 = arith.constant 0 : index
    %c0_67 = arith.constant 0 : index
    %126 = vector.load %arg13[%c0_65, %c0_66, %c0_67] : memref<8x16x8xf32, #tpu.memory_space<vmem>>, vector<1x16x8xf32>
    %127 = vector.shape_cast %126 : vector<1x16x8xf32> to vector<16x8xf32>
    %cst_68 = arith.constant dense<0.000000e+00> : vector<16x40xf32>
    %128 = tpu.matmul %127, %125, %cst_68 {dimension_numbers = #tpu.dot_dimension_numbers<[1], [0], [0], [1], [0, 0, 1, 1], [], []>} : vector<16x8xf32>, vector<8x40xf32>, vector<16x40xf32> -> vector<16x40xf32>
    %129 = vector.extract_strided_slice %98 {offsets = [0, 0], sizes = [16, 1], strides = [1, 1]} : vector<128x1xf32> to vector<16x1xf32>
    %130 = vector.broadcast %129 : vector<16x1xf32> to vector<16x40xf32>
    %131 = arith.addf %128, %130 : vector<16x40xf32>
    %cst_69 = arith.constant 0.000000e+00 : f32
    %132 = vector.broadcast %cst_69 : f32 to vector<16x40xf32>
    %133 = arith.cmpf oge, %131, %132 : vector<16x40xf32>
    %cst_70 = arith.constant 4.000000e-01 : f32
    %134 = vector.broadcast %cst_70 : f32 to vector<16x40xf32>
    %135 = arith.mulf %134, %131 : vector<16x40xf32>
    %136 = arith.select %133, %131, %135 : vector<16x40xi1>, vector<16x40xf32>
    %137 = vector.extract_strided_slice %136 {offsets = [0, 0], sizes = [8, 40], strides = [1, 1]} : vector<16x40xf32> to vector<8x40xf32>
    %138 = arith.addf %22, %137 : vector<8x40xf32>
    %cst_71 = arith.constant 0.707106769 : f32
    %139 = vector.broadcast %cst_71 : f32 to vector<8x40xf32>
    %140 = arith.mulf %138, %139 : vector<8x40xf32>
    %141 = vector.extract_strided_slice %136 {offsets = [8, 0], sizes = [8, 40], strides = [1, 1]} : vector<16x40xf32> to vector<8x40xf32>
    %142 = arith.addf %99, %141 : vector<8x40xf32>
    %143 = vector.extract_strided_slice %58 {offsets = [8, 0], sizes = [8, 40], strides = [1, 1]} : vector<64x40xf32> to vector<8x40xf32>
    %144 = arith.addf %140, %143 : vector<8x40xf32>
    %c1_72 = arith.constant 1 : index
    %c0_73 = arith.constant 0 : index
    %c0_74 = arith.constant 0 : index
    %c0_75 = arith.constant 0 : index
    %145 = vector.load %arg4[%c1_72, %c0_73, %c0_74, %c0_75] : memref<2x2x40x40xf32, #tpu.memory_space<vmem>>, vector<1x1x40x40xf32>
    %146 = vector.shape_cast %145 : vector<1x1x40x40xf32> to vector<40x40xf32>
    %cst_76 = arith.constant dense<0.000000e+00> : vector<8x40xf32>
    %147 = tpu.matmul %144, %146, %cst_76 {dimension_numbers = #tpu.dot_dimension_numbers<[1], [0], [0], [1], [0, 0, 1, 1], [], []>} : vector<8x40xf32>, vector<40x40xf32>, vector<8x40xf32> -> vector<8x40xf32>
    %c1_77 = arith.constant 1 : index
    %c1_78 = arith.constant 1 : index
    %c0_79 = arith.constant 0 : index
    %c0_80 = arith.constant 0 : index
    %148 = vector.load %arg4[%c1_77, %c1_78, %c0_79, %c0_80] : memref<2x2x40x40xf32, #tpu.memory_space<vmem>>, vector<1x1x40x40xf32>
    %149 = vector.shape_cast %148 : vector<1x1x40x40xf32> to vector<40x40xf32>
    %cst_81 = arith.constant dense<0.000000e+00> : vector<8x40xf32>
    %150 = tpu.matmul %144, %149, %cst_81 {dimension_numbers = #tpu.dot_dimension_numbers<[1], [0], [0], [1], [0, 0, 1, 1], [], []>} : vector<8x40xf32>, vector<40x40xf32>, vector<8x40xf32> -> vector<8x40xf32>
    %151 = tpu.concatenate %147, %144, %150 in 0 : vector<8x40xf32>, vector<8x40xf32>, vector<8x40xf32> -> vector<24x40xf32>
    %c1_82 = arith.constant 1 : index
    %c0_83 = arith.constant 0 : index
    %c0_84 = arith.constant 0 : index
    %152 = vector.load %arg12[%c1_82, %c0_83, %c0_84] : memref<8x16x24xf32, #tpu.memory_space<vmem>>, vector<1x16x24xf32>
    %153 = vector.shape_cast %152 : vector<1x16x24xf32> to vector<16x24xf32>
    %cst_85 = arith.constant dense<0.000000e+00> : vector<16x40xf32>
    %154 = tpu.matmul %153, %151, %cst_85 {dimension_numbers = #tpu.dot_dimension_numbers<[1], [0], [0], [1], [0, 0, 1, 1], [], []>} : vector<16x24xf32>, vector<24x40xf32>, vector<16x40xf32> -> vector<16x40xf32>
    %155 = vector.extract_strided_slice %97 {offsets = [16, 0], sizes = [16, 1], strides = [1, 1]} : vector<128x1xf32> to vector<16x1xf32>
    %156 = vector.broadcast %155 : vector<16x1xf32> to vector<16x40xf32>
    %157 = arith.addf %154, %156 : vector<16x40xf32>
    %158 = vector.extract_strided_slice %96 {offsets = [16, 0], sizes = [16, 40], strides = [1, 1]} : vector<128x40xf32> to vector<16x40xf32>
    %159 = arith.addf %157, %158 : vector<16x40xf32>
    %160 = vector.extract_strided_slice %159 {offsets = [0, 0], sizes = [8, 40], strides = [1, 1]} : vector<16x40xf32> to vector<8x40xf32>
    %161 = arith.negf %160 : vector<8x40xf32>
    %162 = math.exp %161 : vector<8x40xf32>
    %cst_86 = arith.constant 1.000000e+00 : f32
    %163 = vector.broadcast %cst_86 : f32 to vector<8x40xf32>
    %164 = arith.addf %163, %162 : vector<8x40xf32>
    %165 = arith.divf %163, %164 : vector<8x40xf32>
    %166 = vector.extract_strided_slice %159 {offsets = [8, 0], sizes = [8, 40], strides = [1, 1]} : vector<16x40xf32> to vector<8x40xf32>
    %167 = math.tanh %166 : vector<8x40xf32>
    %168 = arith.mulf %165, %167 : vector<8x40xf32>
    %c1_87 = arith.constant 1 : index
    %c0_88 = arith.constant 0 : index
    %c0_89 = arith.constant 0 : index
    %169 = vector.load %arg13[%c1_87, %c0_88, %c0_89] : memref<8x16x8xf32, #tpu.memory_space<vmem>>, vector<1x16x8xf32>
    %170 = vector.shape_cast %169 : vector<1x16x8xf32> to vector<16x8xf32>
    %cst_90 = arith.constant dense<0.000000e+00> : vector<16x40xf32>
    %171 = tpu.matmul %170, %168, %cst_90 {dimension_numbers = #tpu.dot_dimension_numbers<[1], [0], [0], [1], [0, 0, 1, 1], [], []>} : vector<16x8xf32>, vector<8x40xf32>, vector<16x40xf32> -> vector<16x40xf32>
    %172 = vector.extract_strided_slice %98 {offsets = [16, 0], sizes = [16, 1], strides = [1, 1]} : vector<128x1xf32> to vector<16x1xf32>
    %173 = vector.broadcast %172 : vector<16x1xf32> to vector<16x40xf32>
    %174 = arith.addf %171, %173 : vector<16x40xf32>
    %cst_91 = arith.constant 0.000000e+00 : f32
    %175 = vector.broadcast %cst_91 : f32 to vector<16x40xf32>
    %176 = arith.cmpf oge, %174, %175 : vector<16x40xf32>
    %cst_92 = arith.constant 4.000000e-01 : f32
    %177 = vector.broadcast %cst_92 : f32 to vector<16x40xf32>
    %178 = arith.mulf %177, %174 : vector<16x40xf32>
    %179 = arith.select %176, %174, %178 : vector<16x40xi1>, vector<16x40xf32>
    %180 = vector.extract_strided_slice %179 {offsets = [0, 0], sizes = [8, 40], strides = [1, 1]} : vector<16x40xf32> to vector<8x40xf32>
    %181 = arith.addf %140, %180 : vector<8x40xf32>
    %cst_93 = arith.constant 0.707106769 : f32
    %182 = vector.broadcast %cst_93 : f32 to vector<8x40xf32>
    %183 = arith.mulf %181, %182 : vector<8x40xf32>
    %184 = vector.extract_strided_slice %179 {offsets = [8, 0], sizes = [8, 40], strides = [1, 1]} : vector<16x40xf32> to vector<8x40xf32>
    %185 = arith.addf %142, %184 : vector<8x40xf32>
    %186 = vector.extract_strided_slice %58 {offsets = [16, 0], sizes = [8, 40], strides = [1, 1]} : vector<64x40xf32> to vector<8x40xf32>
    %187 = arith.addf %183, %186 : vector<8x40xf32>
    %c0_94 = arith.constant 0 : index
    %c0_95 = arith.constant 0 : index
    %c0_96 = arith.constant 0 : index
    %c0_97 = arith.constant 0 : index
    %188 = vector.load %arg4[%c0_94, %c0_95, %c0_96, %c0_97] : memref<2x2x40x40xf32, #tpu.memory_space<vmem>>, vector<1x1x40x40xf32>
    %189 = vector.shape_cast %188 : vector<1x1x40x40xf32> to vector<40x40xf32>
    %cst_98 = arith.constant dense<0.000000e+00> : vector<8x40xf32>
    %190 = tpu.matmul %187, %189, %cst_98 {dimension_numbers = #tpu.dot_dimension_numbers<[1], [0], [0], [1], [0, 0, 1, 1], [], []>} : vector<8x40xf32>, vector<40x40xf32>, vector<8x40xf32> -> vector<8x40xf32>
    %c0_99 = arith.constant 0 : index
    %c1_100 = arith.constant 1 : index
    %c0_101 = arith.constant 0 : index
    %c0_102 = arith.constant 0 : index
    %191 = vector.load %arg4[%c0_99, %c1_100, %c0_101, %c0_102] : memref<2x2x40x40xf32, #tpu.memory_space<vmem>>, vector<1x1x40x40xf32>
    %192 = vector.shape_cast %191 : vector<1x1x40x40xf32> to vector<40x40xf32>
    %cst_103 = arith.constant dense<0.000000e+00> : vector<8x40xf32>
    %193 = tpu.matmul %187, %192, %cst_103 {dimension_numbers = #tpu.dot_dimension_numbers<[1], [0], [0], [1], [0, 0, 1, 1], [], []>} : vector<8x40xf32>, vector<40x40xf32>, vector<8x40xf32> -> vector<8x40xf32>
    %194 = tpu.concatenate %190, %187, %193 in 0 : vector<8x40xf32>, vector<8x40xf32>, vector<8x40xf32> -> vector<24x40xf32>
    %c2_104 = arith.constant 2 : index
    %c0_105 = arith.constant 0 : index
    %c0_106 = arith.constant 0 : index
    %195 = vector.load %arg12[%c2_104, %c0_105, %c0_106] : memref<8x16x24xf32, #tpu.memory_space<vmem>>, vector<1x16x24xf32>
    %196 = vector.shape_cast %195 : vector<1x16x24xf32> to vector<16x24xf32>
    %cst_107 = arith.constant dense<0.000000e+00> : vector<16x40xf32>
    %197 = tpu.matmul %196, %194, %cst_107 {dimension_numbers = #tpu.dot_dimension_numbers<[1], [0], [0], [1], [0, 0, 1, 1], [], []>} : vector<16x24xf32>, vector<24x40xf32>, vector<16x40xf32> -> vector<16x40xf32>
    %198 = vector.extract_strided_slice %97 {offsets = [32, 0], sizes = [16, 1], strides = [1, 1]} : vector<128x1xf32> to vector<16x1xf32>
    %199 = vector.broadcast %198 : vector<16x1xf32> to vector<16x40xf32>
    %200 = arith.addf %197, %199 : vector<16x40xf32>
    %201 = vector.extract_strided_slice %96 {offsets = [32, 0], sizes = [16, 40], strides = [1, 1]} : vector<128x40xf32> to vector<16x40xf32>
    %202 = arith.addf %200, %201 : vector<16x40xf32>
    %203 = vector.extract_strided_slice %202 {offsets = [0, 0], sizes = [8, 40], strides = [1, 1]} : vector<16x40xf32> to vector<8x40xf32>
    %204 = arith.negf %203 : vector<8x40xf32>
    %205 = math.exp %204 : vector<8x40xf32>
    %cst_108 = arith.constant 1.000000e+00 : f32
    %206 = vector.broadcast %cst_108 : f32 to vector<8x40xf32>
    %207 = arith.addf %206, %205 : vector<8x40xf32>
    %208 = arith.divf %206, %207 : vector<8x40xf32>
    %209 = vector.extract_strided_slice %202 {offsets = [8, 0], sizes = [8, 40], strides = [1, 1]} : vector<16x40xf32> to vector<8x40xf32>
    %210 = math.tanh %209 : vector<8x40xf32>
    %211 = arith.mulf %208, %210 : vector<8x40xf32>
    %c2_109 = arith.constant 2 : index
    %c0_110 = arith.constant 0 : index
    %c0_111 = arith.constant 0 : index
    %212 = vector.load %arg13[%c2_109, %c0_110, %c0_111] : memref<8x16x8xf32, #tpu.memory_space<vmem>>, vector<1x16x8xf32>
    %213 = vector.shape_cast %212 : vector<1x16x8xf32> to vector<16x8xf32>
    %cst_112 = arith.constant dense<0.000000e+00> : vector<16x40xf32>
    %214 = tpu.matmul %213, %211, %cst_112 {dimension_numbers = #tpu.dot_dimension_numbers<[1], [0], [0], [1], [0, 0, 1, 1], [], []>} : vector<16x8xf32>, vector<8x40xf32>, vector<16x40xf32> -> vector<16x40xf32>
    %215 = vector.extract_strided_slice %98 {offsets = [32, 0], sizes = [16, 1], strides = [1, 1]} : vector<128x1xf32> to vector<16x1xf32>
    %216 = vector.broadcast %215 : vector<16x1xf32> to vector<16x40xf32>
    %217 = arith.addf %214, %216 : vector<16x40xf32>
    %cst_113 = arith.constant 0.000000e+00 : f32
    %218 = vector.broadcast %cst_113 : f32 to vector<16x40xf32>
    %219 = arith.cmpf oge, %217, %218 : vector<16x40xf32>
    %cst_114 = arith.constant 4.000000e-01 : f32
    %220 = vector.broadcast %cst_114 : f32 to vector<16x40xf32>
    %221 = arith.mulf %220, %217 : vector<16x40xf32>
    %222 = arith.select %219, %217, %221 : vector<16x40xi1>, vector<16x40xf32>
    %223 = vector.extract_strided_slice %222 {offsets = [0, 0], sizes = [8, 40], strides = [1, 1]} : vector<16x40xf32> to vector<8x40xf32>
    %224 = arith.addf %183, %223 : vector<8x40xf32>
    %cst_115 = arith.constant 0.707106769 : f32
    %225 = vector.broadcast %cst_115 : f32 to vector<8x40xf32>
    %226 = arith.mulf %224, %225 : vector<8x40xf32>
    %227 = vector.extract_strided_slice %222 {offsets = [8, 0], sizes = [8, 40], strides = [1, 1]} : vector<16x40xf32> to vector<8x40xf32>
    %228 = arith.addf %185, %227 : vector<8x40xf32>
    %229 = vector.extract_strided_slice %58 {offsets = [24, 0], sizes = [8, 40], strides = [1, 1]} : vector<64x40xf32> to vector<8x40xf32>
    %230 = arith.addf %226, %229 : vector<8x40xf32>
    %c1_116 = arith.constant 1 : index
    %c0_117 = arith.constant 0 : index
    %c0_118 = arith.constant 0 : index
    %c0_119 = arith.constant 0 : index
    %231 = vector.load %arg4[%c1_116, %c0_117, %c0_118, %c0_119] : memref<2x2x40x40xf32, #tpu.memory_space<vmem>>, vector<1x1x40x40xf32>
    %232 = vector.shape_cast %231 : vector<1x1x40x40xf32> to vector<40x40xf32>
    %cst_120 = arith.constant dense<0.000000e+00> : vector<8x40xf32>
    %233 = tpu.matmul %230, %232, %cst_120 {dimension_numbers = #tpu.dot_dimension_numbers<[1], [0], [0], [1], [0, 0, 1, 1], [], []>} : vector<8x40xf32>, vector<40x40xf32>, vector<8x40xf32> -> vector<8x40xf32>
    %c1_121 = arith.constant 1 : index
    %c1_122 = arith.constant 1 : index
    %c0_123 = arith.constant 0 : index
    %c0_124 = arith.constant 0 : index
    %234 = vector.load %arg4[%c1_121, %c1_122, %c0_123, %c0_124] : memref<2x2x40x40xf32, #tpu.memory_space<vmem>>, vector<1x1x40x40xf32>
    %235 = vector.shape_cast %234 : vector<1x1x40x40xf32> to vector<40x40xf32>
    %cst_125 = arith.constant dense<0.000000e+00> : vector<8x40xf32>
    %236 = tpu.matmul %230, %235, %cst_125 {dimension_numbers = #tpu.dot_dimension_numbers<[1], [0], [0], [1], [0, 0, 1, 1], [], []>} : vector<8x40xf32>, vector<40x40xf32>, vector<8x40xf32> -> vector<8x40xf32>
    %237 = tpu.concatenate %233, %230, %236 in 0 : vector<8x40xf32>, vector<8x40xf32>, vector<8x40xf32> -> vector<24x40xf32>
    %c3_126 = arith.constant 3 : index
    %c0_127 = arith.constant 0 : index
    %c0_128 = arith.constant 0 : index
    %238 = vector.load %arg12[%c3_126, %c0_127, %c0_128] : memref<8x16x24xf32, #tpu.memory_space<vmem>>, vector<1x16x24xf32>
    %239 = vector.shape_cast %238 : vector<1x16x24xf32> to vector<16x24xf32>
    %cst_129 = arith.constant dense<0.000000e+00> : vector<16x40xf32>
    %240 = tpu.matmul %239, %237, %cst_129 {dimension_numbers = #tpu.dot_dimension_numbers<[1], [0], [0], [1], [0, 0, 1, 1], [], []>} : vector<16x24xf32>, vector<24x40xf32>, vector<16x40xf32> -> vector<16x40xf32>
    %241 = vector.extract_strided_slice %97 {offsets = [48, 0], sizes = [16, 1], strides = [1, 1]} : vector<128x1xf32> to vector<16x1xf32>
    %242 = vector.broadcast %241 : vector<16x1xf32> to vector<16x40xf32>
    %243 = arith.addf %240, %242 : vector<16x40xf32>
    %244 = vector.extract_strided_slice %96 {offsets = [48, 0], sizes = [16, 40], strides = [1, 1]} : vector<128x40xf32> to vector<16x40xf32>
    %245 = arith.addf %243, %244 : vector<16x40xf32>
    %246 = vector.extract_strided_slice %245 {offsets = [0, 0], sizes = [8, 40], strides = [1, 1]} : vector<16x40xf32> to vector<8x40xf32>
    %247 = arith.negf %246 : vector<8x40xf32>
    %248 = math.exp %247 : vector<8x40xf32>
    %cst_130 = arith.constant 1.000000e+00 : f32
    %249 = vector.broadcast %cst_130 : f32 to vector<8x40xf32>
    %250 = arith.addf %249, %248 : vector<8x40xf32>
    %251 = arith.divf %249, %250 : vector<8x40xf32>
    %252 = vector.extract_strided_slice %245 {offsets = [8, 0], sizes = [8, 40], strides = [1, 1]} : vector<16x40xf32> to vector<8x40xf32>
    %253 = math.tanh %252 : vector<8x40xf32>
    %254 = arith.mulf %251, %253 : vector<8x40xf32>
    %c3_131 = arith.constant 3 : index
    %c0_132 = arith.constant 0 : index
    %c0_133 = arith.constant 0 : index
    %255 = vector.load %arg13[%c3_131, %c0_132, %c0_133] : memref<8x16x8xf32, #tpu.memory_space<vmem>>, vector<1x16x8xf32>
    %256 = vector.shape_cast %255 : vector<1x16x8xf32> to vector<16x8xf32>
    %cst_134 = arith.constant dense<0.000000e+00> : vector<16x40xf32>
    %257 = tpu.matmul %256, %254, %cst_134 {dimension_numbers = #tpu.dot_dimension_numbers<[1], [0], [0], [1], [0, 0, 1, 1], [], []>} : vector<16x8xf32>, vector<8x40xf32>, vector<16x40xf32> -> vector<16x40xf32>
    %258 = vector.extract_strided_slice %98 {offsets = [48, 0], sizes = [16, 1], strides = [1, 1]} : vector<128x1xf32> to vector<16x1xf32>
    %259 = vector.broadcast %258 : vector<16x1xf32> to vector<16x40xf32>
    %260 = arith.addf %257, %259 : vector<16x40xf32>
    %cst_135 = arith.constant 0.000000e+00 : f32
    %261 = vector.broadcast %cst_135 : f32 to vector<16x40xf32>
    %262 = arith.cmpf oge, %260, %261 : vector<16x40xf32>
    %cst_136 = arith.constant 4.000000e-01 : f32
    %263 = vector.broadcast %cst_136 : f32 to vector<16x40xf32>
    %264 = arith.mulf %263, %260 : vector<16x40xf32>
    %265 = arith.select %262, %260, %264 : vector<16x40xi1>, vector<16x40xf32>
    %266 = vector.extract_strided_slice %265 {offsets = [0, 0], sizes = [8, 40], strides = [1, 1]} : vector<16x40xf32> to vector<8x40xf32>
    %267 = arith.addf %226, %266 : vector<8x40xf32>
    %cst_137 = arith.constant 0.707106769 : f32
    %268 = vector.broadcast %cst_137 : f32 to vector<8x40xf32>
    %269 = arith.mulf %267, %268 : vector<8x40xf32>
    %270 = vector.extract_strided_slice %265 {offsets = [8, 0], sizes = [8, 40], strides = [1, 1]} : vector<16x40xf32> to vector<8x40xf32>
    %271 = arith.addf %228, %270 : vector<8x40xf32>
    %272 = vector.extract_strided_slice %58 {offsets = [32, 0], sizes = [8, 40], strides = [1, 1]} : vector<64x40xf32> to vector<8x40xf32>
    %273 = arith.addf %269, %272 : vector<8x40xf32>
    %c0_138 = arith.constant 0 : index
    %c0_139 = arith.constant 0 : index
    %c0_140 = arith.constant 0 : index
    %c0_141 = arith.constant 0 : index
    %274 = vector.load %arg4[%c0_138, %c0_139, %c0_140, %c0_141] : memref<2x2x40x40xf32, #tpu.memory_space<vmem>>, vector<1x1x40x40xf32>
    %275 = vector.shape_cast %274 : vector<1x1x40x40xf32> to vector<40x40xf32>
    %cst_142 = arith.constant dense<0.000000e+00> : vector<8x40xf32>
    %276 = tpu.matmul %273, %275, %cst_142 {dimension_numbers = #tpu.dot_dimension_numbers<[1], [0], [0], [1], [0, 0, 1, 1], [], []>} : vector<8x40xf32>, vector<40x40xf32>, vector<8x40xf32> -> vector<8x40xf32>
    %c0_143 = arith.constant 0 : index
    %c1_144 = arith.constant 1 : index
    %c0_145 = arith.constant 0 : index
    %c0_146 = arith.constant 0 : index
    %277 = vector.load %arg4[%c0_143, %c1_144, %c0_145, %c0_146] : memref<2x2x40x40xf32, #tpu.memory_space<vmem>>, vector<1x1x40x40xf32>
    %278 = vector.shape_cast %277 : vector<1x1x40x40xf32> to vector<40x40xf32>
    %cst_147 = arith.constant dense<0.000000e+00> : vector<8x40xf32>
    %279 = tpu.matmul %273, %278, %cst_147 {dimension_numbers = #tpu.dot_dimension_numbers<[1], [0], [0], [1], [0, 0, 1, 1], [], []>} : vector<8x40xf32>, vector<40x40xf32>, vector<8x40xf32> -> vector<8x40xf32>
    %280 = tpu.concatenate %276, %273, %279 in 0 : vector<8x40xf32>, vector<8x40xf32>, vector<8x40xf32> -> vector<24x40xf32>
    %c4 = arith.constant 4 : index
    %c0_148 = arith.constant 0 : index
    %c0_149 = arith.constant 0 : index
    %281 = vector.load %arg12[%c4, %c0_148, %c0_149] : memref<8x16x24xf32, #tpu.memory_space<vmem>>, vector<1x16x24xf32>
    %282 = vector.shape_cast %281 : vector<1x16x24xf32> to vector<16x24xf32>
    %cst_150 = arith.constant dense<0.000000e+00> : vector<16x40xf32>
    %283 = tpu.matmul %282, %280, %cst_150 {dimension_numbers = #tpu.dot_dimension_numbers<[1], [0], [0], [1], [0, 0, 1, 1], [], []>} : vector<16x24xf32>, vector<24x40xf32>, vector<16x40xf32> -> vector<16x40xf32>
    %284 = vector.extract_strided_slice %97 {offsets = [64, 0], sizes = [16, 1], strides = [1, 1]} : vector<128x1xf32> to vector<16x1xf32>
    %285 = vector.broadcast %284 : vector<16x1xf32> to vector<16x40xf32>
    %286 = arith.addf %283, %285 : vector<16x40xf32>
    %287 = vector.extract_strided_slice %96 {offsets = [64, 0], sizes = [16, 40], strides = [1, 1]} : vector<128x40xf32> to vector<16x40xf32>
    %288 = arith.addf %286, %287 : vector<16x40xf32>
    %289 = vector.extract_strided_slice %288 {offsets = [0, 0], sizes = [8, 40], strides = [1, 1]} : vector<16x40xf32> to vector<8x40xf32>
    %290 = arith.negf %289 : vector<8x40xf32>
    %291 = math.exp %290 : vector<8x40xf32>
    %cst_151 = arith.constant 1.000000e+00 : f32
    %292 = vector.broadcast %cst_151 : f32 to vector<8x40xf32>
    %293 = arith.addf %292, %291 : vector<8x40xf32>
    %294 = arith.divf %292, %293 : vector<8x40xf32>
    %295 = vector.extract_strided_slice %288 {offsets = [8, 0], sizes = [8, 40], strides = [1, 1]} : vector<16x40xf32> to vector<8x40xf32>
    %296 = math.tanh %295 : vector<8x40xf32>
    %297 = arith.mulf %294, %296 : vector<8x40xf32>
    %c4_152 = arith.constant 4 : index
    %c0_153 = arith.constant 0 : index
    %c0_154 = arith.constant 0 : index
    %298 = vector.load %arg13[%c4_152, %c0_153, %c0_154] : memref<8x16x8xf32, #tpu.memory_space<vmem>>, vector<1x16x8xf32>
    %299 = vector.shape_cast %298 : vector<1x16x8xf32> to vector<16x8xf32>
    %cst_155 = arith.constant dense<0.000000e+00> : vector<16x40xf32>
    %300 = tpu.matmul %299, %297, %cst_155 {dimension_numbers = #tpu.dot_dimension_numbers<[1], [0], [0], [1], [0, 0, 1, 1], [], []>} : vector<16x8xf32>, vector<8x40xf32>, vector<16x40xf32> -> vector<16x40xf32>
    %301 = vector.extract_strided_slice %98 {offsets = [64, 0], sizes = [16, 1], strides = [1, 1]} : vector<128x1xf32> to vector<16x1xf32>
    %302 = vector.broadcast %301 : vector<16x1xf32> to vector<16x40xf32>
    %303 = arith.addf %300, %302 : vector<16x40xf32>
    %cst_156 = arith.constant 0.000000e+00 : f32
    %304 = vector.broadcast %cst_156 : f32 to vector<16x40xf32>
    %305 = arith.cmpf oge, %303, %304 : vector<16x40xf32>
    %cst_157 = arith.constant 4.000000e-01 : f32
    %306 = vector.broadcast %cst_157 : f32 to vector<16x40xf32>
    %307 = arith.mulf %306, %303 : vector<16x40xf32>
    %308 = arith.select %305, %303, %307 : vector<16x40xi1>, vector<16x40xf32>
    %309 = vector.extract_strided_slice %308 {offsets = [0, 0], sizes = [8, 40], strides = [1, 1]} : vector<16x40xf32> to vector<8x40xf32>
    %310 = arith.addf %269, %309 : vector<8x40xf32>
    %cst_158 = arith.constant 0.707106769 : f32
    %311 = vector.broadcast %cst_158 : f32 to vector<8x40xf32>
    %312 = arith.mulf %310, %311 : vector<8x40xf32>
    %313 = vector.extract_strided_slice %308 {offsets = [8, 0], sizes = [8, 40], strides = [1, 1]} : vector<16x40xf32> to vector<8x40xf32>
    %314 = arith.addf %271, %313 : vector<8x40xf32>
    %315 = vector.extract_strided_slice %58 {offsets = [40, 0], sizes = [8, 40], strides = [1, 1]} : vector<64x40xf32> to vector<8x40xf32>
    %316 = arith.addf %312, %315 : vector<8x40xf32>
    %c1_159 = arith.constant 1 : index
    %c0_160 = arith.constant 0 : index
    %c0_161 = arith.constant 0 : index
    %c0_162 = arith.constant 0 : index
    %317 = vector.load %arg4[%c1_159, %c0_160, %c0_161, %c0_162] : memref<2x2x40x40xf32, #tpu.memory_space<vmem>>, vector<1x1x40x40xf32>
    %318 = vector.shape_cast %317 : vector<1x1x40x40xf32> to vector<40x40xf32>
    %cst_163 = arith.constant dense<0.000000e+00> : vector<8x40xf32>
    %319 = tpu.matmul %316, %318, %cst_163 {dimension_numbers = #tpu.dot_dimension_numbers<[1], [0], [0], [1], [0, 0, 1, 1], [], []>} : vector<8x40xf32>, vector<40x40xf32>, vector<8x40xf32> -> vector<8x40xf32>
    %c1_164 = arith.constant 1 : index
    %c1_165 = arith.constant 1 : index
    %c0_166 = arith.constant 0 : index
    %c0_167 = arith.constant 0 : index
    %320 = vector.load %arg4[%c1_164, %c1_165, %c0_166, %c0_167] : memref<2x2x40x40xf32, #tpu.memory_space<vmem>>, vector<1x1x40x40xf32>
    %321 = vector.shape_cast %320 : vector<1x1x40x40xf32> to vector<40x40xf32>
    %cst_168 = arith.constant dense<0.000000e+00> : vector<8x40xf32>
    %322 = tpu.matmul %316, %321, %cst_168 {dimension_numbers = #tpu.dot_dimension_numbers<[1], [0], [0], [1], [0, 0, 1, 1], [], []>} : vector<8x40xf32>, vector<40x40xf32>, vector<8x40xf32> -> vector<8x40xf32>
    %323 = tpu.concatenate %319, %316, %322 in 0 : vector<8x40xf32>, vector<8x40xf32>, vector<8x40xf32> -> vector<24x40xf32>
    %c5 = arith.constant 5 : index
    %c0_169 = arith.constant 0 : index
    %c0_170 = arith.constant 0 : index
    %324 = vector.load %arg12[%c5, %c0_169, %c0_170] : memref<8x16x24xf32, #tpu.memory_space<vmem>>, vector<1x16x24xf32>
    %325 = vector.shape_cast %324 : vector<1x16x24xf32> to vector<16x24xf32>
    %cst_171 = arith.constant dense<0.000000e+00> : vector<16x40xf32>
    %326 = tpu.matmul %325, %323, %cst_171 {dimension_numbers = #tpu.dot_dimension_numbers<[1], [0], [0], [1], [0, 0, 1, 1], [], []>} : vector<16x24xf32>, vector<24x40xf32>, vector<16x40xf32> -> vector<16x40xf32>
    %327 = vector.extract_strided_slice %97 {offsets = [80, 0], sizes = [16, 1], strides = [1, 1]} : vector<128x1xf32> to vector<16x1xf32>
    %328 = vector.broadcast %327 : vector<16x1xf32> to vector<16x40xf32>
    %329 = arith.addf %326, %328 : vector<16x40xf32>
    %330 = vector.extract_strided_slice %96 {offsets = [80, 0], sizes = [16, 40], strides = [1, 1]} : vector<128x40xf32> to vector<16x40xf32>
    %331 = arith.addf %329, %330 : vector<16x40xf32>
    %332 = vector.extract_strided_slice %331 {offsets = [0, 0], sizes = [8, 40], strides = [1, 1]} : vector<16x40xf32> to vector<8x40xf32>
    %333 = arith.negf %332 : vector<8x40xf32>
    %334 = math.exp %333 : vector<8x40xf32>
    %cst_172 = arith.constant 1.000000e+00 : f32
    %335 = vector.broadcast %cst_172 : f32 to vector<8x40xf32>
    %336 = arith.addf %335, %334 : vector<8x40xf32>
    %337 = arith.divf %335, %336 : vector<8x40xf32>
    %338 = vector.extract_strided_slice %331 {offsets = [8, 0], sizes = [8, 40], strides = [1, 1]} : vector<16x40xf32> to vector<8x40xf32>
    %339 = math.tanh %338 : vector<8x40xf32>
    %340 = arith.mulf %337, %339 : vector<8x40xf32>
    %c5_173 = arith.constant 5 : index
    %c0_174 = arith.constant 0 : index
    %c0_175 = arith.constant 0 : index
    %341 = vector.load %arg13[%c5_173, %c0_174, %c0_175] : memref<8x16x8xf32, #tpu.memory_space<vmem>>, vector<1x16x8xf32>
    %342 = vector.shape_cast %341 : vector<1x16x8xf32> to vector<16x8xf32>
    %cst_176 = arith.constant dense<0.000000e+00> : vector<16x40xf32>
    %343 = tpu.matmul %342, %340, %cst_176 {dimension_numbers = #tpu.dot_dimension_numbers<[1], [0], [0], [1], [0, 0, 1, 1], [], []>} : vector<16x8xf32>, vector<8x40xf32>, vector<16x40xf32> -> vector<16x40xf32>
    %344 = vector.extract_strided_slice %98 {offsets = [80, 0], sizes = [16, 1], strides = [1, 1]} : vector<128x1xf32> to vector<16x1xf32>
    %345 = vector.broadcast %344 : vector<16x1xf32> to vector<16x40xf32>
    %346 = arith.addf %343, %345 : vector<16x40xf32>
    %cst_177 = arith.constant 0.000000e+00 : f32
    %347 = vector.broadcast %cst_177 : f32 to vector<16x40xf32>
    %348 = arith.cmpf oge, %346, %347 : vector<16x40xf32>
    %cst_178 = arith.constant 4.000000e-01 : f32
    %349 = vector.broadcast %cst_178 : f32 to vector<16x40xf32>
    %350 = arith.mulf %349, %346 : vector<16x40xf32>
    %351 = arith.select %348, %346, %350 : vector<16x40xi1>, vector<16x40xf32>
    %352 = vector.extract_strided_slice %351 {offsets = [0, 0], sizes = [8, 40], strides = [1, 1]} : vector<16x40xf32> to vector<8x40xf32>
    %353 = arith.addf %312, %352 : vector<8x40xf32>
    %cst_179 = arith.constant 0.707106769 : f32
    %354 = vector.broadcast %cst_179 : f32 to vector<8x40xf32>
    %355 = arith.mulf %353, %354 : vector<8x40xf32>
    %356 = vector.extract_strided_slice %351 {offsets = [8, 0], sizes = [8, 40], strides = [1, 1]} : vector<16x40xf32> to vector<8x40xf32>
    %357 = arith.addf %314, %356 : vector<8x40xf32>
    %358 = vector.extract_strided_slice %58 {offsets = [48, 0], sizes = [8, 40], strides = [1, 1]} : vector<64x40xf32> to vector<8x40xf32>
    %359 = arith.addf %355, %358 : vector<8x40xf32>
    %c0_180 = arith.constant 0 : index
    %c0_181 = arith.constant 0 : index
    %c0_182 = arith.constant 0 : index
    %c0_183 = arith.constant 0 : index
    %360 = vector.load %arg4[%c0_180, %c0_181, %c0_182, %c0_183] : memref<2x2x40x40xf32, #tpu.memory_space<vmem>>, vector<1x1x40x40xf32>
    %361 = vector.shape_cast %360 : vector<1x1x40x40xf32> to vector<40x40xf32>
    %cst_184 = arith.constant dense<0.000000e+00> : vector<8x40xf32>
    %362 = tpu.matmul %359, %361, %cst_184 {dimension_numbers = #tpu.dot_dimension_numbers<[1], [0], [0], [1], [0, 0, 1, 1], [], []>} : vector<8x40xf32>, vector<40x40xf32>, vector<8x40xf32> -> vector<8x40xf32>
    %c0_185 = arith.constant 0 : index
    %c1_186 = arith.constant 1 : index
    %c0_187 = arith.constant 0 : index
    %c0_188 = arith.constant 0 : index
    %363 = vector.load %arg4[%c0_185, %c1_186, %c0_187, %c0_188] : memref<2x2x40x40xf32, #tpu.memory_space<vmem>>, vector<1x1x40x40xf32>
    %364 = vector.shape_cast %363 : vector<1x1x40x40xf32> to vector<40x40xf32>
    %cst_189 = arith.constant dense<0.000000e+00> : vector<8x40xf32>
    %365 = tpu.matmul %359, %364, %cst_189 {dimension_numbers = #tpu.dot_dimension_numbers<[1], [0], [0], [1], [0, 0, 1, 1], [], []>} : vector<8x40xf32>, vector<40x40xf32>, vector<8x40xf32> -> vector<8x40xf32>
    %366 = tpu.concatenate %362, %359, %365 in 0 : vector<8x40xf32>, vector<8x40xf32>, vector<8x40xf32> -> vector<24x40xf32>
    %c6 = arith.constant 6 : index
    %c0_190 = arith.constant 0 : index
    %c0_191 = arith.constant 0 : index
    %367 = vector.load %arg12[%c6, %c0_190, %c0_191] : memref<8x16x24xf32, #tpu.memory_space<vmem>>, vector<1x16x24xf32>
    %368 = vector.shape_cast %367 : vector<1x16x24xf32> to vector<16x24xf32>
    %cst_192 = arith.constant dense<0.000000e+00> : vector<16x40xf32>
    %369 = tpu.matmul %368, %366, %cst_192 {dimension_numbers = #tpu.dot_dimension_numbers<[1], [0], [0], [1], [0, 0, 1, 1], [], []>} : vector<16x24xf32>, vector<24x40xf32>, vector<16x40xf32> -> vector<16x40xf32>
    %370 = vector.extract_strided_slice %97 {offsets = [96, 0], sizes = [16, 1], strides = [1, 1]} : vector<128x1xf32> to vector<16x1xf32>
    %371 = vector.broadcast %370 : vector<16x1xf32> to vector<16x40xf32>
    %372 = arith.addf %369, %371 : vector<16x40xf32>
    %373 = vector.extract_strided_slice %96 {offsets = [96, 0], sizes = [16, 40], strides = [1, 1]} : vector<128x40xf32> to vector<16x40xf32>
    %374 = arith.addf %372, %373 : vector<16x40xf32>
    %375 = vector.extract_strided_slice %374 {offsets = [0, 0], sizes = [8, 40], strides = [1, 1]} : vector<16x40xf32> to vector<8x40xf32>
    %376 = arith.negf %375 : vector<8x40xf32>
    %377 = math.exp %376 : vector<8x40xf32>
    %cst_193 = arith.constant 1.000000e+00 : f32
    %378 = vector.broadcast %cst_193 : f32 to vector<8x40xf32>
    %379 = arith.addf %378, %377 : vector<8x40xf32>
    %380 = arith.divf %378, %379 : vector<8x40xf32>
    %381 = vector.extract_strided_slice %374 {offsets = [8, 0], sizes = [8, 40], strides = [1, 1]} : vector<16x40xf32> to vector<8x40xf32>
    %382 = math.tanh %381 : vector<8x40xf32>
    %383 = arith.mulf %380, %382 : vector<8x40xf32>
    %c6_194 = arith.constant 6 : index
    %c0_195 = arith.constant 0 : index
    %c0_196 = arith.constant 0 : index
    %384 = vector.load %arg13[%c6_194, %c0_195, %c0_196] : memref<8x16x8xf32, #tpu.memory_space<vmem>>, vector<1x16x8xf32>
    %385 = vector.shape_cast %384 : vector<1x16x8xf32> to vector<16x8xf32>
    %cst_197 = arith.constant dense<0.000000e+00> : vector<16x40xf32>
    %386 = tpu.matmul %385, %383, %cst_197 {dimension_numbers = #tpu.dot_dimension_numbers<[1], [0], [0], [1], [0, 0, 1, 1], [], []>} : vector<16x8xf32>, vector<8x40xf32>, vector<16x40xf32> -> vector<16x40xf32>
    %387 = vector.extract_strided_slice %98 {offsets = [96, 0], sizes = [16, 1], strides = [1, 1]} : vector<128x1xf32> to vector<16x1xf32>
    %388 = vector.broadcast %387 : vector<16x1xf32> to vector<16x40xf32>
    %389 = arith.addf %386, %388 : vector<16x40xf32>
    %cst_198 = arith.constant 0.000000e+00 : f32
    %390 = vector.broadcast %cst_198 : f32 to vector<16x40xf32>
    %391 = arith.cmpf oge, %389, %390 : vector<16x40xf32>
    %cst_199 = arith.constant 4.000000e-01 : f32
    %392 = vector.broadcast %cst_199 : f32 to vector<16x40xf32>
    %393 = arith.mulf %392, %389 : vector<16x40xf32>
    %394 = arith.select %391, %389, %393 : vector<16x40xi1>, vector<16x40xf32>
    %395 = vector.extract_strided_slice %394 {offsets = [0, 0], sizes = [8, 40], strides = [1, 1]} : vector<16x40xf32> to vector<8x40xf32>
    %396 = arith.addf %355, %395 : vector<8x40xf32>
    %cst_200 = arith.constant 0.707106769 : f32
    %397 = vector.broadcast %cst_200 : f32 to vector<8x40xf32>
    %398 = arith.mulf %396, %397 : vector<8x40xf32>
    %399 = vector.extract_strided_slice %394 {offsets = [8, 0], sizes = [8, 40], strides = [1, 1]} : vector<16x40xf32> to vector<8x40xf32>
    %400 = arith.addf %357, %399 : vector<8x40xf32>
    %401 = vector.extract_strided_slice %58 {offsets = [56, 0], sizes = [8, 40], strides = [1, 1]} : vector<64x40xf32> to vector<8x40xf32>
    %402 = arith.addf %398, %401 : vector<8x40xf32>
    %c1_201 = arith.constant 1 : index
    %c0_202 = arith.constant 0 : index
    %c0_203 = arith.constant 0 : index
    %c0_204 = arith.constant 0 : index
    %403 = vector.load %arg4[%c1_201, %c0_202, %c0_203, %c0_204] : memref<2x2x40x40xf32, #tpu.memory_space<vmem>>, vector<1x1x40x40xf32>
    %404 = vector.shape_cast %403 : vector<1x1x40x40xf32> to vector<40x40xf32>
    %cst_205 = arith.constant dense<0.000000e+00> : vector<8x40xf32>
    %405 = tpu.matmul %402, %404, %cst_205 {dimension_numbers = #tpu.dot_dimension_numbers<[1], [0], [0], [1], [0, 0, 1, 1], [], []>} : vector<8x40xf32>, vector<40x40xf32>, vector<8x40xf32> -> vector<8x40xf32>
    %c1_206 = arith.constant 1 : index
    %c1_207 = arith.constant 1 : index
    %c0_208 = arith.constant 0 : index
    %c0_209 = arith.constant 0 : index
    %406 = vector.load %arg4[%c1_206, %c1_207, %c0_208, %c0_209] : memref<2x2x40x40xf32, #tpu.memory_space<vmem>>, vector<1x1x40x40xf32>
    %407 = vector.shape_cast %406 : vector<1x1x40x40xf32> to vector<40x40xf32>
    %cst_210 = arith.constant dense<0.000000e+00> : vector<8x40xf32>
    %408 = tpu.matmul %402, %407, %cst_210 {dimension_numbers = #tpu.dot_dimension_numbers<[1], [0], [0], [1], [0, 0, 1, 1], [], []>} : vector<8x40xf32>, vector<40x40xf32>, vector<8x40xf32> -> vector<8x40xf32>
    %409 = tpu.concatenate %405, %402, %408 in 0 : vector<8x40xf32>, vector<8x40xf32>, vector<8x40xf32> -> vector<24x40xf32>
    %c7 = arith.constant 7 : index
    %c0_211 = arith.constant 0 : index
    %c0_212 = arith.constant 0 : index
    %410 = vector.load %arg12[%c7, %c0_211, %c0_212] : memref<8x16x24xf32, #tpu.memory_space<vmem>>, vector<1x16x24xf32>
    %411 = vector.shape_cast %410 : vector<1x16x24xf32> to vector<16x24xf32>
    %cst_213 = arith.constant dense<0.000000e+00> : vector<16x40xf32>
    %412 = tpu.matmul %411, %409, %cst_213 {dimension_numbers = #tpu.dot_dimension_numbers<[1], [0], [0], [1], [0, 0, 1, 1], [], []>} : vector<16x24xf32>, vector<24x40xf32>, vector<16x40xf32> -> vector<16x40xf32>
    %413 = vector.extract_strided_slice %97 {offsets = [112, 0], sizes = [16, 1], strides = [1, 1]} : vector<128x1xf32> to vector<16x1xf32>
    %414 = vector.broadcast %413 : vector<16x1xf32> to vector<16x40xf32>
    %415 = arith.addf %412, %414 : vector<16x40xf32>
    %416 = vector.extract_strided_slice %96 {offsets = [112, 0], sizes = [16, 40], strides = [1, 1]} : vector<128x40xf32> to vector<16x40xf32>
    %417 = arith.addf %415, %416 : vector<16x40xf32>
    %418 = vector.extract_strided_slice %417 {offsets = [0, 0], sizes = [8, 40], strides = [1, 1]} : vector<16x40xf32> to vector<8x40xf32>
    %419 = arith.negf %418 : vector<8x40xf32>
    %420 = math.exp %419 : vector<8x40xf32>
    %cst_214 = arith.constant 1.000000e+00 : f32
    %421 = vector.broadcast %cst_214 : f32 to vector<8x40xf32>
    %422 = arith.addf %421, %420 : vector<8x40xf32>
    %423 = arith.divf %421, %422 : vector<8x40xf32>
    %424 = vector.extract_strided_slice %417 {offsets = [8, 0], sizes = [8, 40], strides = [1, 1]} : vector<16x40xf32> to vector<8x40xf32>
    %425 = math.tanh %424 : vector<8x40xf32>
    %426 = arith.mulf %423, %425 : vector<8x40xf32>
    %c7_215 = arith.constant 7 : index
    %c0_216 = arith.constant 0 : index
    %c0_217 = arith.constant 0 : index
    %427 = vector.load %arg13[%c7_215, %c0_216, %c0_217] : memref<8x16x8xf32, #tpu.memory_space<vmem>>, vector<1x16x8xf32>
    %428 = vector.shape_cast %427 : vector<1x16x8xf32> to vector<16x8xf32>
    %cst_218 = arith.constant dense<0.000000e+00> : vector<16x40xf32>
    %429 = tpu.matmul %428, %426, %cst_218 {dimension_numbers = #tpu.dot_dimension_numbers<[1], [0], [0], [1], [0, 0, 1, 1], [], []>} : vector<16x8xf32>, vector<8x40xf32>, vector<16x40xf32> -> vector<16x40xf32>
    %430 = vector.extract_strided_slice %98 {offsets = [112, 0], sizes = [16, 1], strides = [1, 1]} : vector<128x1xf32> to vector<16x1xf32>
    %431 = vector.broadcast %430 : vector<16x1xf32> to vector<16x40xf32>
    %432 = arith.addf %429, %431 : vector<16x40xf32>
    %cst_219 = arith.constant 0.000000e+00 : f32
    %433 = vector.broadcast %cst_219 : f32 to vector<16x40xf32>
    %434 = arith.cmpf oge, %432, %433 : vector<16x40xf32>
    %cst_220 = arith.constant 4.000000e-01 : f32
    %435 = vector.broadcast %cst_220 : f32 to vector<16x40xf32>
    %436 = arith.mulf %435, %432 : vector<16x40xf32>
    %437 = arith.select %434, %432, %436 : vector<16x40xi1>, vector<16x40xf32>
    %438 = vector.extract_strided_slice %437 {offsets = [8, 0], sizes = [8, 40], strides = [1, 1]} : vector<16x40xf32> to vector<8x40xf32>
    %439 = arith.addf %400, %438 : vector<8x40xf32>
    %cst_221 = arith.constant 0.353553385 : f32
    %440 = vector.broadcast %cst_221 : f32 to vector<8x40xf32>
    %441 = arith.mulf %439, %440 : vector<8x40xf32>
    %442 = vector.extract_strided_slice %441 {offsets = [0, 0], sizes = [8, 18], strides = [1, 1]} : vector<8x40xf32> to vector<8x18xf32>
    %443 = vector.extract_strided_slice %441 {offsets = [0, 20], sizes = [8, 18], strides = [1, 1]} : vector<8x40xf32> to vector<8x18xf32>
    %444 = tpu.concatenate %442, %443 in 1 : vector<8x18xf32>, vector<8x18xf32> -> vector<8x36xf32>
    %445 = vector.extract_strided_slice %441 {offsets = [0, 1], sizes = [8, 18], strides = [1, 1]} : vector<8x40xf32> to vector<8x18xf32>
    %446 = vector.extract_strided_slice %441 {offsets = [0, 21], sizes = [8, 18], strides = [1, 1]} : vector<8x40xf32> to vector<8x18xf32>
    %447 = tpu.concatenate %445, %446 in 1 : vector<8x18xf32>, vector<8x18xf32> -> vector<8x36xf32>
    %448 = vector.extract_strided_slice %441 {offsets = [0, 2], sizes = [8, 18], strides = [1, 1]} : vector<8x40xf32> to vector<8x18xf32>
    %449 = vector.extract_strided_slice %441 {offsets = [0, 22], sizes = [8, 18], strides = [1, 1]} : vector<8x40xf32> to vector<8x18xf32>
    %450 = tpu.concatenate %448, %449 in 1 : vector<8x18xf32>, vector<8x18xf32> -> vector<8x36xf32>
    %451 = tpu.concatenate %444, %447, %450 in 0 : vector<8x36xf32>, vector<8x36xf32>, vector<8x36xf32> -> vector<24x36xf32>
    %c0_222 = arith.constant 0 : index
    %c0_223 = arith.constant 0 : index
    %452 = vector.load %arg17[%c0_222, %c0_223] : memref<8x25xf32, #tpu.memory_space<vmem>>, vector<8x24xf32>
    %cst_224 = arith.constant dense<0.000000e+00> : vector<8x36xf32>
    %453 = tpu.matmul %452, %451, %cst_224 {dimension_numbers = #tpu.dot_dimension_numbers<[1], [0], [0], [1], [0, 0, 1, 1], [], []>} : vector<8x24xf32>, vector<24x36xf32>, vector<8x36xf32> -> vector<8x36xf32>
    %c0_225 = arith.constant 0 : index
    %c24 = arith.constant 24 : index
    %454 = vector.load %arg17[%c0_225, %c24] : memref<8x25xf32, #tpu.memory_space<vmem>>, vector<8x1xf32>
    %455 = vector.broadcast %454 : vector<8x1xf32> to vector<8x36xf32>
    %456 = arith.addf %453, %455 : vector<8x36xf32>
    %cst_226 = arith.constant 0.000000e+00 : f32
    %457 = vector.broadcast %cst_226 : f32 to vector<8x36xf32>
    %458 = arith.cmpf oge, %456, %457 : vector<8x36xf32>
    %cst_227 = arith.constant 4.000000e-01 : f32
    %459 = vector.broadcast %cst_227 : f32 to vector<8x36xf32>
    %460 = arith.mulf %459, %456 : vector<8x36xf32>
    %461 = arith.select %458, %456, %460 : vector<8x36xi1>, vector<8x36xf32>
    %462 = vector.extract_strided_slice %461 {offsets = [0, 0], sizes = [8, 16], strides = [1, 1]} : vector<8x36xf32> to vector<8x16xf32>
    %463 = vector.extract_strided_slice %461 {offsets = [0, 18], sizes = [8, 16], strides = [1, 1]} : vector<8x36xf32> to vector<8x16xf32>
    %464 = tpu.concatenate %462, %463 in 1 : vector<8x16xf32>, vector<8x16xf32> -> vector<8x32xf32>
    %465 = vector.extract_strided_slice %461 {offsets = [0, 1], sizes = [8, 16], strides = [1, 1]} : vector<8x36xf32> to vector<8x16xf32>
    %466 = vector.extract_strided_slice %461 {offsets = [0, 19], sizes = [8, 16], strides = [1, 1]} : vector<8x36xf32> to vector<8x16xf32>
    %467 = tpu.concatenate %465, %466 in 1 : vector<8x16xf32>, vector<8x16xf32> -> vector<8x32xf32>
    %468 = vector.extract_strided_slice %461 {offsets = [0, 2], sizes = [8, 16], strides = [1, 1]} : vector<8x36xf32> to vector<8x16xf32>
    %469 = vector.extract_strided_slice %461 {offsets = [0, 20], sizes = [8, 16], strides = [1, 1]} : vector<8x36xf32> to vector<8x16xf32>
    %470 = tpu.concatenate %468, %469 in 1 : vector<8x16xf32>, vector<8x16xf32> -> vector<8x32xf32>
    %471 = tpu.concatenate %464, %467, %470 in 0 : vector<8x32xf32>, vector<8x32xf32>, vector<8x32xf32> -> vector<24x32xf32>
    %c0_228 = arith.constant 0 : index
    %c0_229 = arith.constant 0 : index
    %472 = vector.load %arg18[%c0_228, %c0_229] : memref<25x1xf32, #tpu.memory_space<vmem>>, vector<24x1xf32>
    %473 = vector.broadcast %472 : vector<24x1xf32> to vector<24x32xf32>
    %474 = arith.mulf %473, %471 : vector<24x32xf32>
    %cst_230 = arith.constant dense<0.000000e+00> : vector<32xf32>
    %475 = vector.multi_reduction <add>, %474, %cst_230 [0] : vector<24x32xf32> to vector<32xf32>
    %476 = vector.shape_cast %475 : vector<32xf32> to vector<1x32xf32>
    %c24_231 = arith.constant 24 : index
    %c0_232 = arith.constant 0 : index
    %477 = vector.load %arg18[%c24_231, %c0_232] : memref<25x1xf32, #tpu.memory_space<vmem>>, vector<1x1xf32>
    %478 = vector.broadcast %477 : vector<1x1xf32> to vector<1x32xf32>
    %479 = arith.addf %476, %478 : vector<1x32xf32>
    %c0_233 = arith.constant 0 : index
    %c0_234 = arith.constant 0 : index
    %c0_235 = arith.constant 0 : index
    %480 = vector.load %arg19[%c0_233, %c0_234, %c0_235] : memref<1x1x32xf32, #tpu.memory_space<vmem>>, vector<1x1x32xf32>
    %481 = vector.shape_cast %480 : vector<1x1x32xf32> to vector<1x32xf32>
    %482 = vector.shape_cast %479 : vector<1x32xf32> to vector<1x1x32xf32>
    tpu.vector_store %arg19[%c0_233, %c0_234, %c0_235], %482 {strides = array<i32>} : memref<1x1x32xf32, #tpu.memory_space<vmem>>, vector<1x1x32xf32>,
    return
  }
  func.func @transform_0(%arg0: i32) -> (i32, i32, i32) {
    %c0_i32 = arith.constant 0 : i32
    %c0_i32_0 = arith.constant 0 : i32
    %c0_i32_1 = arith.constant 0 : i32
    return %arg0, %c0_i32, %c0_i32_0 : i32, i32, i32
  }
  func.func @transform_1(%arg0: i32) -> (i32, i32, i32) {
    %c0_i32 = arith.constant 0 : i32
    %c0_i32_0 = arith.constant 0 : i32
    %c0_i32_1 = arith.constant 0 : i32
    return %arg0, %c0_i32, %c0_i32_0 : i32, i32, i32
  }
  func.func @transform_2(%arg0: i32) -> (i32, i32, i32) {
    %c0_i32 = arith.constant 0 : i32
    %c0_i32_0 = arith.constant 0 : i32
    %c0_i32_1 = arith.constant 0 : i32
    return %arg0, %c0_i32, %c0_i32_0 : i32, i32, i32
  }
  func.func @transform_3(%arg0: i32) -> (i32, i32, i32, i32) {
    %c0_i32 = arith.constant 0 : i32
    %c0_i32_0 = arith.constant 0 : i32
    %c0_i32_1 = arith.constant 0 : i32
    %c0_i32_2 = arith.constant 0 : i32
    %c0_i32_3 = arith.constant 0 : i32
    return %c0_i32, %c0_i32_0, %c0_i32_1, %c0_i32_2 : i32, i32, i32, i32
  }
  func.func @transform_4(%arg0: i32) -> (i32, i32) {
    %c0_i32 = arith.constant 0 : i32
    %c0_i32_0 = arith.constant 0 : i32
    %c0_i32_1 = arith.constant 0 : i32
    return %c0_i32, %c0_i32_0 : i32, i32
  }
  func.func @transform_5(%arg0: i32) -> (i32, i32) {
    %c0_i32 = arith.constant 0 : i32
    %c0_i32_0 = arith.constant 0 : i32
    %c0_i32_1 = arith.constant 0 : i32
    return %c0_i32, %c0_i32_0 : i32, i32
  }
  func.func @transform_6(%arg0: i32) -> (i32, i32) {
    %c0_i32 = arith.constant 0 : i32
    %c0_i32_0 = arith.constant 0 : i32
    %c0_i32_1 = arith.constant 0 : i32
    return %c0_i32, %c0_i32_0 : i32, i32
  }
  func.func @transform_7(%arg0: i32) -> (i32, i32) {
    %c0_i32 = arith.constant 0 : i32
    %c0_i32_0 = arith.constant 0 : i32
    %c0_i32_1 = arith.constant 0 : i32
    return %c0_i32, %c0_i32_0 : i32, i32
  }
  func.func @transform_8(%arg0: i32) -> (i32, i32) {
    %c0_i32 = arith.constant 0 : i32
    %c0_i32_0 = arith.constant 0 : i32
    %c0_i32_1 = arith.constant 0 : i32
    return %c0_i32, %c0_i32_0 : i32, i32
  }
  func.func @transform_9(%arg0: i32) -> (i32, i32) {
    %c0_i32 = arith.constant 0 : i32
    %c0_i32_0 = arith.constant 0 : i32
    %c0_i32_1 = arith.constant 0 : i32
    return %c0_i32, %c0_i32_0 : i32, i32
  }
  func.func @transform_10(%arg0: i32) -> (i32, i32) {
    %c0_i32 = arith.constant 0 : i32
    %c0_i32_0 = arith.constant 0 : i32
    %c0_i32_1 = arith.constant 0 : i32
    return %c0_i32, %c0_i32_0 : i32, i32
  }
  func.func @transform_11(%arg0: i32) -> (i32, i32, i32) {
    %c0_i32 = arith.constant 0 : i32
    %c0_i32_0 = arith.constant 0 : i32
    %c0_i32_1 = arith.constant 0 : i32
    %c0_i32_2 = arith.constant 0 : i32
    return %c0_i32, %c0_i32_0, %c0_i32_1 : i32, i32, i32
  }
  func.func @transform_12(%arg0: i32) -> (i32, i32, i32) {
    %c0_i32 = arith.constant 0 : i32
    %c0_i32_0 = arith.constant 0 : i32
    %c0_i32_1 = arith.constant 0 : i32
    %c0_i32_2 = arith.constant 0 : i32
    return %c0_i32, %c0_i32_0, %c0_i32_1 : i32, i32, i32
  }
  func.func @transform_13(%arg0: i32) -> (i32, i32) {
    %c0_i32 = arith.constant 0 : i32
    %c0_i32_0 = arith.constant 0 : i32
    %c0_i32_1 = arith.constant 0 : i32
    return %c0_i32, %c0_i32_0 : i32, i32
  }
  func.func @transform_14(%arg0: i32) -> (i32, i32) {
    %c0_i32 = arith.constant 0 : i32
    %c0_i32_0 = arith.constant 0 : i32
    %c0_i32_1 = arith.constant 0 : i32
    return %c0_i32, %c0_i32_0 : i32, i32
  }
  func.func @transform_15(%arg0: i32) -> (i32, i32) {
    %c0_i32 = arith.constant 0 : i32
    %c0_i32_0 = arith.constant 0 : i32
    %c0_i32_1 = arith.constant 0 : i32
    return %c0_i32, %c0_i32_0 : i32, i32
  }
  func.func @transform_16(%arg0: i32) -> (i32, i32) {
    %c0_i32 = arith.constant 0 : i32
    %c0_i32_0 = arith.constant 0 : i32
    %c0_i32_1 = arith.constant 0 : i32
    return %c0_i32, %c0_i32_0 : i32, i32
  }
  func.func @transform_17(%arg0: i32) -> (i32, i32) {
    %c0_i32 = arith.constant 0 : i32
    %c0_i32_0 = arith.constant 0 : i32
    %c0_i32_1 = arith.constant 0 : i32
    return %c0_i32, %c0_i32_0 : i32, i32
  }
  func.func @transform_18(%arg0: i32) -> (i32, i32, i32) {
    %c0_i32 = arith.constant 0 : i32
    %c0_i32_0 = arith.constant 0 : i32
    %c0_i32_1 = arith.constant 0 : i32
    return %arg0, %c0_i32, %c0_i32_0 : i32, i32, i32
  }
}

</mosaic_0001>

<bundles_post_ra>
// kernel: tpu_custom_call.1
= control target key start
LH: loop header
LB: loop body
LE: loop exit
PB: predicated region body
PF: predicated region fallthrough
CT: control target
= control target key end

     0   :  { %s4315_s0 = inlined_call_operand.vmem [shape: f32[1,1,32], index: 0, kind: input, shape index: {}]   ;;  %s4316_s1 = inlined_call_operand.vmem [shape: f32[1,2,8], index: 1, kind: input, shape index: {}]   ;;  %s4317_s2 = inlined_call_operand.vmem [shape: f32[1,32,2], index: 2, kind: input, shape index: {}]   ;;  %s4318_s3 = inlined_call_operand.vmem [shape: f32[2,2,40,40], index: 3, kind: input, shape index: {}]   ;;  %s4319_s4 = inlined_call_operand.vmem [shape: f32[64,32], index: 4, kind: input, shape index: {}]   ;;  %s4320_s5 = inlined_call_operand.vmem [shape: f32[64,64], index: 5, kind: input, shape index: {}]   ;;  %s4321_s6 = inlined_call_operand.vmem [shape: f32[64,2], index: 6, kind: input, shape index: {}]   ;;  %s4322_s7 = inlined_call_operand.vmem [shape: f32[8,8], index: 7, kind: input, shape index: {}]   ;;  %s4323_s8 = inlined_call_operand.vmem [shape: f32[8,16], index: 8, kind: input, shape index: {}]   ;;  %s4324_s9 = inlined_call_operand.vmem [shape: f32[2,16], index: 9, kind: input, shape index: {}]   ;;  %s4325_s10 = inlined_call_operand.vmem [shape: f32[8,2], index: 10, kind: input, shape index: {}]   ;;  %s4326_s11 = inlined_call_operand.vmem [shape: f32[8,16,24], index: 11, kind: input, shape index: {}]   ;;  %s4327_s12 = inlined_call_operand.vmem [shape: f32[8,16,8], index: 12, kind: input, shape index: {}]   ;;  %s4328_s13 = inlined_call_operand.vmem [shape: f32[128,4], index: 13, kind: input, shape index: {}]   ;;  %s4329_s14 = inlined_call_operand.vmem [shape: f32[64,64], index: 14, kind: input, shape index: {}]   ;;  %s4330_s15 = inlined_call_operand.vmem [shape: f32[64,1], index: 15, kind: input, shape index: {}]   ;;  %s4331_s16 = inlined_call_operand.vmem [shape: f32[8,25], index: 16, kind: input, shape index: {}]   ;;  %s4332_s17 = inlined_call_operand.vmem [shape: f32[25,1], index: 17, kind: input, shape index: {}]   ;;  %s4333_s18 = inlined_call_operand.hbm [shape: f32[1,1,32], index: 18, kind: output, shape index: {}]  }
   0x1   :  { %4342 = sst [smem:[#allocation5_spill]] %s4315_s0 }
   0x2   :  { %4343 = sst [smem:[#allocation6_spill]] %s4316_s1 }
   0x3   :  { %4344 = sst [smem:[#allocation7_spill]] %s4317_s2 }
   0x4   :  { %s4345_s29 = sld [smem:[#allocation7_spill]]  ;;  %v120_v2 = vld [vmem:[%s4321_s6 + $0x28] sm:$0xff]  ;;  %v4340_v3 = vmov 0   ;;  %v122_v5 = vld [vmem:[%s4321_s6 + $0x38] sm:$0xff]  ;;  %v107_v7 = vld [vmem:[%s4319_s4] sm:$0xff]  ;;  %vm4335_vm0 = vcmask 261120  }
   0x5   :  { %2671 = vset.pattern.permute.xlu1 %v4340_v3  ;;  %2670 = vset.pattern.permute.xlu0 %v4340_v3 }
   0x6   :  { %150 = vperm.xlu1 %2671, %v120_v2   ;;  %160 = vperm.xlu0 %2670, %v122_v5  }
   0x7   :  { %2672 = vset.pattern.permute.xlu2 %v4340_v3 }
   0xa   :  { %v106_v0 = vld [vmem:[%s4345_s29 + $0x18] sm:$0xff]  ;;  %v105_v1 = vld [vmem:[%s4345_s29 + $0x10] sm:$0xff]  ;;  %v104_v4 = vld [vmem:[%s4345_s29 + $0x8] sm:$0xff] }
   0xb   :  { %200 = vmatpush.msra.mxu0 %v106_v0  ;;  %v103_v6 = vld [vmem:[%s4345_s29] sm:$0xff] }
   0xd   :  { %201 = vmatpush.msra.mxu0 %v105_v1 }
   0xf   :  { %202 = vmatpush.msra.mxu0 %v104_v4 }
  0x10   :  { %23 = vsyncpa [#allocation3], 0  ;;  %v119_v8 = vld [vmem:[%s4321_s6 + $0x20] sm:$0xff]  ;;  %v121_v9 = vld [vmem:[%s4321_s6 + $0x30] sm:$0xff]  ;;  %v2896_v21 = vmov 1   ;;  %s4346_s23 = sld [smem:[#allocation5_spill]] }
  0x11   :  { %203 = vmatpush.msra.mxu0 %v103_v6  ;;  %145 = vperm.xlu1 %2671, %v119_v8   ;;  %v108_v10 = vld [vmem:[%s4319_s4 + $0x8] sm:$0xff]  ;;  %v115_v11 = vld [vmem:[%s4321_s6] sm:$0xff]  ;;  %v118_v13 = vld [vmem:[%s4321_s6 + $0x18] sm:$0xff]  ;;  %s2897_s24 = smov 98   ;;  %s2898_s25 = smov 2  }
  0x12   :  { %2513 = vmatmul.msk.f32.vlgmr.msra.gmra.mxu0 %vm4335_vm0, %v107_v7  ;;  %155 = vperm.xlu0 %2670, %v121_v9   ;;  %v116_v12 = vld [vmem:[%s4321_s6 + $0x8] sm:$0xff]  ;;  %v109_v14 = vld [vmem:[%s4319_s4 + $0x10] sm:$0xff]  ;;  %v110_v16 = vld [vmem:[%s4319_s4 + $0x18] sm:$0xff]  ;;  %s2899_s26 = smov 114   ;;  %s2900_s27 = smov 18  }
  0x13   :  { %140 = vperm.xlu2 %2672, %v118_v13   ;;  %v117_v15 = vld [vmem:[%s4321_s6 + $0x10] sm:$0xff]  ;;  %v111_v17 = vld [vmem:[%s4319_s4 + $0x20] sm:$0xff]  ;;  %v112_v18 = vld [vmem:[%s4319_s4 + $0x28] sm:$0xff]  ;;  %s4359_s0 = sld [smem:[#allocation6_spill]]  ;;  %s2901_s29 = smov 20  }
  0x14   :  { %v113_v19 = vld [vmem:[%s4319_s4 + $0x30] sm:$0xff]  ;;  %v114_v20 = vld [vmem:[%s4319_s4 + $0x38] sm:$0xff]  ;;  %s2905_s19 = smov 124  }
  0x16   :  { %v2739_v26 = vld [vmem:[%s4346_s23] ss:$0 sm:$0xff] }
  0x19   :  { %125 = vperm.xlu1 %2671, %v115_v11  }
  0x1a   :  { %2514 = vmatmul.msk.f32.gmra.mxu0 %vm4335_vm0, %v108_v10  ;;  %130 = vperm.xlu0 %2670, %v116_v12  }
  0x1b   :  { %135 = vperm.xlu2 %2672, %v117_v15  }
  0x21   :  { %2675 = vset.pattern.permute.xlu1 %v2896_v21 }
  0x22   :  { %2515 = vmatmul.msk.f32.gmra.mxu0 %vm4335_vm0, %v109_v14  ;;  %2674 = vset.pattern.permute.xlu0 %v2896_v21 }
  0x23   :  { %418 = vperm.xlu1 %2675, %v120_v2   ;;  %422 = vperm.xlu0 %2674, %v121_v9  }
  0x24   :  { %2673 = vset.pattern.permute.xlu2 %v2896_v21 }
  0x25   :  { %426 = vperm.xlu2 %2673, %v122_v5  }
  0x2a   :  { %2516 = vmatmul.msk.f32.gmra.mxu0 %vm4335_vm0, %v110_v16 }
  0x2b   :  { %410 = vperm.xlu1 %2675, %v118_v13   ;;  %402 = vperm.xlu0 %2674, %v116_v12  }
  0x2d   :  { %414 = vperm.xlu2 %2673, %v119_v8  }
  0x32   :  { %2517 = vmatmul.msk.f32.gmra.mxu0 %vm4335_vm0, %v111_v17 }
  0x33   :  { %398 = vperm.xlu1 %2675, %v115_v11   ;;  %76 = vrot.lane.b32.xlu0 %v2739_v26, %s2897_s24  ;;  %s2504_s24 = sshll.u32 %s4333_s18, 4  ;;  %s2505_s24 = int_to_ptr.hbm [resolvable:$true] %s2504_s24 }
  0x35   :  { %406 = vperm.xlu2 %2673, %v117_v15  }
  0x3a   :  { %2518 = vmatmul.msk.f32.gmra.mxu0 %vm4335_vm0, %v112_v18 }
  0x3b   :  { %66 = vrot.lane.b32.xlu1 %v2739_v26, %s2898_s25  ;;  %69 = vrot.lane.b32.xlu0 %v2739_v26, %s2900_s27 }
  0x3c   :  { %2677 = vset.pattern.permute.xlu1 %v4340_v3 }
  0x3d   :  { %63 = vrot.lane.b32.xlu2 %v2739_v26, %s2899_s26 }
  0x3e   :  { %2676 = vset.pattern.permute.xlu2 %v4340_v3 }
  0x42   :  { %2519 = vmatmul.msk.f32.gmra.mxu0 %vm4335_vm0, %v113_v19 }
  0x4a   :  { %2520 = vmatmul.msk.f32.gmra.mxu0 %vm4335_vm0, %v114_v20 }
  0x6d   :  { %v141_v30 = vpop.permute.xlu2 %140 }
  0x75   :  { %v136_v35 = vpop.permute.xlu2 %135 }
  0x78   :  { %v151_v24 = vpop.permute.xlu1 %150  ;;  %v161_v25 = vpop.permute.xlu0 %160 }
  0x83   :  { %v146_v28 = vpop.permute.xlu1 %145 }
  0x84   :  { %v156_v29 = vpop.permute.xlu0 %155 }
  0x8b   :  { %v126_v32 = vpop.permute.xlu1 %125 }
  0x8c   :  { %v131_v33 = vpop.permute.xlu0 %130 }
  0x8f   :  { %v205_v22 = vpop.f32.mrf.mxu0 }
  0x90   :  { %v3087_v36 = vadd.f32 %v205_v22, %v126_v32 }
  0x92   :  { %v2521_v40 = vmul.f32 -1.442695, %v3087_v36 }
  0x94   :  { %2742 = vpow2.f32 %v2521_v40 }
  0x97   :  { %v208_v23 = vpop.f32.mrf.mxu0 }
  0x98   :  { %v3089_v37 = vadd.f32 %v208_v23, %v131_v33 }
  0x9a   :  { %v2522_v42 = vmul.f32 -1.442695, %v3089_v37  ;;  %v2743_v49 = vpop.eup %2742 }
  0x9b   :  { %v3107_v55 = vadd.f32 1.0, %v2743_v49 }
  0x9c   :  { %2744 = vpow2.f32 %v2522_v42 }
  0x9f   :  { %v211_v27 = vpop.f32.mrf.mxu0 }
  0xa0   :  { %v3091_v38 = vadd.f32 %v211_v27, %v136_v35 }
  0xa2   :  { %v2523_v43 = vmul.f32 -1.442695, %v3091_v38  ;;  %v2745_v51 = vpop.eup %2744 }
  0xa3   :  { %v3110_v58 = vadd.f32 1.0, %v2745_v51 }
  0xa4   :  { %2746 = vpow2.f32 %v2523_v43 }
  0xa7   :  { %v214_v31 = vpop.f32.mrf.mxu0 }
  0xa8   :  { %v3093_v39 = vadd.f32 %v214_v31, %v141_v30 }
  0xaa   :  { %v2524_v45 = vmul.f32 -1.442695, %v3093_v39  ;;  %v2747_v53 = vpop.eup %2746 }
  0xab   :  { %v3112_v60 = vadd.f32 1.0, %v2747_v53 }
  0xac   :  { %2748 = vpow2.f32 %v2524_v45 }
  0xad   :  { %vm296_vm9 = vweird.f32 %v3112_v60 }
  0xaf   :  { %v217_v34 = vpop.f32.mrf.mxu0 }
  0xb0   :  { %v3096_v41 = vadd.f32 %v217_v34, %v146_v28 }
  0xb2   :  { %v2525_v47 = vmul.f32 -1.442695, %v3096_v41  ;;  %v2749_v54 = vpop.eup %2748 }
  0xb3   :  { %v3114_v61 = vadd.f32 1.0, %v2749_v54 }
  0xb4   :  { %2750 = vpow2.f32 %v2525_v47 }
  0xb5   :  { %v315_v32 = vand.u32 2147483647, %v3114_v61  ;;  %vm311_vm5 = vweird.f32 %v3114_v61 }
  0xb7   :  { %v220_v44 = vpop.f32.mrf.mxu0 }
  0xb8   :  { %v3101_v46 = vadd.f32 %v220_v44, %v151_v24 }
  0xba   :  { %v2526_v48 = vmul.f32 -1.442695, %v3101_v46  ;;  %v2751_v57 = vpop.eup %2750 }
  0xbb   :  { %v3117_v62 = vadd.f32 1.0, %v2751_v57 }
  0xbc   :  { %2752 = vpow2.f32 %v2526_v48 }
  0xbd   :  { %vm326_vm2 = vweird.f32 %v3117_v62  ;;  %v330_v44 = vand.u32 2147483647, %v3117_v62 }
  0xbf   :  { %v223_v50 = vpop.f32.mrf.mxu0 }
  0xc0   :  { %v3105_v52 = vadd.f32 %v223_v50, %v156_v29 }
  0xc2   :  { %v2527_v56 = vmul.f32 -1.442695, %v3105_v52  ;;  %v2753_v59 = vpop.eup %2752 }
  0xc3   :  { %v3120_v63 = vadd.f32 1.0, %v2753_v59 }
  0xc4   :  { %2754 = vpow2.f32 %v2527_v56 }
  0xc5   :  { %2756 = vrcp.f32 %v3107_v55  ;;  %vm341_vm12 = vweird.f32 %v3120_v63  ;;  %v345_v59 = vand.u32 2147483647, %v3120_v63 }
  0xc6   :  { %2758 = vrcp.f32 %v3110_v58 }
  0xc7   :  { %v226_v0 = vpop.f32.mrf.mxu0  ;;  %2760 = vrcp.f32 %v3112_v60 }
  0xc8   :  { %v3123_v1 = vadd.f32 %v226_v0, %v161_v25  ;;  %2762 = vrcp.f32 %v3114_v61  ;;  %v347_v0 = vand.u32 2147483648, %v3120_v63 }
  0xc9   :  { %2764 = vrcp.f32 %v3117_v62 }
  0xca   :  { %v2755_v2 = vpop.eup %2754  ;;  %v2528_v4 = vmul.f32 -1.442695, %v3123_v1  ;;  %2766 = vrcp.f32 %v3120_v63 }
  0xcb   :  { %v3129_v5 = vadd.f32 1.0, %v2755_v2  ;;  %v3131_v6 = vpop.eup %2756 }
  0xcc   :  { %2768 = vpow2.f32 %v2528_v4  ;;  %v3133_v7 = vpop.eup %2758  ;;  %v262_v16 = vmul.f32 %v3131_v6, %v3107_v55 }
  0xcd   :  { %2770 = vrcp.f32 %v3129_v5  ;;  %v3136_v8 = vpop.eup %2760  ;;  %v277_v15 = vmul.f32 %v3133_v7, %v3110_v58  ;;  %vm356_vm7 = vweird.f32 %v3129_v5  ;;  %v360_v50 = vand.u32 2147483647, %v3129_v5 }
  0xce   :  { %v3138_v9 = vpop.eup %2762  ;;  %v292_v19 = vmul.f32 %v3136_v8, %v3112_v60  ;;  %v263_v25 = vsub.f32 1.0, %v262_v16  ;;  %vm297_vm6 = vweird.f32 %v3136_v8  ;;  %v362_v51 = vand.u32 2147483648, %v3129_v5 }
  0xcf   :  { %v3140_v10 = vpop.eup %2764  ;;  %v307_v22 = vmul.f32 %v3138_v9, %v3114_v61  ;;  %v278_v24 = vsub.f32 1.0, %v277_v15  ;;  %vm312_vm1 = vweird.f32 %v3138_v9  ;;  %vm282_vm10 = vweird.f32 %v3133_v7 }
  0xd0   :  { %v3142_v11 = vpop.eup %2766  ;;  %v322_v20 = vmul.f32 %v3140_v10, %v3117_v62  ;;  %v293_v27 = vsub.f32 1.0, %v292_v19  ;;  %v3169_v34 = vmul.f32 %v3131_v6, %v263_v25  ;;  %vm327_vm13 = vweird.f32 %v3140_v10 }
  0xd1   :  { %v337_v18 = vmul.f32 %v3142_v11, %v3120_v63  ;;  %v308_v29 = vsub.f32 1.0, %v307_v22  ;;  %v3166_v33 = vmul.f32 %v3133_v7, %v278_v24  ;;  %vm342_vm4 = vweird.f32 %v3142_v11  ;;  %v396_v22 = vld [vmem:[%s4320_s5 + $0x38] sm:$0xff] }
  0xd2   :  { %v2769_v12 = vpop.eup %2768  ;;  %v323_v28 = vsub.f32 1.0, %v322_v20  ;;  %v294_v42 = vmul.f32 %v3136_v8, %v293_v27  ;;  %vm3206_vm15 = vmor %vm341_vm12, %vm342_vm4  ;;  %v332_v15 = vand.u32 2147483648, %v3117_v62  ;;  %vm361_vm4 = vcmp.eq.f32.partialorder %v360_v50, 8.507059e+37 }
  0xd3   :  { %v3144_v13 = vpop.eup %2770  ;;  %v3146_v14 = vadd.f32 1.0, %v2769_v12  ;;  %v338_v26 = vsub.f32 1.0, %v337_v18  ;;  %v309_v45 = vmul.f32 %v3138_v9, %v308_v29  ;;  %v348_v20 = vor.u32 1.1754944e-38, %v347_v0 }
  0xd4   :  { %v352_v17 = vmul.f32 %v3144_v13, %v3129_v5  ;;  %v324_v43 = vmul.f32 %v3140_v10, %v323_v28  ;;  %vm357_vm3 = vweird.f32 %v3144_v13  ;;  %v295_v25 = vadd.f32 %v3136_v8, %v294_v42  ;;  %v663_v5 = vld [vmem:[%s4330_s15] sm:$0xff] }
  0xd5   :  { %2772 = vrcp.f32 %v3146_v14  ;;  %v339_v40 = vmul.f32 %v3142_v11, %v338_v26  ;;  %v377_v49 = vand.u32 2147483648, %v3146_v14  ;;  %v375_v54 = vand.u32 2147483647, %v3146_v14  ;;  %vm3192_vm11 = vmor %vm356_vm7, %vm357_vm3  ;;  %673 = vperm.xlu2 %2676, %v663_v5  }
  0xd6   :  { %v353_v23 = vsub.f32 1.0, %v352_v17  ;;  %vm371_vm14 = vweird.f32 %v3146_v14  ;;  %v325_v12 = vadd.f32 %v3140_v10, %v324_v43  ;;  %vm281_vm3 = vweird.f32 %v3110_v58 }
  0xd7   :  { %v340_v56 = vadd.f32 %v3142_v11, %v339_v40  ;;  %vm267_vm7 = vweird.f32 %v3131_v6  ;;  %v378_v63 = vor.u32 1.1754944e-38, %v377_v49  ;;  %v333_v27 = vor.u32 1.1754944e-38, %v332_v15 }
  0xd8   :  { %v354_v30 = vmul.f32 %v3144_v13, %v353_v23  ;;  %v317_v23 = vand.u32 2147483648, %v3114_v61  ;;  %v300_v28 = vand.u32 2147483647, %v3112_v60  ;;  %vm331_vm12 = vcmp.eq.f32.partialorder %v330_v44, 8.507059e+37 }
  0xd9   :  { %v344_v17 = vsel %vm3206_vm15, %v3142_v11, %v340_v56  ;;  %v287_v42 = vand.u32 2147483648, %v3110_v58  ;;  %v391_v56 = vld [vmem:[%s4320_s5 + $0x10] sm:$0xff] }
  0xda   :  { %v355_v48 = vadd.f32 %v3144_v13, %v354_v30  ;;  %v280_v30 = vadd.f32 %v3133_v7, %v3166_v33 }
  0xdb   :  { %v2773_v31 = vpop.eup %2772 }
  0xdc   :  { %v367_v35 = vmul.f32 %v2773_v31, %v3146_v14  ;;  %vm372_vm8 = vweird.f32 %v2773_v31  ;;  %v359_v4 = vsel %vm3192_vm11, %v3144_v13, %v355_v48  ;;  %v363_v14 = vor.u32 1.1754944e-38, %v362_v51 }
  0xdd   :  { %vm373_vm0 = vmor %vm371_vm14, %vm372_vm8  ;;  %v310_v13 = vadd.f32 %v3138_v9, %v309_v45  ;;  %vm376_vm11 = vcmp.eq.f32.partialorder %v375_v54, 8.507059e+37  ;;  %v3299_v54 = vpop.permute.xlu0 %422 }
  0xde   :  { %v368_v47 = vsub.f32 1.0, %v367_v35  ;;  %v364_v19 = vsel %vm361_vm4, %v363_v14, %v359_v4  ;;  %vm3223_vm8 = vmor %vm326_vm2, %vm327_vm13  ;;  %v318_v35 = vor.u32 1.1754944e-38, %v317_v23  ;;  %vm301_vm13 = vcmp.eq.f32.partialorder %v300_v28, 8.507059e+37  ;;  %v87_v4 = vld [vmem:[%s4325_s10] sm:$0xff] }
  0xdf   :  { %v329_v11 = vsel %vm3223_vm8, %v3140_v10, %v325_v12  ;;  %vm3237_vm2 = vmor %vm311_vm5, %vm312_vm1  ;;  %v387_v29 = vmul.f32 %v364_v19, %v3105_v52  ;;  %v285_v52 = vand.u32 2147483647, %v3110_v58  ;;  %vm316_vm5 = vcmp.eq.f32.partialorder %v315_v32, 8.507059e+37  ;;  %v857_v12 = vld [vmem:[%s4322_s7] sm:$0xff]  ;;  %96 = vperm.xlu0 %2674, %v87_v4   ;;  %90 = vperm.xlu2 %2676, %v87_v4   ;;  %v394_v19 = vld [vmem:[%s4320_s5 + $0x28] sm:$0xff] }
  0xe0   :  { %v369_v53 = vmul.f32 %v2773_v31, %v368_v47  ;;  %v314_v10 = vsel %vm3237_vm2, %v3138_v9, %v310_v13  ;;  %vm3253_vm1 = vmor %vm296_vm9, %vm297_vm6  ;;  %vm266_vm9 = vweird.f32 %v3107_v55  ;;  %v270_v32 = vand.u32 2147483647, %v3107_v55  ;;  %v856_v14 = vld [vmem:[%s4359_s0] sm:$0x3]  ;;  %879 = vmatpush.msra.mxu3 %v857_v12 }
  0xe1   :  { %v299_v33 = vsel %vm3253_vm1, %v3136_v8, %v295_v25  ;;  %v319_v43 = vsel %vm316_vm5, %v318_v35, %v314_v10  ;;  %vm3271_vm6 = vmor %vm281_vm3, %vm282_vm10  ;;  %v288_v58 = vor.u32 1.1754944e-38, %v287_v42  ;;  %vm286_vm14 = vcmp.eq.f32.partialorder %v285_v52, 8.507059e+37 }
  0xe2   :  { %v370_v2 = vadd.f32 %v2773_v31, %v369_v53  ;;  %v284_v8 = vsel %vm3271_vm6, %v3133_v7, %v280_v30  ;;  %vm268_vm10 = vmor %vm266_vm9, %vm267_vm7  ;;  %v384_v47 = vmul.f32 %v319_v43, %v3093_v39  ;;  %vm271_vm15 = vcmp.eq.f32.partialorder %v270_v32, 8.507059e+37  ;;  %v389_v39 = vld [vmem:[%s4320_s5] sm:$0xff]  ;;  %v419_v53 = vpop.permute.xlu1 %418 }
  0xe3   :  { %v289_v49 = vsel %vm286_vm14, %v288_v58, %v284_v8  ;;  %vm4339_vm3 = vcmask 523264   ;;  %vm4336_vm7 = vcmask 64512   ;;  %vm4337_vm4 = vcmask 146432  }
  0xe4   :  { %v374_v16 = vsel %vm373_vm0, %v2773_v31, %v370_v2  ;;  %vm346_vm0 = vcmp.eq.f32.partialorder %v345_v59, 8.507059e+37  ;;  %v334_v31 = vsel %vm331_vm12, %v333_v27, %v329_v11  ;;  %v392_v2 = vld [vmem:[%s4320_s5 + $0x18] sm:$0xff]  ;;  %2553 = vmatmul.msk.f32.vlgmr.msra.gmra.mxu3 %vm4336_vm7, %v856_v14 }
  0xe5   :  { %v379_v18 = vsel %vm376_vm11, %v378_v63, %v374_v16  ;;  %v349_v26 = vsel %vm346_vm0, %v348_v20, %v344_v17  ;;  %v385_v61 = vmul.f32 %v334_v31, %v3096_v41  ;;  %v403_v59 = vpop.permute.xlu0 %402  ;;  %vm4338_vm11 = vcmask 15360   ;;  %v393_v17 = vld [vmem:[%s4320_s5 + $0x20] sm:$0xff]  ;;  %v395_v20 = vld [vmem:[%s4320_s5 + $0x30] sm:$0xff] }
  0xe6   :  { %v388_v24 = vmul.f32 %v379_v18, %v3123_v1  ;;  %v302_v1 = vand.u32 2147483648, %v3112_v60  ;;  %v386_v9 = vmul.f32 %v349_v26, %v3101_v46  ;;  %v265_v60 = vadd.f32 %v3131_v6, %v3169_v34 }
  0xe7   :  { %v272_v46 = vand.u32 2147483648, %v3107_v55  ;;  %v382_v55 = vmul.f32 %v289_v49, %v3089_v37  ;;  %2681 = vset.pattern.permute.xlu0 %v4340_v3  ;;  %2678 = vset.pattern.permute.xlu2 %v2896_v21 }
  0xe8   :  { %462 = vmatpush.msra.mxu1 %v388_v24  ;;  %v303_v44 = vor.u32 1.1754944e-38, %v302_v1  ;;  %v269_v48 = vsel %vm268_vm10, %v3131_v6, %v265_v60  ;;  %v3293_v6 = vpop.permute.xlu2 %426 }
  0xe9   :  { %v273_v41 = vor.u32 1.1754944e-38, %v272_v46 }
  0xea   :  { %463 = vmatpush.msra.mxu1 %v387_v29  ;;  %v304_v34 = vsel %vm301_vm13, %v303_v44, %v299_v33 }
  0xeb   :  { %v383_v50 = vmul.f32 %v304_v34, %v3091_v38  ;;  %v274_v7 = vsel %vm271_vm15, %v273_v41, %v269_v48  ;;  %v390_v38 = vld [vmem:[%s4320_s5 + $0x8] sm:$0xff] }
  0xec   :  { %464 = vmatpush.msra.mxu1 %v386_v9  ;;  %v381_v51 = vmul.f32 %v274_v7, %v3087_v36  ;;  %v411_v36 = vpop.permute.xlu1 %410 }
  0xed   :  { %v77_v15 = vpop.permute.xlu0 %76 }
  0xee   :  { %465 = vmatpush.msra.mxu1 %v385_v61 }
  0xf0   :  { %466 = vmatpush.msra.mxu1 %v384_v47  ;;  %v415_v37 = vpop.permute.xlu2 %414 }
  0xf2   :  { %467 = vmatpush.msra.mxu1 %v383_v50 }
  0xf4   :  { %468 = vmatpush.msra.mxu1 %v382_v55  ;;  %v399_v0 = vpop.permute.xlu1 %398 }
  0xf6   :  { %469 = vmatpush.msra.mxu1 %v381_v51 }
  0xf7   :  { %2529 = vmatmul.msk.f32.vlgmr.msra.gmra.mxu1 %vm4339_vm3, %v389_v39 }
  0xf8   :  { %v407_v57 = vpop.permute.xlu2 %406 }
  0xfc   :  { %v3326_v16 = vpop.permute.xlu1 %66 }
  0xff   :  { %2530 = vmatmul.msk.f32.gmra.mxu1 %vm4339_vm3, %v390_v38 }
 0x100   :  { %v3318_v63 = vpop.permute.xlu2 %63 }
 0x101   :  { %v79_v13 = vsel %vm4338_vm11, %v77_v15, %v3318_v63 }
 0x102   :  { %v80_v18 = vsel %vm4337_vm4, %v79_v13, %v3326_v16 }
 0x103   :  { %82 = vrot.lane.b32.xlu1 %v80_v18, %s2901_s29 }
 0x107   :  { %2531 = vmatmul.msk.f32.gmra.mxu1 %vm4339_vm3, %v391_v56 }
 0x10f   :  { %2532 = vmatmul.msk.f32.gmra.mxu1 %vm4339_vm3, %v392_v2 }
 0x117   :  { %2533 = vmatmul.msk.f32.gmra.mxu1 %vm4339_vm3, %v393_v17  ;;  %v2740_v17 = vld [vmem:[%s4324_s9] ss:$0 sm:$0xff] }
 0x11f   :  { %2534 = vmatmul.msk.f32.gmra.mxu1 %vm4339_vm3, %v394_v19 }
 0x127   :  { %2535 = vmatmul.msk.f32.gmra.mxu1 %vm4339_vm3, %v395_v20 }
 0x12f   :  { %2536 = vmatmul.msk.f32.gmra.mxu1 %vm4339_vm3, %v396_v22 }
 0x167   :  { %v881_v18 = vpop.f32.mrf.mxu3 }
 0x174   :  { %v471_v23 = vpop.f32.mrf.mxu1 }
 0x175   :  { %v3349_v27 = vadd.f32 %v471_v23, %v399_v0  ;;  %v887_v23 = vld [vmem:[%s4323_s8] sm:$0xff] }
 0x176   :  { %908 = vmatpush.msrb.mxu3 %v887_v23 }
 0x177   :  { %v2537_v29 = vmul.f32 -1.442695, %v3349_v27 }
 0x179   :  { %2774 = vpow2.f32 %v2537_v29 }
 0x17c   :  { %v474_v24 = vpop.f32.mrf.mxu1 }
 0x17d   :  { %v3351_v62 = vadd.f32 %v474_v24, %v403_v59 }
 0x17f   :  { %v2538_v30 = vmul.f32 -1.442695, %v3351_v62  ;;  %v2775_v33 = vpop.eup %2774 }
 0x180   :  { %v3370_v61 = vadd.f32 1.0, %v2775_v33 }
 0x181   :  { %2776 = vpow2.f32 %v2538_v30 }
 0x184   :  { %v477_v11 = vpop.f32.mrf.mxu1 }
 0x185   :  { %v3353_v28 = vadd.f32 %v477_v11, %v407_v57  ;;  %v882_v11 = vadd.f32 %v2740_v17, %v881_v18 }
 0x187   :  { %v2539_v31 = vmul.f32 -1.442695, %v3353_v28  ;;  %v2777_v43 = vpop.eup %2776  ;;  %vm884_vm8 = vcmp.ge.f32.partialorder %v882_v11, 0.0  ;;  %v885_v30 = vmul.f32 0.4, %v882_v11 }
 0x188   :  { %v3373_v34 = vadd.f32 1.0, %v2777_v43 }
 0x189   :  { %2778 = vpow2.f32 %v2539_v31  ;;  %v886_v43 = vsel %vm884_vm8, %v882_v11, %v885_v30 }
 0x18a   :  { %2554 = vmatmul.msk.f32.vlgmr.msrb.gmra.mxu3 %vm4336_vm7, %v886_v43 }
 0x18c   :  { %v480_v25 = vpop.f32.mrf.mxu1 }
 0x18d   :  { %v3355_v1 = vadd.f32 %v480_v25, %v411_v36 }
 0x18f   :  { %v2540_v40 = vmul.f32 -1.442695, %v3355_v1  ;;  %v2779_v45 = vpop.eup %2778 }
 0x190   :  { %v3375_v47 = vadd.f32 1.0, %v2779_v45 }
 0x191   :  { %2780 = vpow2.f32 %v2540_v40 }
 0x192   :  { %vm562_vm10 = vweird.f32 %v3375_v47 }
 0x194   :  { %v483_v26 = vpop.f32.mrf.mxu1 }
 0x195   :  { %v3358_v10 = vadd.f32 %v483_v26, %v415_v37 }
 0x197   :  { %v2541_v42 = vmul.f32 -1.442695, %v3358_v10  ;;  %v2781_v46 = vpop.eup %2780 }
 0x198   :  { %v3377_v48 = vadd.f32 1.0, %v2781_v46 }
 0x199   :  { %2782 = vpow2.f32 %v2541_v42 }
 0x19a   :  { %vm577_vm5 = vweird.f32 %v3377_v48  ;;  %v583_v11 = vand.u32 2147483648, %v3377_v48 }
 0x19c   :  { %v486_v35 = vpop.f32.mrf.mxu1  ;;  %v584_v43 = vor.u32 1.1754944e-38, %v583_v11  ;;  %v3651_v11 = vld [vmem:[%s4318_s3 + $0x38] sm:$0xff] }
 0x19d   :  { %v3363_v52 = vadd.f32 %v486_v35, %v419_v53  ;;  %v581_v35 = vand.u32 2147483647, %v3377_v48 }
 0x19f   :  { %v2542_v9 = vmul.f32 -1.442695, %v3363_v52  ;;  %v2783_v32 = vpop.eup %2782 }
 0x1a0   :  { %v3380_v49 = vadd.f32 1.0, %v2783_v32 }
 0x1a1   :  { %2784 = vpow2.f32 %v2542_v9 }
 0x1a2   :  { %vm592_vm2 = vweird.f32 %v3380_v49  ;;  %v596_v46 = vand.u32 2147483647, %v3380_v49  ;;  %v598_v17 = vand.u32 2147483648, %v3380_v49 }
 0x1a4   :  { %v489_v60 = vpop.f32.mrf.mxu1  ;;  %v599_v30 = vor.u32 1.1754944e-38, %v598_v17  ;;  %v3605_v17 = vld [vmem:[%s4318_s3 + $0x18] sm:$0xff] }
 0x1a5   :  { %v3368_v44 = vadd.f32 %v489_v60, %v3299_v54 }
 0x1a7   :  { %v2543_v8 = vmul.f32 -1.442695, %v3368_v44  ;;  %v2785_v58 = vpop.eup %2784 }
 0x1a8   :  { %v3383_v41 = vadd.f32 1.0, %v2785_v58 }
 0x1a9   :  { %2786 = vpow2.f32 %v2543_v8 }
 0x1aa   :  { %2788 = vrcp.f32 %v3370_v61  ;;  %vm607_vm8 = vweird.f32 %v3383_v41 }
 0x1ab   :  { %2790 = vrcp.f32 %v3373_v34 }
 0x1ac   :  { %v492_v50 = vpop.f32.mrf.mxu1  ;;  %2792 = vrcp.f32 %v3375_v47 }
 0x1ad   :  { %v3387_v7 = vadd.f32 %v492_v50, %v3293_v6  ;;  %2794 = vrcp.f32 %v3377_v48 }
 0x1ae   :  { %2796 = vrcp.f32 %v3380_v49 }
 0x1af   :  { %v2787_v55 = vpop.eup %2786  ;;  %v2544_v51 = vmul.f32 -1.442695, %v3387_v7  ;;  %2798 = vrcp.f32 %v3383_v41 }
 0x1b0   :  { %v3393_v39 = vadd.f32 1.0, %v2787_v55  ;;  %v3395_v53 = vpop.eup %2788 }
 0x1b1   :  { %2800 = vpow2.f32 %v2544_v51  ;;  %v3397_v38 = vpop.eup %2790  ;;  %v528_v4 = vmul.f32 %v3395_v53, %v3370_v61  ;;  %vm533_vm11 = vweird.f32 %v3395_v53 }
 0x1b2   :  { %2802 = vrcp.f32 %v3393_v39  ;;  %v3400_v6 = vpop.eup %2792  ;;  %v543_v2 = vmul.f32 %v3397_v38, %v3373_v34  ;;  %vm622_vm9 = vweird.f32 %v3393_v39  ;;  %v626_v55 = vand.u32 2147483647, %v3393_v39 }
 0x1b3   :  { %v3402_v37 = vpop.eup %2794  ;;  %v558_v0 = vmul.f32 %v3400_v6, %v3375_v47  ;;  %v529_v22 = vsub.f32 1.0, %v528_v4  ;;  %vm563_vm6 = vweird.f32 %v3400_v6  ;;  %v628_v51 = vand.u32 2147483648, %v3393_v39 }
 0x1b4   :  { %v3404_v54 = vpop.eup %2796  ;;  %v573_v15 = vmul.f32 %v3402_v37, %v3377_v48  ;;  %v544_v20 = vsub.f32 1.0, %v543_v2  ;;  %vm578_vm0 = vweird.f32 %v3402_v37  ;;  %vm548_vm14 = vweird.f32 %v3397_v38 }
 0x1b5   :  { %v3406_v36 = vpop.eup %2798  ;;  %v588_v14 = vmul.f32 %v3404_v54, %v3380_v49  ;;  %v559_v19 = vsub.f32 1.0, %v558_v0  ;;  %v3440_v9 = vmul.f32 %v3395_v53, %v529_v22  ;;  %vm593_vm7 = vweird.f32 %v3404_v54 }
 0x1b6   :  { %v603_v12 = vmul.f32 %v3406_v36, %v3383_v41  ;;  %v574_v26 = vsub.f32 1.0, %v573_v15  ;;  %v3437_v42 = vmul.f32 %v3397_v38, %v544_v20  ;;  %vm608_vm1 = vweird.f32 %v3406_v36  ;;  %v3579_v15 = vld [vmem:[%s4328_s13] sm:$0xff] }
 0x1b7   :  { %v2801_v56 = vpop.eup %2800  ;;  %v589_v25 = vsub.f32 1.0, %v588_v14  ;;  %v560_v40 = vmul.f32 %v3400_v6, %v559_v19 }
 0x1b8   :  { %v3408_v57 = vpop.eup %2802  ;;  %v3410_v59 = vadd.f32 1.0, %v2801_v56  ;;  %v604_v24 = vsub.f32 1.0, %v603_v12  ;;  %v575_v8 = vmul.f32 %v3402_v37, %v574_v26 }
 0x1b9   :  { %v618_v5 = vmul.f32 %v3408_v57, %v3393_v39  ;;  %v590_v45 = vmul.f32 %v3404_v54, %v589_v25  ;;  %vm623_vm12 = vweird.f32 %v3408_v57  ;;  %v613_v39 = vand.u32 2147483648, %v3383_v41 }
 0x1ba   :  { %2804 = vrcp.f32 %v3410_v59  ;;  %v605_v60 = vmul.f32 %v3406_v36, %v604_v24  ;;  %v643_v50 = vand.u32 2147483648, %v3410_v59  ;;  %v641_v0 = vand.u32 2147483647, %v3410_v59  ;;  %vm3463_vm15 = vmor %vm622_vm9, %vm623_vm12  ;;  %v3645_v24 = vld [vmem:[%s4318_s3 + $0x40] sm:$0xff] }
 0x1bb   :  { %v619_v13 = vsub.f32 1.0, %v618_v5  ;;  %v611_v5 = vand.u32 2147483647, %v3383_v41  ;;  %vm637_vm4 = vweird.f32 %v3410_v59  ;;  %vm3477_vm12 = vmor %vm607_vm8, %vm608_vm1  ;;  %vm547_vm9 = vweird.f32 %v3373_v34 }
 0x1bc   :  { %v606_v2 = vadd.f32 %v3406_v36, %v605_v60  ;;  %v644_v41 = vor.u32 1.1754944e-38, %v643_v50  ;;  %vm627_vm1 = vcmp.eq.f32.partialorder %v626_v55, 8.507059e+37  ;;  %v614_v23 = vor.u32 1.1754944e-38, %v613_v39 }
 0x1bd   :  { %v620_v29 = vmul.f32 %v3408_v57, %v619_v13  ;;  %v591_v13 = vadd.f32 %v3404_v54, %v590_v45  ;;  %v561_v26 = vadd.f32 %v3400_v6, %v560_v40  ;;  %v546_v40 = vadd.f32 %v3397_v38, %v3437_v42 }
 0x1be   :  { %v610_v19 = vsel %vm3477_vm12, %v3406_v36, %v606_v2 }
 0x1bf   :  { %v621_v58 = vadd.f32 %v3408_v57, %v620_v29 }
 0x1c0   :  { %v2805_v31 = vpop.eup %2804 }
 0x1c1   :  { %v633_v33 = vmul.f32 %v2805_v31, %v3410_v59  ;;  %vm638_vm13 = vweird.f32 %v2805_v31  ;;  %v625_v14 = vsel %vm3463_vm15, %v3408_v57, %v621_v58  ;;  %v629_v59 = vor.u32 1.1754944e-38, %v628_v51 }
 0x1c2   :  { %vm639_vm3 = vmor %vm637_vm4, %vm638_vm13  ;;  %v576_v57 = vadd.f32 %v3402_v37, %v575_v8  ;;  %vm642_vm15 = vcmp.eq.f32.partialorder %v641_v0, 8.507059e+37  ;;  %vm532_vm13 = vweird.f32 %v3370_v61 }
 0x1c3   :  { %v634_v32 = vsub.f32 1.0, %v633_v33  ;;  %v630_v22 = vsel %vm627_vm1, %v629_v59, %v625_v14  ;;  %vm3494_vm4 = vmor %vm592_vm2, %vm593_vm7  ;;  %vm597_vm2 = vcmp.eq.f32.partialorder %v596_v46, 8.507059e+37  ;;  %v553_v46 = vand.u32 2147483648, %v3373_v34  ;;  %v3600_v59 = vld [vmem:[%s4318_s3 + $0x20] sm:$0xff] }
 0x1c4   :  { %v595_v36 = vsel %vm3494_vm4, %v3404_v54, %v591_v13  ;;  %vm3508_vm7 = vmor %vm577_vm5, %vm578_vm0  ;;  %v653_v33 = vmul.f32 %v630_v22, %v3368_v44  ;;  %v551_v44 = vand.u32 2147483647, %v3373_v34  ;;  %vm582_vm5 = vcmp.eq.f32.partialorder %v581_v35, 8.507059e+37  ;;  %v3586_v13 = vld [vmem:[%s4328_s13 + $0x8] sm:$0xff]  ;;  %1148 = vmatpush.msra.mxu3 %v3600_v59  ;;  %1477 = vmatpush.msrb.mxu1 %v3600_v59  ;;  %v3632_v22 = vld [vmem:[%s4318_s3] sm:$0xff] }
 0x1c5   :  { %v635_v56 = vmul.f32 %v2805_v31, %v634_v32  ;;  %v580_v54 = vsel %vm3508_vm7, %v3402_v37, %v576_v57  ;;  %v600_v60 = vsel %vm597_vm2, %v599_v30, %v595_v36  ;;  %vm3524_vm0 = vmor %vm562_vm10, %vm563_vm6  ;;  %v536_v35 = vand.u32 2147483647, %v3370_v61  ;;  %v657_v57 = vld [vmem:[%s4329_s14 + $0x10] sm:$0xff]  ;;  %v3668_v30 = vld [vmem:[%s4318_s3 + $0x28] sm:$0xff] }
 0x1c6   :  { %v565_v42 = vsel %vm3524_vm0, %v3400_v6, %v561_v26  ;;  %v585_v8 = vsel %vm582_vm5, %v584_v43, %v580_v54  ;;  %vm3542_vm6 = vmor %vm547_vm9, %vm548_vm14  ;;  %v651_v48 = vmul.f32 %v600_v60, %v3358_v10  ;;  %v554_v34 = vor.u32 1.1754944e-38, %v553_v46  ;;  %1149 = vmatpush.msra.mxu3 %v3605_v17  ;;  %1478 = vmatpush.msrb.mxu1 %v3605_v17  ;;  %v70_v26 = vpop.permute.xlu0 %69 }
 0x1c7   :  { %v636_v12 = vadd.f32 %v2805_v31, %v635_v56  ;;  %v550_v6 = vsel %vm3542_vm6, %v3397_v38, %v546_v40  ;;  %vm534_vm14 = vmor %vm532_vm13, %vm533_vm11  ;;  %v650_v50 = vmul.f32 %v585_v8, %v3355_v1  ;;  %vm552_vm8 = vcmp.eq.f32.partialorder %v551_v44, 8.507059e+37  ;;  %v655_v1 = vld [vmem:[%s4329_s14] sm:$0xff] }
 0x1c8   :  { %v555_v51 = vsel %vm552_vm8, %v554_v34, %v550_v6  ;;  %vm537_vm12 = vcmp.eq.f32.partialorder %v536_v35, 8.507059e+37  ;;  %vm4372_vm11 = vcmask 523264   ;;  %v2902_v14 = vmov 2   ;;  %v3705_v34 = vld [vmem:[%s4328_s13 + $0x18] sm:$0xff] }
 0x1c9   :  { %v640_v18 = vsel %vm639_vm3, %v2805_v31, %v636_v12  ;;  %vm612_vm3 = vcmp.eq.f32.partialorder %v611_v5, 8.507059e+37  ;;  %v566_v31 = vand.u32 2147483647, %v3375_v47  ;;  %vm4373_vm9 = vmmov %vm4372_vm11  ;;  %v674_v5 = vpop.permute.xlu2 %673  ;;  %vm4375_vm4 = vcmask 15360  }
 0x1ca   :  { %v645_v20 = vsel %vm642_vm15, %v644_v41, %v640_v18  ;;  %v615_v29 = vsel %vm612_vm3, %v614_v23, %v610_v19  ;;  %v664_v41 = vld [vmem:[%s4330_s15 + $0x8] sm:$0xff]  ;;  %vm4374_vm1 = vmmov %vm4373_vm9  ;;  %v3615_v18 = vld [vmem:[%s4318_s3 + $0x10] sm:$0xff]  ;;  %vm4376_vm3 = vcmask 146432   ;;  %vm85_vm7 = vcmask 162816  }
 0x1cb   :  { %v654_v25 = vmul.f32 %v645_v20, %v3387_v7  ;;  %v568_v7 = vand.u32 2147483648, %v3375_v47  ;;  %v652_v37 = vmul.f32 %v615_v29, %v3363_v52  ;;  %v531_v47 = vadd.f32 %v3395_v53, %v3440_v9  ;;  %v3622_v19 = vld [vmem:[%s4318_s3 + $0x8] sm:$0xff]  ;;  %1150 = vmatpush.msra.mxu3 %v3615_v18  ;;  %1479 = vmatpush.msrb.mxu1 %v3615_v18  ;;  %v3663_v29 = vld [vmem:[%s4318_s3 + $0x30] sm:$0xff]  ;;  %vm4377_vm5 = vmmov %vm4375_vm4 }
 0x1cc   :  { %v538_v52 = vand.u32 2147483648, %v3370_v61  ;;  %vm567_vm10 = vcmp.eq.f32.partialorder %v566_v31, 8.507059e+37  ;;  %v648_v61 = vmul.f32 %v555_v51, %v3351_v62  ;;  %v2741_v62 = vld [vmem:[%s4324_s9 + $0x1] ss:$0 sm:$0xff]  ;;  %v3637_v23 = vld [vmem:[%s4318_s3 + $0x48] sm:$0xff]  ;;  %v83_v31 = vpop.permute.xlu1 %82  ;;  %vm1133_vm0 = vcmask 326656   ;;  %vm4378_vm6 = vmmov %vm4376_vm3 }
 0x1cd   :  { %743 = vmatpush.msra.mxu2 %v654_v25  ;;  %v569_v32 = vor.u32 1.1754944e-38, %v568_v7  ;;  %v535_v55 = vsel %vm534_vm14, %v3395_v53, %v531_v47  ;;  %v656_v53 = vld [vmem:[%s4329_s14 + $0x8] sm:$0xff]  ;;  %1151 = vmatpush.msra.mxu3 %v3622_v19  ;;  %v73_v25 = vsel %vm4375_vm4, %v3318_v63, %v3326_v16  ;;  %vm4379_vm13 = vmmov %vm4374_vm1 }
 0x1ce   :  { %v539_v10 = vor.u32 1.1754944e-38, %v538_v52  ;;  %1480 = vmatpush.msrb.mxu1 %v3622_v19  ;;  %v75_v49 = vsel %vm4376_vm3, %v73_v25, %v70_v26  ;;  %v97_v54 = vpop.permute.xlu0 %96  ;;  %vm4380_vm14 = vmmov %vm4374_vm1  ;;  %v3779_v26 = vld [vmem:[%s4328_s13 + $0x38] sm:$0xff] }
 0x1cf   :  { %744 = vmatpush.msra.mxu2 %v653_v33  ;;  %v570_v9 = vsel %vm567_vm10, %v569_v32, %v565_v42  ;;  %1152 = vmatpush.msra.mxu3 %v3632_v22  ;;  %v86_v63 = vsel %vm85_vm7, %v75_v49, %v83_v31  ;;  %vm1193_vm10 = vcmask 195584   ;;  %vm4383_vm3 = vmmov %vm4374_vm1 }
 0x1d0   :  { %v649_v56 = vmul.f32 %v570_v9, %v3353_v28  ;;  %v540_v38 = vsel %vm537_vm12, %v539_v10, %v535_v55  ;;  %1481 = vmatpush.msrb.mxu1 %v3632_v22  ;;  %v93_v7 = vperm.slane %v86_v63, 0  ;;  %v3695_v9 = vld [vmem:[%s4328_s13 + $0x10] sm:$0xff]  ;;  %v658_v55 = vld [vmem:[%s4329_s14 + $0x18] sm:$0xff] }
 0x1d1   :  { %745 = vmatpush.msra.mxu2 %v652_v37  ;;  %v647_v0 = vmul.f32 %v540_v38, %v3349_v27  ;;  %v91_v20 = vpop.permute.xlu2 %90  ;;  %1174 = vmatpush.msrb.mxu3 %v3637_v23 }
 0x1d2   :  { %v94_v33 = vmul.f32 %v93_v7, %v91_v20 }
 0x1d3   :  { %746 = vmatpush.msra.mxu2 %v651_v48  ;;  %1175 = vmatpush.msrb.mxu3 %v3645_v24 }
 0x1d4   :  { %v99_v60 = vadd.f32 %v97_v54, %v94_v33 }
 0x1d5   :  { %747 = vmatpush.msra.mxu2 %v650_v50  ;;  %1176 = vmatpush.msrb.mxu3 %v3651_v11  ;;  %v665_v50 = vld [vmem:[%s4330_s15 + $0x10] sm:$0xff] }
 0x1d6   :  { %v101_v43 = vmul.f32 0.4, %v99_v60  ;;  %vm100_vm2 = vcmp.ge.f32.partialorder %v99_v60, 0.0 }
 0x1d7   :  { %748 = vmatpush.msra.mxu2 %v649_v56  ;;  %1177 = vmatpush.msrb.mxu3 %v3663_v29 }
 0x1d8   :  { %v3680_v46 = vsel %vm100_vm2, %v99_v60, %v101_v43 }
 0x1d9   :  { %749 = vmatpush.msra.mxu2 %v648_v61  ;;  %1178 = vmatpush.msrb.mxu3 %v3668_v30 }
 0x1db   :  { %750 = vmatpush.msra.mxu2 %v647_v0 }
 0x1dc   :  { %2545 = vmatmul.msk.f32.vlgmr.msra.gmra.mxu2 %vm4372_vm11, %v655_v1 }
 0x1dd   :  { %1497 = vmatpush.msrb.mxu2 %v3637_v23 }
 0x1df   :  { %1498 = vmatpush.msrb.mxu2 %v3645_v24 }
 0x1e1   :  { %1499 = vmatpush.msrb.mxu2 %v3651_v11 }
 0x1e3   :  { %1500 = vmatpush.msrb.mxu2 %v3663_v29 }
 0x1e4   :  { %2546 = vmatmul.msk.f32.gmra.mxu2 %vm4373_vm9, %v656_v53  ;;  %v3729_v53 = vld [vmem:[%s4328_s13 + $0x20] sm:$0xff] }
 0x1e5   :  { %1501 = vmatpush.msrb.mxu2 %v3668_v30 }
 0x1ec   :  { %2547 = vmatmul.msk.f32.gmra.mxu2 %vm4374_vm1, %v657_v57 }
 0x1f4   :  { %2548 = vmatmul.msk.f32.gmra.mxu2 %vm4379_vm13, %v658_v55 }
 0x20d   :  { %v910_v28 = vpop.f32.mrf.mxu3 }
 0x20e   :  { %v911_v2 = vadd.f32 %v2741_v62, %v910_v28  ;;  %v3738_v28 = vld [vmem:[%s4328_s13 + $0x28] sm:$0xff] }
 0x210   :  { %v914_v27 = vmul.f32 0.4, %v911_v2  ;;  %vm913_vm15 = vcmp.ge.f32.partialorder %v911_v2, 0.0 }
 0x212   :  { %v915_v4 = vsel %vm913_vm15, %v911_v2, %v914_v27  ;;  %v1183_v2 = vld [vmem:[%s4326_s11] sm:$0xff]  ;;  %v1184_v27 = vld [vmem:[%s4326_s11 + $0x8] sm:$0xff]  ;;  %vm4381_vm15 = vcmask 64512  }
 0x213   :  { %917 = vrot.lane.b32.xlu0 %v915_v4, %s2899_s26  ;;  %vm4382_vm4 = vmmov %vm4381_vm15 }
 0x25f   :  { %v752_v39 = vpop.f32.mrf.mxu2 }
 0x260   :  { %v753_v12 = vadd.f32 %v752_v39, %v674_v5  ;;  %v659_v5 = vld [vmem:[%s4329_s14 + $0x20] sm:$0xff] }
 0x261   :  { %2549 = vmatmul.msk.f32.gmra.mxu2 %vm4380_vm14, %v659_v5 }
 0x262   :  { %817 = vperm.xlu2 %2678, %v753_v12   ;;  %778 = vperm.xlu1 %2677, %v753_v12  }
 0x267   :  { %v755_v8 = vpop.f32.mrf.mxu2 }
 0x26a   :  { %923 = vrot.lane.b32.xlu2 %v915_v4, %s2900_s27  ;;  %920 = vrot.lane.b32.xlu1 %v915_v4, %s2898_s25  ;;  %v666_v4 = vld [vmem:[%s4330_s15 + $0x18] sm:$0xff]  ;;  %s2906_s25 = smov 126   ;;  %s2907_s27 = smov 125  }
 0x26b   :  { %2680 = vset.pattern.permute.xlu2 %v2902_v14  ;;  %2679 = vset.pattern.permute.xlu1 %v2896_v21 }
 0x26f   :  { %v758_v38 = vpop.f32.mrf.mxu2 }
 0x272   :  { %1048 = vperm.xlu2 %2680, %v3579_v15   ;;  %952 = vperm.xlu1 %2679, %v3579_v15  }
 0x277   :  { %v761_v57 = vpop.f32.mrf.mxu2 }
 0x27a   :  { %1052 = vperm.xlu2 %2680, %v3586_v13   ;;  %957 = vperm.xlu1 %2679, %v3586_v13  }
 0x282   :  { %2683 = vset.pattern.permute.xlu2 %v4340_v3  ;;  %2682 = vset.pattern.permute.xlu1 %v4340_v3 }
 0x283   :  { %678 = vperm.xlu2 %2683, %v664_v41   ;;  %1190 = vperm.xlu1 %2682, %v3586_v13  }
 0x285   :  { %v918_v47 = vpop.permute.xlu0 %917 }
 0x28b   :  { %2685 = vset.pattern.permute.xlu2 %v2896_v21 }
 0x2bc   :  { %v818_v36 = vpop.permute.xlu2 %817 }
 0x2c4   :  { %v924_v16 = vpop.permute.xlu2 %923 }
 0x2cc   :  { %v3676_v40 = vpop.permute.xlu2 %1048 }
 0x2d4   :  { %v779_v45 = vpop.permute.xlu1 %778  ;;  %v3678_v44 = vpop.permute.xlu2 %1052 }
 0x2d5   :  { %v848_v37 = vsel %vm85_vm7, %v779_v45, %v818_v36  ;;  %v3770_v36 = vld [vmem:[%s4328_s13 + $0x30] sm:$0xff] }
 0x2d6   :  { %v1127_v42 = vadd.f32 %v848_v37, %v3680_v46 }
 0x2d8   :  { %2555 = vmatmul.msk.f32.vlgmr.msra.gmra.mxu3 %vm1133_vm0, %v1127_v42 }
 0x2dc   :  { %v921_v32 = vpop.permute.xlu1 %920 }
 0x2dd   :  { %v926_v58 = vsel %vm4377_vm5, %v918_v47, %v921_v32  ;;  %v679_v52 = vpop.permute.xlu2 %678  ;;  %v2903_v47 = vmov 3   ;;  %vm4384_vm5 = vmmov %vm4374_vm1 }
 0x2de   :  { %v3687_v48 = vsel %vm4378_vm6, %v926_v58, %v924_v16  ;;  %v756_v6 = vadd.f32 %v755_v8, %v679_v52  ;;  %v667_v16 = vld [vmem:[%s4330_s15 + $0x20] sm:$0xff] }
 0x2df   :  { %v929_v35 = vrot.slane %v3687_v48, 1 }
 0x2e0   :  { %2561 = vmatmul.msk.f32.vlgmr.msrb.gmra.mxu3 %vm1133_vm0, %v1127_v42  ;;  %821 = vperm.xlu2 %2685, %v756_v6  }
 0x2e1   :  { %783 = vperm.xlu1 %2682, %v756_v6   ;;  %930 = vrot.lane.b32.xlu0 %v929_v35, %s2901_s29 }
 0x2e4   :  { %v953_v7 = vpop.permute.xlu1 %952 }
 0x2e8   :  { %2687 = vset.pattern.permute.xlu2 %v2902_v14 }
 0x2e9   :  { %2686 = vset.pattern.permute.xlu1 %v2896_v21  ;;  %1056 = vperm.xlu2 %2687, %v3695_v9  }
 0x2ea   :  { %962 = vperm.xlu1 %2686, %v3695_v9   ;;  %1186 = vperm.xlu0 %2681, %v3579_v15  }
 0x2ec   :  { %v958_v8 = vpop.permute.xlu1 %957 }
 0x2f1   :  { %1060 = vperm.xlu2 %2687, %v3705_v34  }
 0x2f2   :  { %967 = vperm.xlu1 %2686, %v3705_v34   ;;  %2684 = vset.pattern.permute.xlu0 %v2903_v47 }
 0x2f3   :  { %1249 = vperm.xlu0 %2684, %v3579_v15  }
 0x2f9   :  { %2690 = vset.pattern.permute.xlu2 %v4340_v3 }
 0x2fa   :  { %683 = vperm.xlu2 %2690, %v665_v50   ;;  %2689 = vset.pattern.permute.xlu1 %v4340_v3 }
 0x2fb   :  { %1358 = vperm.xlu1 %2689, %v3705_v34   ;;  %2688 = vset.pattern.permute.xlu0 %v4340_v3 }
 0x2fc   :  { %1354 = vperm.xlu0 %2688, %v3695_v9  }
 0x302   :  { %2692 = vset.pattern.permute.xlu2 %v2896_v21 }
 0x304   :  { %2691 = vset.pattern.permute.xlu0 %v2903_v47 }
 0x305   :  { %1417 = vperm.xlu0 %2691, %v3695_v9   ;;  %v1246_v9 = vld [vmem:[%s4327_s12] sm:$0xff] }
 0x30d   :  { %2695 = vset.pattern.permute.xlu0 %v4340_v3 }
 0x30e   :  { %1510 = vperm.xlu0 %2695, %v3729_v53  }
 0x316   :  { %2698 = vset.pattern.permute.xlu0 %v2903_v47 }
 0x317   :  { %1573 = vperm.xlu0 %2698, %v3729_v53  }
 0x31f   :  { %2702 = vset.pattern.permute.xlu0 %v4340_v3 }
 0x320   :  { %1666 = vperm.xlu0 %2702, %v3770_v36  }
 0x328   :  { %2705 = vset.pattern.permute.xlu0 %v2903_v47 }
 0x329   :  { %1729 = vperm.xlu0 %2705, %v3770_v36  }
 0x331   :  { %2709 = vset.pattern.permute.xlu0 %v4340_v3 }
 0x33a   :  { %v3720_v51 = vpop.permute.xlu2 %821 }
 0x343   :  { %v3722_v10 = vpop.permute.xlu2 %1056 }
 0x34b   :  { %v3724_v56 = vpop.permute.xlu2 %1060 }
 0x353   :  { %v931_v49 = vpop.permute.xlu0 %930 }
 0x354   :  { %v684_v61 = vpop.permute.xlu2 %683  ;;  %v933_v31 = vsel %vm85_vm7, %v3687_v48, %v931_v49  ;;  %v1191_v48 = vpop.permute.xlu1 %1190 }
 0x355   :  { %v759_v0 = vadd.f32 %v758_v38, %v684_v61  ;;  %v3785_v63 = vperm.slane %v933_v31, 0  ;;  %v3834_v31 = vld [vmem:[%s4318_s3 + $0x98] sm:$0xff] }
 0x356   :  { %1341 = vmatpush.msrb.mxu0 %v3834_v31 }
 0x357   :  { %825 = vperm.xlu2 %2692, %v759_v0   ;;  %788 = vperm.xlu1 %2689, %v759_v0   ;;  %v1031_v33 = vmul.f32 %v3785_v63, %v953_v7  ;;  %v3845_v7 = vld [vmem:[%s4318_s3 + $0x88] sm:$0xff] }
 0x359   :  { %v1111_v43 = vadd.f32 %v3676_v40, %v1031_v33  ;;  %v1032_v40 = vmul.f32 %v3785_v63, %v958_v8  ;;  %v3885_v8 = vld [vmem:[%s4318_s3 + $0x60] sm:$0xff] }
 0x35b   :  { %v1154_v1 = vpop.f32.mrf.mxu3  ;;  %v1112_v35 = vadd.f32 %v3678_v44, %v1032_v40  ;;  %v3908_v40 = vld [vmem:[%s4318_s3 + $0x78] sm:$0xff] }
 0x35c   :  { %v1187_v54 = vpop.permute.xlu0 %1186 }
 0x35f   :  { %2694 = vset.pattern.permute.xlu2 %v2902_v14  ;;  %2693 = vset.pattern.permute.xlu1 %v2896_v21 }
 0x360   :  { %1064 = vperm.xlu2 %2694, %v3729_v53   ;;  %972 = vperm.xlu1 %2693, %v3729_v53  }
 0x363   :  { %v1180_v62 = vpop.f32.mrf.mxu3 }
 0x364   :  { %1213 = vmatpush.msra.mxu3 %v1180_v62 }
 0x366   :  { %1214 = vmatpush.msra.mxu3 %v1127_v42 }
 0x368   :  { %1215 = vmatpush.msra.mxu3 %v1154_v1  ;;  %1068 = vperm.xlu2 %2694, %v3738_v28  }
 0x369   :  { %977 = vperm.xlu1 %2693, %v3738_v28   ;;  %2562 = vmatmul.msk.f32.vlgmr.msra.gmra.mxu3 %vm1193_vm10, %v1183_v2 }
 0x370   :  { %2697 = vset.pattern.permute.xlu2 %v4340_v3 }
 0x371   :  { %2563 = vmatmul.msk.f32.gmra.mxu3 %vm1193_vm10, %v1184_v27  ;;  %688 = vperm.xlu2 %2697, %v666_v4  }
 0x372   :  { %2696 = vset.pattern.permute.xlu1 %v4340_v3 }
 0x373   :  { %1514 = vperm.xlu1 %2696, %v3738_v28  }
 0x379   :  { %2699 = vset.pattern.permute.xlu2 %v2896_v21 }
 0x3b1   :  { %v3761_v39 = vpop.permute.xlu2 %825 }
 0x3ba   :  { %v3763_v12 = vpop.permute.xlu2 %1064 }
 0x3c2   :  { %v3765_v41 = vpop.permute.xlu2 %1068 }
 0x3cb   :  { %v689_v20 = vpop.permute.xlu2 %688 }
 0x3cc   :  { %v762_v25 = vadd.f32 %v761_v57, %v689_v20  ;;  %v660_v57 = vld [vmem:[%s4329_s14 + $0x28] sm:$0xff] }
 0x3cd   :  { %2550 = vmatmul.msk.f32.gmra.mxu2 %vm4374_vm1, %v660_v57  ;;  %v669_v57 = vld [vmem:[%s4330_s15 + $0x30] sm:$0xff] }
 0x3ce   :  { %829 = vperm.xlu2 %2699, %v762_v25   ;;  %793 = vperm.xlu1 %2696, %v762_v25   ;;  %v942_v25 = vld [vmem:[%s4328_s13 + $0x40] sm:$0xff] }
 0x3cf   :  { %1822 = vperm.xlu0 %2709, %v942_v25  }
 0x3d6   :  { %2701 = vset.pattern.permute.xlu2 %v2902_v14  ;;  %2700 = vset.pattern.permute.xlu1 %v2896_v21 }
 0x3d7   :  { %1072 = vperm.xlu2 %2701, %v3770_v36   ;;  %982 = vperm.xlu1 %2700, %v3770_v36   ;;  %v3839_v36 = vld [vmem:[%s4318_s3 + $0x90] sm:$0xff] }
 0x3d8   :  { %2712 = vset.pattern.permute.xlu0 %v2903_v47  ;;  %1342 = vmatpush.msrb.mxu0 %v3839_v36 }
 0x3d9   :  { %1885 = vperm.xlu0 %2712, %v942_v25  }
 0x3da   :  { %1343 = vmatpush.msrb.mxu0 %v3845_v7 }
 0x3df   :  { %1076 = vperm.xlu2 %2701, %v3779_v26   ;;  %987 = vperm.xlu1 %2700, %v3779_v26  }
 0x3e1   :  { %2716 = vset.pattern.permute.xlu0 %v4340_v3 }
 0x3e7   :  { %2704 = vset.pattern.permute.xlu2 %v4340_v3  ;;  %2703 = vset.pattern.permute.xlu1 %v4340_v3 }
 0x3e8   :  { %693 = vperm.xlu2 %2704, %v667_v16   ;;  %1670 = vperm.xlu1 %2703, %v3779_v26   ;;  %v764_v16 = vpop.f32.mrf.mxu2 }
 0x3ec   :  { %v1217_v60 = vpop.f32.mrf.mxu3 }
 0x3ed   :  { %v1218_v45 = vadd.f32 %v1217_v60, %v1187_v54  ;;  %v3855_v60 = vld [vmem:[%s4328_s13 + $0x48] sm:$0xff] }
 0x3ef   :  { %v1223_v37 = vadd.f32 %v1218_v45, %v1111_v43  ;;  %v668_v43 = vld [vmem:[%s4330_s15 + $0x28] sm:$0xff]  ;;  %v3869_v45 = vld [vmem:[%s4318_s3 + $0x70] sm:$0xff] }
 0x3f0   :  { %2706 = vset.pattern.permute.xlu2 %v2896_v21 }
 0x3f1   :  { %v2564_v42 = vmul.f32 -1.442695, %v1223_v37  ;;  %v1247_v37 = vld [vmem:[%s4327_s12 + $0x8] sm:$0xff] }
 0x3f3   :  { %2806 = vpow2.f32 %v2564_v42  ;;  %v3879_v42 = vld [vmem:[%s4318_s3 + $0x68] sm:$0xff] }
 0x3f4   :  { %v1220_v52 = vpop.f32.mrf.mxu3 }
 0x3f5   :  { %v1221_v6 = vadd.f32 %v1220_v52, %v1191_v48  ;;  %v3901_v52 = vld [vmem:[%s4318_s3 + $0x50] sm:$0xff] }
 0x3f6   :  { %v661_v48 = vld [vmem:[%s4329_s14 + $0x30] sm:$0xff] }
 0x3f7   :  { %v1224_v55 = vadd.f32 %v1221_v6, %v1112_v35  ;;  %2551 = vmatmul.msk.f32.gmra.mxu2 %vm4383_vm3, %v661_v48  ;;  %v1250_v6 = vpop.permute.xlu0 %1249  ;;  %v2579_v48 = vld [vmem:[%s4326_s11 + $0x10] sm:$0xff] }
 0x3f9   :  { %v2807_v32 = vpop.eup %2806 }
 0x3fa   :  { %v1228_v58 = vadd.f32 1.0, %v2807_v32  ;;  %v3891_v32 = vld [vmem:[%s4318_s3 + $0x80] sm:$0xff] }
 0x3fb   :  { %1344 = vmatpush.msrb.mxu0 %v3891_v32 }
 0x3fc   :  { %2808 = vrcp.f32 %v1228_v58  ;;  %v1240_v61 = vand.u32 2147483648, %v1228_v58  ;;  %v1238_v1 = vand.u32 2147483647, %v1228_v58  ;;  %vm1234_vm12 = vweird.f32 %v1228_v58 }
 0x3fd   :  { %2810 = vtanh.f32 %v1224_v55  ;;  %1345 = vmatpush.msrb.mxu0 %v3908_v40 }
 0x3fe   :  { %v1241_v2 = vor.u32 1.1754944e-38, %v1240_v61  ;;  %vm1239_vm9 = vcmp.eq.f32.partialorder %v1238_v1, 8.507059e+37  ;;  %v784_v61 = vpop.permute.xlu1 %783 }
 0x3ff   :  { %v849_v1 = vsel %vm85_vm7, %v784_v61, %v3720_v51  ;;  %v947_v61 = vld [vmem:[%s4328_s13 + $0x68] sm:$0xff] }
 0x402   :  { %v2809_v50 = vpop.eup %2808 }
 0x403   :  { %v1230_v38 = vmul.f32 %v2809_v50, %v1228_v58  ;;  %vm1235_vm8 = vweird.f32 %v2809_v50  ;;  %v2811_v44 = vpop.eup %2810  ;;  %v3896_v58 = vld [vmem:[%s4318_s3 + $0x58] sm:$0xff] }
 0x404   :  { %vm1236_vm11 = vmor %vm1234_vm12, %vm1235_vm8 }
 0x405   :  { %v1231_v15 = vsub.f32 1.0, %v1230_v38  ;;  %vm4386_vm12 = vmmov %vm4382_vm4 }
 0x407   :  { %v1232_v0 = vmul.f32 %v2809_v50, %v1231_v15 }
 0x409   :  { %v1233_v62 = vadd.f32 %v2809_v50, %v1232_v0 }
 0x40b   :  { %v1237_v27 = vsel %vm1236_vm11, %v2809_v50, %v1233_v62  ;;  %vm4387_vm11 = vmmov %vm4382_vm4 }
 0x40c   :  { %v1242_v4 = vsel %vm1239_vm9, %v1241_v2, %v1237_v27  ;;  %v944_v27 = vld [vmem:[%s4328_s13 + $0x50] sm:$0xff] }
 0x40d   :  { %v1245_v5 = vmul.f32 %v2811_v44, %v1242_v4  ;;  %1978 = vperm.xlu0 %2716, %v944_v27  }
 0x40f   :  { %1277 = vmatpush.msrb.mxu3 %v1245_v5 }
 0x410   :  { %2565 = vmatmul.msk.f32.vlgmr.msrb.gmra.mxu3 %vm4381_vm15, %v1246_v9  ;;  %v3940_v9 = vld [vmem:[%s4328_s13 + $0x58] sm:$0xff] }
 0x411   :  { %1315 = vmatpush.msra.mxu3 %v3869_v45 }
 0x413   :  { %1316 = vmatpush.msra.mxu3 %v3879_v42 }
 0x415   :  { %1317 = vmatpush.msra.mxu3 %v3885_v8  ;;  %2719 = vset.pattern.permute.xlu0 %v2903_v47 }
 0x416   :  { %2041 = vperm.xlu0 %2719, %v944_v27  }
 0x417   :  { %1318 = vmatpush.msra.mxu3 %v3896_v58 }
 0x418   :  { %2566 = vmatmul.msk.f32.gmra.mxu3 %vm4382_vm4, %v1247_v37 }
 0x419   :  { %1319 = vmatpush.msra.mxu3 %v3901_v52 }
 0x41e   :  { %2723 = vset.pattern.permute.xlu0 %v4340_v3 }
 0x428   :  { %v3819_v20 = vpop.permute.xlu2 %829 }
 0x431   :  { %v3826_v49 = vpop.permute.xlu2 %1072 }
 0x439   :  { %v3828_v53 = vpop.permute.xlu2 %1076 }
 0x442   :  { %v694_v33 = vpop.permute.xlu2 %693 }
 0x443   :  { %v765_v54 = vadd.f32 %v764_v16, %v694_v33 }
 0x445   :  { %833 = vperm.xlu2 %2706, %v765_v54   ;;  %798 = vperm.xlu1 %2703, %v765_v54   ;;  %v946_v54 = vld [vmem:[%s4328_s13 + $0x60] sm:$0xff] }
 0x446   :  { %2134 = vperm.xlu0 %2723, %v946_v54  }
 0x44d   :  { %2708 = vset.pattern.permute.xlu2 %v2902_v14  ;;  %2707 = vset.pattern.permute.xlu1 %v2896_v21 }
 0x44e   :  { %1080 = vperm.xlu2 %2708, %v942_v25   ;;  %992 = vperm.xlu1 %2707, %v942_v25   ;;  %v662_v25 = vld [vmem:[%s4329_s14 + $0x38] sm:$0xff] }
 0x44f   :  { %2552 = vmatmul.msk.f32.gmra.mxu2 %vm4384_vm5, %v662_v25  ;;  %2726 = vset.pattern.permute.xlu0 %v2903_v47 }
 0x450   :  { %v767_v51 = vpop.f32.mrf.mxu2  ;;  %2197 = vperm.xlu0 %2726, %v946_v54  }
 0x456   :  { %1084 = vperm.xlu2 %2708, %v3855_v60   ;;  %997 = vperm.xlu1 %2707, %v3855_v60  }
 0x458   :  { %2730 = vset.pattern.permute.xlu0 %v4340_v3 }
 0x45e   :  { %2711 = vset.pattern.permute.xlu2 %v4340_v3  ;;  %2710 = vset.pattern.permute.xlu1 %v4340_v3 }
 0x45f   :  { %698 = vperm.xlu2 %2711, %v668_v43   ;;  %1826 = vperm.xlu1 %2710, %v3855_v60  }
 0x467   :  { %2713 = vset.pattern.permute.xlu2 %v2896_v21 }
 0x493   :  { %v1279_v35 = vpop.f32.mrf.mxu3 }
 0x494   :  { %v1280_v50 = vadd.f32 %v1279_v35, %v1250_v6 }
 0x496   :  { %vm1285_vm2 = vcmp.ge.f32.partialorder %v1280_v50, 0.0  ;;  %v1287_v55 = vmul.f32 0.4, %v1280_v50 }
 0x498   :  { %v1289_v38 = vsel %vm1285_vm2, %v1280_v50, %v1287_v55  ;;  %v2580_v50 = vld [vmem:[%s4326_s11 + $0x18] sm:$0xff]  ;;  %v770_v55 = vpop.f32.mrf.mxu2  ;;  %vm4388_vm2 = vmmov %vm4387_vm11 }
 0x499   :  { %v1291_v15 = vadd.f32 %v1289_v38, %v3680_v46  ;;  %vm4389_vm5 = vmmov %vm4388_vm2 }
 0x49b   :  { %v3917_v0 = vmul.f32 0.70710677, %v1291_v15  ;;  %v3957_v33 = vpop.f32.mrf.mxu3 }
 0x49d   :  { %v1294_v62 = vadd.f32 %v3917_v0, %v849_v1  ;;  %v670_v1 = vld [vmem:[%s4330_s15 + $0x38] sm:$0xff] }
 0x49f   :  { %2572 = vmatmul.msk.f32.vlgmr.msra.gmra.mxu3 %vm1133_vm0, %v1294_v62  ;;  %2578 = vmatmul.msk.f32.vlgmr.msrb.gmra.mxu0 %vm1133_vm0, %v1294_v62  ;;  %v3924_v2 = vpop.permute.xlu2 %833 }
 0x4a8   :  { %v3929_v46 = vpop.permute.xlu2 %1080 }
 0x4b0   :  { %v3932_v44 = vpop.permute.xlu2 %1084 }
 0x4b9   :  { %v699_v4 = vpop.permute.xlu2 %698 }
 0x4ba   :  { %v768_v5 = vadd.f32 %v767_v51, %v699_v4 }
 0x4bc   :  { %837 = vperm.xlu2 %2713, %v768_v5   ;;  %803 = vperm.xlu1 %2710, %v768_v5   ;;  %v963_v5 = vpop.permute.xlu1 %962 }
 0x4c4   :  { %2715 = vset.pattern.permute.xlu2 %v2902_v14  ;;  %2714 = vset.pattern.permute.xlu1 %v2896_v21 }
 0x4c5   :  { %1088 = vperm.xlu2 %2715, %v944_v27   ;;  %1002 = vperm.xlu1 %2714, %v944_v27   ;;  %v948_v27 = vld [vmem:[%s4328_s13 + $0x70] sm:$0xff] }
 0x4c6   :  { %2290 = vperm.xlu0 %2730, %v948_v27  }
 0x4cd   :  { %1092 = vperm.xlu2 %2715, %v3940_v9   ;;  %1007 = vperm.xlu1 %2714, %v3940_v9  }
 0x4ce   :  { %2733 = vset.pattern.permute.xlu0 %v2903_v47 }
 0x4cf   :  { %1421 = vperm.xlu0 %2733, %v3705_v34  }
 0x4d2   :  { %v773_v25 = vpop.f32.mrf.mxu2 }
 0x4d5   :  { %2718 = vset.pattern.permute.xlu2 %v4340_v3  ;;  %2717 = vset.pattern.permute.xlu1 %v4340_v3 }
 0x4d6   :  { %703 = vperm.xlu2 %2718, %v669_v57   ;;  %1982 = vperm.xlu1 %2717, %v3940_v9   ;;  %v1033_v57 = vmul.f32 %v3785_v63, %v963_v5 }
 0x4d7   :  { %2201 = vperm.xlu0 %2733, %v947_v61  }
 0x4de   :  { %2720 = vset.pattern.permute.xlu2 %v2896_v21 }
 0x516   :  { %v3955_v16 = vpop.permute.xlu2 %837 }
 0x51c   :  { %v1347_v43 = vpop.f32.mrf.mxu0 }
 0x51d   :  { %1380 = vmatpush.msrb.mxu3 %v1347_v43 }
 0x51f   :  { %1381 = vmatpush.msrb.mxu3 %v1294_v62  ;;  %v3962_v37 = vpop.permute.xlu2 %1088 }
 0x522   :  { %v1321_v6 = vpop.f32.mrf.mxu3 }
 0x523   :  { %1382 = vmatpush.msrb.mxu3 %v1321_v6  ;;  %v1113_v6 = vadd.f32 %v3722_v10, %v1033_v57  ;;  %v949_v57 = vld [vmem:[%s4328_s13 + $0x78] sm:$0xff] }
 0x524   :  { %2581 = vmatmul.msk.f32.vlgmr.msrb.gmra.mxu3 %vm1193_vm10, %v2579_v48 }
 0x525   :  { %1633 = vmatpush.msra.mxu3 %v3869_v45 }
 0x527   :  { %v3970_v35 = vpop.permute.xlu2 %1092  ;;  %1634 = vmatpush.msra.mxu3 %v3879_v42 }
 0x529   :  { %1635 = vmatpush.msra.mxu3 %v3885_v8 }
 0x52b   :  { %1636 = vmatpush.msra.mxu3 %v3896_v58 }
 0x52c   :  { %2582 = vmatmul.msk.f32.gmra.mxu3 %vm1193_vm10, %v2580_v50 }
 0x52d   :  { %1637 = vmatpush.msra.mxu3 %v3901_v52 }
 0x530   :  { %v704_v38 = vpop.permute.xlu2 %703 }
 0x531   :  { %v771_v15 = vadd.f32 %v770_v55, %v704_v38 }
 0x533   :  { %841 = vperm.xlu2 %2720, %v771_v15   ;;  %808 = vperm.xlu1 %2717, %v771_v15  }
 0x53b   :  { %2722 = vset.pattern.permute.xlu2 %v2902_v14  ;;  %2721 = vset.pattern.permute.xlu1 %v2896_v21 }
 0x53c   :  { %1096 = vperm.xlu2 %2722, %v946_v54   ;;  %1012 = vperm.xlu1 %2721, %v946_v54   ;;  %v1355_v54 = vpop.permute.xlu0 %1354 }
 0x544   :  { %1100 = vperm.xlu2 %2722, %v947_v61   ;;  %1017 = vperm.xlu1 %2721, %v947_v61  }
 0x54c   :  { %2725 = vset.pattern.permute.xlu2 %v4340_v3  ;;  %2724 = vset.pattern.permute.xlu1 %v4340_v3 }
 0x54d   :  { %708 = vperm.xlu2 %2725, %v670_v1   ;;  %2138 = vperm.xlu1 %2724, %v947_v61   ;;  %v968_v1 = vpop.permute.xlu1 %967 }
 0x54e   :  { %v1034_v3 = vmul.f32 %v3785_v63, %v968_v1 }
 0x555   :  { %2727 = vset.pattern.permute.xlu2 %v2896_v21  ;;  %v1359_v10 = vpop.permute.xlu1 %1358 }
 0x58d   :  { %v3992_v62 = vpop.permute.xlu2 %841 }
 0x596   :  { %v3997_v51 = vpop.permute.xlu2 %1096 }
 0x59e   :  { %v4000_v4 = vpop.permute.xlu2 %1100 }
 0x5a7   :  { %v709_v43 = vpop.permute.xlu2 %708  ;;  %v1384_v48 = vpop.f32.mrf.mxu3 }
 0x5a8   :  { %v774_v50 = vadd.f32 %v773_v25, %v709_v43  ;;  %v1385_v55 = vadd.f32 %v1384_v48, %v1355_v54  ;;  %v1114_v54 = vadd.f32 %v3724_v56, %v1034_v3 }
 0x5aa   :  { %v1390_v38 = vadd.f32 %v1385_v55, %v1113_v6  ;;  %845 = vperm.xlu2 %2727, %v774_v50   ;;  %813 = vperm.xlu1 %2724, %v774_v50   ;;  %v4385_v55 = vmov 0  }
 0x5ac   :  { %v2583_v15 = vmul.f32 -1.442695, %v1390_v38 }
 0x5ae   :  { %2812 = vpow2.f32 %v2583_v15 }
 0x5af   :  { %v1387_v5 = vpop.f32.mrf.mxu3 }
 0x5b0   :  { %v1388_v25 = vadd.f32 %v1387_v5, %v1359_v10  ;;  %v2584_v5 = vld [vmem:[%s4327_s12 + $0x10] sm:$0xff] }
 0x5b2   :  { %2729 = vset.pattern.permute.xlu2 %v2902_v14  ;;  %2728 = vset.pattern.permute.xlu1 %v2896_v21  ;;  %v1391_v21 = vadd.f32 %v1388_v25, %v1114_v54  ;;  %v789_v54 = vpop.permute.xlu1 %788 }
 0x5b3   :  { %1104 = vperm.xlu2 %2729, %v948_v27   ;;  %1022 = vperm.xlu1 %2728, %v948_v27  }
 0x5b4   :  { %v2813_v34 = vpop.eup %2812 }
 0x5b5   :  { %v1395_v61 = vadd.f32 1.0, %v2813_v34 }
 0x5b7   :  { %2814 = vrcp.f32 %v1395_v61  ;;  %v1407_v48 = vand.u32 2147483648, %v1395_v61  ;;  %v1405_v50 = vand.u32 2147483647, %v1395_v61  ;;  %vm1401_vm13 = vweird.f32 %v1395_v61 }
 0x5b8   :  { %2816 = vtanh.f32 %v1391_v21  ;;  %v2590_v21 = vld [vmem:[%s4326_s11 + $0x20] sm:$0xff] }
 0x5b9   :  { %v1408_v3 = vor.u32 1.1754944e-38, %v1407_v48  ;;  %vm1406_vm8 = vcmp.eq.f32.partialorder %v1405_v50, 8.507059e+37 }
 0x5bb   :  { %1108 = vperm.xlu2 %2729, %v949_v57   ;;  %1027 = vperm.xlu1 %2728, %v949_v57  }
 0x5bd   :  { %v2815_v14 = vpop.eup %2814 }
 0x5be   :  { %v1397_v43 = vmul.f32 %v2815_v14, %v1395_v61  ;;  %vm1402_vm6 = vweird.f32 %v2815_v14  ;;  %v2817_v15 = vpop.eup %2816 }
 0x5bf   :  { %vm1403_vm14 = vmor %vm1401_vm13, %vm1402_vm6 }
 0x5c0   :  { %v1398_v27 = vsub.f32 1.0, %v1397_v43  ;;  %v973_v43 = vpop.permute.xlu1 %972 }
 0x5c2   :  { %v1399_v6 = vmul.f32 %v2815_v14, %v1398_v27  ;;  %v1035_v27 = vmul.f32 %v3785_v63, %v973_v43 }
 0x5c3   :  { %2732 = vset.pattern.permute.xlu2 %v2903_v47  ;;  %2731 = vset.pattern.permute.xlu1 %v4385_v55 }
 0x5c4   :  { %1253 = vperm.xlu2 %2732, %v3586_v13   ;;  %v1400_v38 = vadd.f32 %v2815_v14, %v1399_v6  ;;  %2294 = vperm.xlu1 %2731, %v949_v57   ;;  %v2585_v13 = vld [vmem:[%s4327_s12 + $0x18] sm:$0xff] }
 0x5c6   :  { %v1404_v56 = vsel %vm1403_vm14, %v2815_v14, %v1400_v38 }
 0x5c7   :  { %v1409_v1 = vsel %vm1406_vm8, %v1408_v3, %v1404_v56 }
 0x5c8   :  { %v1412_v34 = vmul.f32 %v2817_v15, %v1409_v1  ;;  %v978_v3 = vpop.permute.xlu1 %977 }
 0x5ca   :  { %1445 = vmatpush.msra.mxu0 %v1412_v34 }
 0x5cb   :  { %2586 = vmatmul.msk.f32.vlgmr.msra.gmra.mxu0 %vm4386_vm12, %v2584_v5 }
 0x5cc   :  { %2734 = vset.pattern.permute.xlu1 %v2903_v47  ;;  %1653 = vmatpush.msrb.mxu0 %v3834_v31 }
 0x5cd   :  { %1577 = vperm.xlu1 %2734, %v3738_v28   ;;  %1733 = vperm.xlu2 %2732, %v3779_v26   ;;  %v1418_v28 = vpop.permute.xlu0 %1417 }
 0x5ce   :  { %1654 = vmatpush.msrb.mxu0 %v3839_v36 }
 0x5d0   :  { %1655 = vmatpush.msrb.mxu0 %v3845_v7  ;;  %v1515_v1 = vpop.permute.xlu1 %1514 }
 0x5d2   :  { %1656 = vmatpush.msrb.mxu0 %v3891_v32 }
 0x5d3   :  { %2587 = vmatmul.msk.f32.gmra.mxu0 %vm4387_vm11, %v2585_v13  ;;  %vm4390_vm11 = vmmov %vm4388_vm2 }
 0x5d4   :  { %1657 = vmatpush.msrb.mxu0 %v3908_v40 }
 0x5d5   :  { %1889 = vperm.xlu1 %2734, %v3855_v60   ;;  %2045 = vperm.xlu2 %2732, %v3940_v9   ;;  %v850_v60 = vsel %vm85_vm7, %v789_v54, %v3761_v39  ;;  %v2591_v39 = vld [vmem:[%s4326_s11 + $0x28] sm:$0xff]  ;;  %v1511_v48 = vpop.permute.xlu0 %1510 }
 0x5dd   :  { %2356 = vperm.xlu1 %2734, %v949_v57   ;;  %2736 = vset.pattern.permute.xlu2 %v4385_v55 }
 0x5e5   :  { %2738 = vset.pattern.permute.xlu1 %v4385_v55 }
 0x648   :  { %v1447_v26 = vpop.f32.mrf.mxu0 }
 0x649   :  { %v1448_v47 = vadd.f32 %v1447_v26, %v1418_v28 }
 0x64b   :  { %vm1453_vm9 = vcmp.ge.f32.partialorder %v1448_v47, 0.0  ;;  %v1455_v61 = vmul.f32 0.4, %v1448_v47 }
 0x64d   :  { %v1457_v10 = vsel %vm1453_vm9, %v1448_v47, %v1455_v61  ;;  %vm4391_vm9 = vmmov %vm4388_vm2 }
 0x64e   :  { %v1459_v25 = vadd.f32 %v1457_v10, %v3917_v0 }
 0x650   :  { %v4036_v14 = vmul.f32 0.70710677, %v1459_v25 }
 0x652   :  { %v1462_v9 = vadd.f32 %v4036_v14, %v850_v60 }
 0x654   :  { %2588 = vmatmul.msk.f32.vlgmr.msrb.gmra.mxu1 %vm1133_vm0, %v1462_v9  ;;  %2589 = vmatmul.msk.f32.vlgmr.msrb.gmra.mxu2 %vm1133_vm0, %v1462_v9 }
 0x6d1   :  { %v1483_v0 = vpop.f32.mrf.mxu1 }
 0x6d7   :  { %v1503_v57 = vpop.f32.mrf.mxu2 }
 0x6d8   :  { %1536 = vmatpush.msra.mxu1 %v1503_v57 }
 0x6da   :  { %1537 = vmatpush.msra.mxu1 %v1462_v9 }
 0x6dc   :  { %1538 = vmatpush.msra.mxu1 %v1483_v0  ;;  %v1574_v0 = vpop.permute.xlu0 %1573 }
 0x6dd   :  { %2592 = vmatmul.msk.f32.vlgmr.msra.gmra.mxu1 %vm1193_vm10, %v2590_v21  ;;  %v2596_v21 = vld [vmem:[%s4327_s12 + $0x28] sm:$0xff] }
 0x6de   :  { %1789 = vmatpush.msrb.mxu1 %v3600_v59  ;;  %v1115_v59 = vadd.f32 %v3763_v12, %v1035_v27 }
 0x6e0   :  { %1790 = vmatpush.msrb.mxu1 %v3605_v17 }
 0x6e2   :  { %1791 = vmatpush.msrb.mxu1 %v3615_v18 }
 0x6e4   :  { %1792 = vmatpush.msrb.mxu1 %v3622_v19  ;;  %v1036_v19 = vmul.f32 %v3785_v63, %v978_v3  ;;  %v1667_v3 = vpop.permute.xlu0 %1666 }
 0x6e5   :  { %2593 = vmatmul.msk.f32.gmra.mxu1 %vm1193_vm10, %v2591_v39 }
 0x6e6   :  { %1793 = vmatpush.msrb.mxu1 %v3632_v22  ;;  %v1116_v34 = vadd.f32 %v3765_v41, %v1036_v19  ;;  %v2595_v41 = vld [vmem:[%s4327_s12 + $0x20] sm:$0xff] }
 0x75a   :  { %v1540_v6 = vpop.f32.mrf.mxu1 }
 0x75b   :  { %v1541_v17 = vadd.f32 %v1540_v6, %v1511_v48  ;;  %v794_v48 = vpop.permute.xlu1 %793 }
 0x75d   :  { %v1546_v50 = vadd.f32 %v1541_v17, %v1115_v59 }
 0x75f   :  { %v2594_v38 = vmul.f32 -1.442695, %v1546_v50 }
 0x761   :  { %2818 = vpow2.f32 %v2594_v38 }
 0x762   :  { %v1543_v15 = vpop.f32.mrf.mxu1 }
 0x763   :  { %v1544_v22 = vadd.f32 %v1543_v15, %v1515_v1  ;;  %v983_v50 = vpop.permute.xlu1 %982 }
 0x764   :  { %v1037_v38 = vmul.f32 %v3785_v63, %v983_v50  ;;  %v2613_v50 = vld [vmem:[%s4326_s11 + $0x48] sm:$0xff] }
 0x765   :  { %v1547_v13 = vadd.f32 %v1544_v22, %v1116_v34 }
 0x767   :  { %v2819_v56 = vpop.eup %2818 }
 0x768   :  { %v1551_v18 = vadd.f32 1.0, %v2819_v56 }
 0x76a   :  { %2820 = vrcp.f32 %v1551_v18  ;;  %v1563_v12 = vand.u32 2147483648, %v1551_v18  ;;  %v1561_v61 = vand.u32 2147483647, %v1551_v18  ;;  %vm1557_vm1 = vweird.f32 %v1551_v18 }
 0x76b   :  { %2822 = vtanh.f32 %v1547_v13  ;;  %v988_v22 = vpop.permute.xlu1 %987 }
 0x76c   :  { %v1564_v25 = vor.u32 1.1754944e-38, %v1563_v12  ;;  %vm1562_vm3 = vcmp.eq.f32.partialorder %v1561_v61, 8.507059e+37 }
 0x770   :  { %v2821_v5 = vpop.eup %2820 }
 0x771   :  { %v1553_v28 = vmul.f32 %v2821_v5, %v1551_v18  ;;  %vm1558_vm15 = vweird.f32 %v2821_v5  ;;  %v2823_v60 = vpop.eup %2822  ;;  %v1117_v18 = vadd.f32 %v3826_v49, %v1037_v38  ;;  %v2856_v38 = vld [vmem:[%s4318_s3 + $0x10] sm:$0xff] }
 0x772   :  { %vm1559_vm4 = vmor %vm1557_vm1, %vm1558_vm15 }
 0x773   :  { %v1554_v26 = vsub.f32 1.0, %v1553_v28  ;;  %v1038_v28 = vmul.f32 %v3785_v63, %v988_v22 }
 0x775   :  { %v1555_v47 = vmul.f32 %v2821_v5, %v1554_v26  ;;  %v1671_v26 = vpop.permute.xlu1 %1670 }
 0x777   :  { %v1556_v10 = vadd.f32 %v2821_v5, %v1555_v47  ;;  %v1118_v47 = vadd.f32 %v3828_v53, %v1038_v28  ;;  %v2606_v53 = vld [vmem:[%s4327_s12 + $0x30] sm:$0xff] }
 0x779   :  { %v1560_v54 = vsel %vm1559_vm4, %v2821_v5, %v1556_v10 }
 0x77a   :  { %v1565_v9 = vsel %vm1562_vm3, %v1564_v25, %v1560_v54 }
 0x77b   :  { %v1568_v57 = vmul.f32 %v2823_v60, %v1565_v9 }
 0x77d   :  { %1601 = vmatpush.msra.mxu2 %v1568_v57 }
 0x77e   :  { %2597 = vmatmul.msk.f32.vlgmr.msra.gmra.mxu2 %vm4388_vm2, %v2595_v41 }
 0x77f   :  { %1809 = vmatpush.msrb.mxu2 %v3637_v23 }
 0x781   :  { %1810 = vmatpush.msrb.mxu2 %v3645_v24 }
 0x783   :  { %1811 = vmatpush.msrb.mxu2 %v3651_v11  ;;  %v851_v11 = vsel %vm85_vm7, %v794_v48, %v3819_v20  ;;  %v2602_v20 = vld [vmem:[%s4326_s11 + $0x38] sm:$0xff] }
 0x785   :  { %1812 = vmatpush.msrb.mxu2 %v3663_v29 }
 0x786   :  { %2598 = vmatmul.msk.f32.gmra.mxu2 %vm4389_vm5, %v2596_v21 }
 0x787   :  { %1813 = vmatpush.msrb.mxu2 %v3668_v30  ;;  %v4081_v30 = vpop.f32.mrf.mxu0 }
 0x801   :  { %v1603_v39 = vpop.f32.mrf.mxu2 }
 0x802   :  { %v1604_v43 = vadd.f32 %v1603_v39, %v1574_v0 }
 0x804   :  { %vm1609_vm6 = vcmp.ge.f32.partialorder %v1604_v43, 0.0  ;;  %v1611_v27 = vmul.f32 0.4, %v1604_v43 }
 0x806   :  { %v1613_v23 = vsel %vm1609_vm6, %v1604_v43, %v1611_v27  ;;  %v2607_v27 = vld [vmem:[%s4327_s12 + $0x38] sm:$0xff]  ;;  %vm4392_vm6 = vmmov %vm4389_vm5 }
 0x807   :  { %v1615_v24 = vadd.f32 %v1613_v23, %v4036_v14  ;;  %v2601_v14 = vld [vmem:[%s4326_s11 + $0x30] sm:$0xff]  ;;  %v1730_v23 = vpop.permute.xlu0 %1729 }
 0x809   :  { %v4074_v6 = vmul.f32 0.70710677, %v1615_v24 }
 0x80b   :  { %v1618_v29 = vadd.f32 %v4074_v6, %v851_v11 }
 0x80d   :  { %2599 = vmatmul.msk.f32.vlgmr.msra.gmra.mxu3 %vm1133_vm0, %v1618_v29  ;;  %2600 = vmatmul.msk.f32.vlgmr.msrb.gmra.mxu0 %vm1133_vm0, %v1618_v29 }
 0x88a   :  { %v1659_v59 = vpop.f32.mrf.mxu0 }
 0x88b   :  { %1692 = vmatpush.msrb.mxu3 %v1659_v59 }
 0x88d   :  { %1693 = vmatpush.msrb.mxu3 %v1618_v29  ;;  %v799_v29 = vpop.permute.xlu1 %798 }
 0x890   :  { %v1639_v17 = vpop.f32.mrf.mxu3 }
 0x891   :  { %1694 = vmatpush.msrb.mxu3 %v1639_v17 }
 0x892   :  { %2603 = vmatmul.msk.f32.vlgmr.msrb.gmra.mxu3 %vm1193_vm10, %v2601_v14 }
 0x893   :  { %1945 = vmatpush.msra.mxu3 %v3869_v45 }
 0x895   :  { %1946 = vmatpush.msra.mxu3 %v3879_v42 }
 0x897   :  { %1947 = vmatpush.msra.mxu3 %v3885_v8 }
 0x899   :  { %1948 = vmatpush.msra.mxu3 %v3896_v58 }
 0x89a   :  { %2604 = vmatmul.msk.f32.gmra.mxu3 %vm1193_vm10, %v2602_v20  ;;  %v2855_v20 = vld [vmem:[%s4318_s3 + $0x18] sm:$0xff] }
 0x89b   :  { %1949 = vmatpush.msra.mxu3 %v3901_v52 }
 0x915   :  { %v1696_v56 = vpop.f32.mrf.mxu3 }
 0x916   :  { %v1697_v15 = vadd.f32 %v1696_v56, %v1667_v3  ;;  %v2857_v3 = vld [vmem:[%s4318_s3 + $0x8] sm:$0xff]  ;;  %v2858_v56 = vld [vmem:[%s4318_s3] sm:$0xff] }
 0x918   :  { %v1702_v19 = vadd.f32 %v1697_v15, %v1117_v18  ;;  %v993_v18 = vpop.permute.xlu1 %992 }
 0x919   :  { %v1039_v15 = vmul.f32 %v3785_v63, %v993_v18 }
 0x91a   :  { %v2605_v1 = vmul.f32 -1.442695, %v1702_v19  ;;  %v1823_v19 = vpop.permute.xlu0 %1822 }
 0x91b   :  { %v1119_v22 = vadd.f32 %v3929_v46, %v1039_v15 }
 0x91c   :  { %2824 = vpow2.f32 %v2605_v1 }
 0x91d   :  { %v1699_v13 = vpop.f32.mrf.mxu3 }
 0x91e   :  { %v1700_v12 = vadd.f32 %v1699_v13, %v1671_v26 }
 0x920   :  { %v1703_v10 = vadd.f32 %v1700_v12, %v1118_v47  ;;  %v998_v28 = vpop.permute.xlu1 %997 }
 0x922   :  { %v2825_v34 = vpop.eup %2824 }
 0x923   :  { %v1707_v5 = vadd.f32 1.0, %v2825_v34 }
 0x925   :  { %2826 = vrcp.f32 %v1707_v5  ;;  %v1719_v49 = vand.u32 2147483648, %v1707_v5  ;;  %v1717_v9 = vand.u32 2147483647, %v1707_v5  ;;  %vm1713_vm14 = vweird.f32 %v1707_v5 }
 0x926   :  { %2828 = vtanh.f32 %v1703_v10 }
 0x927   :  { %v1720_v41 = vor.u32 1.1754944e-38, %v1719_v49  ;;  %vm1718_vm12 = vcmp.eq.f32.partialorder %v1717_v9, 8.507059e+37 }
 0x928   :  { %v1827_v10 = vpop.permute.xlu1 %1826 }
 0x92b   :  { %v2827_v61 = vpop.eup %2826 }
 0x92c   :  { %v1709_v25 = vmul.f32 %v2827_v61, %v1707_v5  ;;  %vm1714_vm13 = vweird.f32 %v2827_v61  ;;  %v2829_v0 = vpop.eup %2828 }
 0x92d   :  { %vm1715_vm8 = vmor %vm1713_vm14, %vm1714_vm13 }
 0x92e   :  { %v1710_v54 = vsub.f32 1.0, %v1709_v25 }
 0x930   :  { %v1711_v60 = vmul.f32 %v2827_v61, %v1710_v54 }
 0x932   :  { %v1712_v57 = vadd.f32 %v2827_v61, %v1711_v60 }
 0x934   :  { %v1716_v21 = vsel %vm1715_vm8, %v2827_v61, %v1712_v57  ;;  %v1040_v61 = vmul.f32 %v3785_v63, %v998_v28 }
 0x935   :  { %v1721_v39 = vsel %vm1718_vm12, %v1720_v41, %v1716_v21 }
 0x936   :  { %v1724_v43 = vmul.f32 %v2829_v0, %v1721_v39  ;;  %v1120_v54 = vadd.f32 %v3932_v44, %v1040_v61  ;;  %v2617_v44 = vld [vmem:[%s4327_s12 + $0x40] sm:$0xff] }
 0x938   :  { %1757 = vmatpush.msra.mxu0 %v1724_v43 }
 0x939   :  { %2608 = vmatmul.msk.f32.vlgmr.msra.gmra.mxu0 %vm4390_vm11, %v2606_v53 }
 0x93a   :  { %1965 = vmatpush.msrb.mxu0 %v3834_v31 }
 0x93c   :  { %1966 = vmatpush.msrb.mxu0 %v3839_v36 }
 0x93e   :  { %1967 = vmatpush.msrb.mxu0 %v3845_v7  ;;  %v852_v7 = vsel %vm85_vm7, %v799_v29, %v3924_v2  ;;  %v2854_v2 = vld [vmem:[%s4318_s3 + $0x20] sm:$0xff]  ;;  %v2863_v29 = vld [vmem:[%s4318_s3 + $0x28] sm:$0xff] }
 0x940   :  { %1968 = vmatpush.msrb.mxu0 %v3891_v32 }
 0x941   :  { %2609 = vmatmul.msk.f32.gmra.mxu0 %vm4391_vm9, %v2607_v27  ;;  %vm4393_vm9 = vmmov %vm4389_vm5 }
 0x942   :  { %1969 = vmatpush.msrb.mxu0 %v3908_v40  ;;  %v4121_v40 = vpop.f32.mrf.mxu2 }
 0x9b6   :  { %v1759_v24 = vpop.f32.mrf.mxu0 }
 0x9b7   :  { %v1760_v48 = vadd.f32 %v1759_v24, %v1730_v23  ;;  %v2859_v24 = vld [vmem:[%s4318_s3 + $0x48] sm:$0xff] }
 0x9b9   :  { %vm1765_vm15 = vcmp.ge.f32.partialorder %v1760_v48, 0.0  ;;  %v1767_v11 = vmul.f32 0.4, %v1760_v48 }
 0x9bb   :  { %v1769_v31 = vsel %vm1765_vm15, %v1760_v48, %v1767_v11  ;;  %v2860_v48 = vld [vmem:[%s4318_s3 + $0x40] sm:$0xff]  ;;  %v2618_v11 = vld [vmem:[%s4327_s12 + $0x48] sm:$0xff]  ;;  %vm4394_vm15 = vmmov %vm4389_vm5 }
 0x9bc   :  { %v1771_v36 = vadd.f32 %v1769_v31, %v4074_v6  ;;  %v2612_v6 = vld [vmem:[%s4326_s11 + $0x40] sm:$0xff]  ;;  %v2861_v31 = vld [vmem:[%s4318_s3 + $0x38] sm:$0xff] }
 0x9be   :  { %v4114_v59 = vmul.f32 0.70710677, %v1771_v36  ;;  %v2862_v36 = vld [vmem:[%s4318_s3 + $0x30] sm:$0xff] }
 0x9c0   :  { %v1774_v32 = vadd.f32 %v4114_v59, %v852_v7  ;;  %v1886_v7 = vpop.permute.xlu0 %1885 }
 0x9c2   :  { %2610 = vmatmul.msk.f32.vlgmr.msrb.gmra.mxu1 %vm1133_vm0, %v1774_v32  ;;  %2611 = vmatmul.msk.f32.vlgmr.msrb.gmra.mxu2 %vm1133_vm0, %v1774_v32 }
 0xa3f   :  { %v1795_v17 = vpop.f32.mrf.mxu1 }
 0xa45   :  { %v1815_v14 = vpop.f32.mrf.mxu2 }
 0xa46   :  { %1848 = vmatpush.msra.mxu1 %v1815_v14 }
 0xa48   :  { %1849 = vmatpush.msra.mxu1 %v1774_v32 }
 0xa4a   :  { %1850 = vmatpush.msra.mxu1 %v1795_v17 }
 0xa4b   :  { %2614 = vmatmul.msk.f32.vlgmr.msra.gmra.mxu1 %vm1193_vm10, %v2612_v6 }
 0xa4c   :  { %2101 = vmatpush.msrb.mxu1 %v2854_v2 }
 0xa4e   :  { %2102 = vmatpush.msrb.mxu1 %v2855_v20  ;;  %v804_v20 = vpop.permute.xlu1 %803 }
 0xa50   :  { %2103 = vmatpush.msrb.mxu1 %v2856_v38  ;;  %v853_v38 = vsel %vm85_vm7, %v804_v20, %v3955_v16  ;;  %v2624_v16 = vld [vmem:[%s4326_s11 + $0x58] sm:$0xff] }
 0xa52   :  { %2104 = vmatpush.msrb.mxu1 %v2857_v3 }
 0xa53   :  { %2615 = vmatmul.msk.f32.gmra.mxu1 %vm1193_vm10, %v2613_v50 }
 0xa54   :  { %2105 = vmatpush.msrb.mxu1 %v2858_v56  ;;  %v4181_v56 = vpop.f32.mrf.mxu0 }
 0xac8   :  { %v1852_v1 = vpop.f32.mrf.mxu1 }
 0xac9   :  { %v1853_v34 = vadd.f32 %v1852_v1, %v1823_v19  ;;  %v1003_v19 = vpop.permute.xlu1 %1002 }
 0xaca   :  { %v1041_v1 = vmul.f32 %v3785_v63, %v1003_v19 }
 0xacb   :  { %v1858_v5 = vadd.f32 %v1853_v34, %v1119_v22  ;;  %v1979_v22 = vpop.permute.xlu0 %1978 }
 0xacd   :  { %v2616_v13 = vmul.f32 -1.442695, %v1858_v5 }
 0xacf   :  { %2830 = vpow2.f32 %v2616_v13 }
 0xad0   :  { %v1855_v47 = vpop.f32.mrf.mxu1 }
 0xad1   :  { %v1856_v25 = vadd.f32 %v1855_v47, %v1827_v10  ;;  %v1008_v28 = vpop.permute.xlu1 %1007 }
 0xad3   :  { %v1859_v60 = vadd.f32 %v1856_v25, %v1120_v54 }
 0xad5   :  { %v2831_v26 = vpop.eup %2830 }
 0xad6   :  { %v1863_v12 = vadd.f32 1.0, %v2831_v26 }
 0xad8   :  { %2832 = vrcp.f32 %v1863_v12  ;;  %v1875_v46 = vand.u32 2147483648, %v1863_v12  ;;  %v1873_v21 = vand.u32 2147483647, %v1863_v12  ;;  %vm1869_vm4 = vweird.f32 %v1863_v12 }
 0xad9   :  { %2834 = vtanh.f32 %v1859_v60  ;;  %v1983_v47 = vpop.permute.xlu1 %1982 }
 0xada   :  { %v1876_v39 = vor.u32 1.1754944e-38, %v1875_v46  ;;  %vm1874_vm2 = vcmp.eq.f32.partialorder %v1873_v21, 8.507059e+37 }
 0xade   :  { %v2833_v49 = vpop.eup %2832 }
 0xadf   :  { %v1865_v9 = vmul.f32 %v2833_v49, %v1863_v12  ;;  %vm1870_vm1 = vweird.f32 %v2833_v49  ;;  %v2835_v53 = vpop.eup %2834 }
 0xae0   :  { %vm1871_vm3 = vmor %vm1869_vm4, %vm1870_vm1 }
 0xae1   :  { %v1866_v57 = vsub.f32 1.0, %v1865_v9 }
 0xae3   :  { %v1867_v41 = vmul.f32 %v2833_v49, %v1866_v57 }
 0xae5   :  { %v1868_v0 = vadd.f32 %v2833_v49, %v1867_v41 }
 0xae7   :  { %v1872_v43 = vsel %vm1871_vm3, %v2833_v49, %v1868_v0 }
 0xae8   :  { %v1877_v27 = vsel %vm1874_vm2, %v1876_v39, %v1872_v43  ;;  %v2629_v43 = vld [vmem:[%s4327_s12 + $0x58] sm:$0xff] }
 0xae9   :  { %v1880_v23 = vmul.f32 %v2835_v53, %v1877_v27  ;;  %v2042_v53 = vpop.permute.xlu0 %2041 }
 0xaeb   :  { %1913 = vmatpush.msra.mxu2 %v1880_v23 }
 0xaec   :  { %2619 = vmatmul.msk.f32.vlgmr.msra.gmra.mxu2 %vm4389_vm5, %v2617_v44 }
 0xaed   :  { %2121 = vmatpush.msrb.mxu2 %v2859_v24 }
 0xaef   :  { %2122 = vmatpush.msrb.mxu2 %v2860_v48 }
 0xaf1   :  { %2123 = vmatpush.msrb.mxu2 %v2861_v31  ;;  %v2135_v20 = vpop.permute.xlu0 %2134 }
 0xaf3   :  { %2124 = vmatpush.msrb.mxu2 %v2862_v36 }
 0xaf4   :  { %2620 = vmatmul.msk.f32.gmra.mxu2 %vm4392_vm6, %v2618_v11  ;;  %v809_v11 = vpop.permute.xlu1 %808 }
 0xaf5   :  { %2125 = vmatpush.msrb.mxu2 %v2863_v29  ;;  %v854_v36 = vsel %vm85_vm7, %v809_v11, %v3992_v62  ;;  %v2635_v62 = vld [vmem:[%s4326_s11 + $0x68] sm:$0xff]  ;;  %v2645_v11 = vld [vmem:[%s4326_s11 + $0x70] sm:$0xff] }
 0xb6f   :  { %v1915_v32 = vpop.f32.mrf.mxu2 }
 0xb70   :  { %v1916_v14 = vadd.f32 %v1915_v32, %v1886_v7 }
 0xb72   :  { %vm1921_vm13 = vcmp.ge.f32.partialorder %v1916_v14, 0.0  ;;  %v1923_v6 = vmul.f32 0.4, %v1916_v14 }
 0xb74   :  { %v1925_v17 = vsel %vm1921_vm13, %v1916_v14, %v1923_v6  ;;  %v2634_v14 = vld [vmem:[%s4326_s11 + $0x60] sm:$0xff]  ;;  %vm4395_vm13 = vmmov %vm4392_vm6 }
 0xb75   :  { %v1927_v2 = vadd.f32 %v1925_v17, %v4114_v59  ;;  %v2623_v59 = vld [vmem:[%s4326_s11 + $0x50] sm:$0xff]  ;;  %v1013_v17 = vpop.permute.xlu1 %1012 }
 0xb77   :  { %v4174_v50 = vmul.f32 0.70710677, %v1927_v2  ;;  %v4216_v7 = vpop.f32.mrf.mxu2  ;;  %v1043_v2 = vmul.f32 %v3785_v63, %v1013_v17 }
 0xb79   :  { %v1930_v3 = vadd.f32 %v4174_v50, %v853_v38  ;;  %v1123_v38 = vadd.f32 %v3997_v51, %v1043_v2 }
 0xb7b   :  { %2621 = vmatmul.msk.f32.vlgmr.msra.gmra.mxu3 %vm1133_vm0, %v1930_v3  ;;  %2622 = vmatmul.msk.f32.vlgmr.msrb.gmra.mxu0 %vm1133_vm0, %v1930_v3 }
 0xbf8   :  { %v1971_v18 = vpop.f32.mrf.mxu0 }
 0xbf9   :  { %2004 = vmatpush.msrb.mxu3 %v1971_v18 }
 0xbfb   :  { %2005 = vmatpush.msrb.mxu3 %v1930_v3 }
 0xbfe   :  { %v1951_v15 = vpop.f32.mrf.mxu3 }
 0xbff   :  { %2006 = vmatpush.msrb.mxu3 %v1951_v15  ;;  %v1018_v15 = vpop.permute.xlu1 %1017 }
 0xc00   :  { %2625 = vmatmul.msk.f32.vlgmr.msrb.gmra.mxu3 %vm1193_vm10, %v2623_v59 }
 0xc01   :  { %2257 = vmatpush.msra.mxu3 %v3869_v45  ;;  %v1121_v45 = vadd.f32 %v3962_v37, %v1041_v1 }
 0xc03   :  { %2258 = vmatpush.msra.mxu3 %v3879_v42 }
 0xc05   :  { %2259 = vmatpush.msra.mxu3 %v3885_v8 }
 0xc07   :  { %2260 = vmatpush.msra.mxu3 %v3896_v58  ;;  %v1042_v58 = vmul.f32 %v3785_v63, %v1008_v28 }
 0xc08   :  { %2626 = vmatmul.msk.f32.gmra.mxu3 %vm1193_vm10, %v2624_v16 }
 0xc09   :  { %2261 = vmatpush.msra.mxu3 %v3901_v52  ;;  %v1122_v61 = vadd.f32 %v3970_v35, %v1042_v58  ;;  %v2628_v35 = vld [vmem:[%s4327_s12 + $0x50] sm:$0xff] }
 0xc83   :  { %v2008_v34 = vpop.f32.mrf.mxu3 }
 0xc84   :  { %v2009_v42 = vadd.f32 %v2008_v34, %v1979_v22  ;;  %v1044_v22 = vmul.f32 %v3785_v63, %v1018_v15  ;;  %v2139_v34 = vpop.permute.xlu1 %2138 }
 0xc86   :  { %v2014_v5 = vadd.f32 %v2009_v42, %v1121_v45  ;;  %v1124_v42 = vadd.f32 %v4000_v4, %v1044_v22  ;;  %v2639_v4 = vld [vmem:[%s4327_s12 + $0x60] sm:$0xff] }
 0xc88   :  { %v2627_v13 = vmul.f32 -1.442695, %v2014_v5 }
 0xc8a   :  { %2836 = vpow2.f32 %v2627_v13 }
 0xc8b   :  { %v2011_v12 = vpop.f32.mrf.mxu3 }
 0xc8c   :  { %v2012_v52 = vadd.f32 %v2011_v12, %v1983_v47 }
 0xc8e   :  { %v2015_v25 = vadd.f32 %v2012_v52, %v1122_v61 }
 0xc90   :  { %v2837_v26 = vpop.eup %2836 }
 0xc91   :  { %v2019_v8 = vadd.f32 1.0, %v2837_v26 }
 0xc93   :  { %2838 = vrcp.f32 %v2019_v8  ;;  %v2031_v37 = vand.u32 2147483648, %v2019_v8  ;;  %v2029_v9 = vand.u32 2147483647, %v2019_v8  ;;  %vm2025_vm8 = vweird.f32 %v2019_v8 }
 0xc94   :  { %2840 = vtanh.f32 %v2015_v25 }
 0xc95   :  { %v2032_v46 = vor.u32 1.1754944e-38, %v2031_v37  ;;  %vm2030_vm11 = vcmp.eq.f32.partialorder %v2029_v9, 8.507059e+37  ;;  %v2640_v37 = vld [vmem:[%s4327_s12 + $0x68] sm:$0xff]  ;;  %v2867_v9 = vld [vmem:[%s4318_s3 + $0x80] sm:$0xff] }
 0xc99   :  { %v2839_v10 = vpop.eup %2838 }
 0xc9a   :  { %v2021_v54 = vmul.f32 %v2839_v10, %v2019_v8  ;;  %vm2026_vm14 = vweird.f32 %v2839_v10  ;;  %v2841_v21 = vpop.eup %2840 }
 0xc9b   :  { %vm2027_vm12 = vmor %vm2025_vm8, %vm2026_vm14 }
 0xc9c   :  { %v2022_v49 = vsub.f32 1.0, %v2021_v54  ;;  %v2864_v54 = vld [vmem:[%s4318_s3 + $0x98] sm:$0xff] }
 0xc9e   :  { %v2023_v60 = vmul.f32 %v2839_v10, %v2022_v49  ;;  %v2865_v49 = vld [vmem:[%s4318_s3 + $0x90] sm:$0xff] }
 0xca0   :  { %v2024_v57 = vadd.f32 %v2839_v10, %v2023_v60  ;;  %v2866_v60 = vld [vmem:[%s4318_s3 + $0x88] sm:$0xff] }
 0xca2   :  { %v2028_v41 = vsel %vm2027_vm12, %v2839_v10, %v2024_v57  ;;  %v2868_v57 = vld [vmem:[%s4318_s3 + $0x78] sm:$0xff] }
 0xca3   :  { %v2033_v0 = vsel %vm2030_vm11, %v2032_v46, %v2028_v41  ;;  %v2198_v46 = vpop.permute.xlu0 %2197  ;;  %vm4396_vm11 = vmmov %vm4392_vm6 }
 0xca4   :  { %v2036_v39 = vmul.f32 %v2841_v21, %v2033_v0 }
 0xca6   :  { %2069 = vmatpush.msra.mxu0 %v2036_v39 }
 0xca7   :  { %2630 = vmatmul.msk.f32.vlgmr.msra.gmra.mxu0 %vm4393_vm9, %v2628_v35  ;;  %vm4397_vm9 = vmmov %vm4392_vm6 }
 0xcaf   :  { %2631 = vmatmul.msk.f32.gmra.mxu0 %vm4394_vm15, %v2629_v43  ;;  %v846_v43 = vpop.permute.xlu2 %845 }
 0xd24   :  { %v2071_v27 = vpop.f32.mrf.mxu0 }
 0xd25   :  { %v2072_v23 = vadd.f32 %v2071_v27, %v2042_v53  ;;  %v814_v53 = vpop.permute.xlu1 %813 }
 0xd27   :  { %vm2077_vm1 = vcmp.ge.f32.partialorder %v2072_v23, 0.0  ;;  %v2079_v44 = vmul.f32 0.4, %v2072_v23 }
 0xd29   :  { %v2081_v24 = vsel %vm2077_vm1, %v2072_v23, %v2079_v44  ;;  %v855_v23 = vsel %vm85_vm7, %v814_v53, %v846_v43 }
 0xd2a   :  { %v2083_v48 = vadd.f32 %v2081_v24, %v4174_v50 }
 0xd2c   :  { %v4209_v31 = vmul.f32 0.70710677, %v2083_v48 }
 0xd2e   :  { %v2086_v29 = vadd.f32 %v4209_v31, %v854_v36  ;;  %v2646_v36 = vld [vmem:[%s4326_s11 + $0x78] sm:$0xff] }
 0xd30   :  { %2632 = vmatmul.msk.f32.vlgmr.msrb.gmra.mxu1 %vm1133_vm0, %v2086_v29  ;;  %2633 = vmatmul.msk.f32.vlgmr.msrb.gmra.mxu2 %vm1133_vm0, %v2086_v29 }
 0xdad   :  { %v2107_v6 = vpop.f32.mrf.mxu1 }
 0xdb3   :  { %v2127_v32 = vpop.f32.mrf.mxu2 }
 0xdb4   :  { %2160 = vmatpush.msra.mxu1 %v2127_v32 }
 0xdb6   :  { %2161 = vmatpush.msra.mxu1 %v2086_v29  ;;  %v1023_v29 = vpop.permute.xlu1 %1022 }
 0xdb7   :  { %v1045_v32 = vmul.f32 %v3785_v63, %v1023_v29 }
 0xdb8   :  { %2162 = vmatpush.msra.mxu1 %v2107_v6  ;;  %v2291_v6 = vpop.permute.xlu0 %2290 }
 0xdb9   :  { %2636 = vmatmul.msk.f32.vlgmr.msra.gmra.mxu1 %vm1193_vm10, %v2634_v14  ;;  %v1105_v14 = vpop.permute.xlu2 %1104 }
 0xdba   :  { %v1125_v17 = vadd.f32 %v1105_v14, %v1045_v32 }
 0xdc1   :  { %2637 = vmatmul.msk.f32.gmra.mxu1 %vm1193_vm10, %v2635_v62 }
 0xe36   :  { %v2164_v50 = vpop.f32.mrf.mxu1 }
 0xe37   :  { %v2165_v3 = vadd.f32 %v2164_v50, %v2135_v20 }
 0xe39   :  { %v2170_v18 = vadd.f32 %v2165_v3, %v1123_v38  ;;  %v1028_v38 = vpop.permute.xlu1 %1027 }
 0xe3a   :  { %v1046_v15 = vmul.f32 %v3785_v63, %v1028_v38 }
 0xe3b   :  { %v2638_v59 = vmul.f32 -1.442695, %v2170_v18 }
 0xe3d   :  { %2842 = vpow2.f32 %v2638_v59 }
 0xe3e   :  { %v2167_v1 = vpop.f32.mrf.mxu1 }
 0xe3f   :  { %v2168_v45 = vadd.f32 %v2167_v1, %v2139_v34  ;;  %v1109_v1 = vpop.permute.xlu2 %1108 }
 0xe40   :  { %v1126_v22 = vadd.f32 %v1109_v1, %v1046_v15  ;;  %v2408_v15 = vld [vmem:[%s4331_s16] sm:$0xff] }
 0xe41   :  { %v2171_v13 = vadd.f32 %v2168_v45, %v1124_v42 }
 0xe43   :  { %v2843_v16 = vpop.eup %2842 }
 0xe44   :  { %v2175_v19 = vadd.f32 1.0, %v2843_v16  ;;  %v2295_v16 = vpop.permute.xlu1 %2294 }
 0xe46   :  { %2844 = vrcp.f32 %v2175_v19  ;;  %v2187_v51 = vand.u32 2147483648, %v2175_v19  ;;  %v2185_v12 = vand.u32 2147483647, %v2175_v19  ;;  %vm2181_vm3 = vweird.f32 %v2175_v19 }
 0xe47   :  { %2846 = vtanh.f32 %v2171_v13 }
 0xe48   :  { %v2188_v47 = vor.u32 1.1754944e-38, %v2187_v51  ;;  %vm2186_vm5 = vcmp.eq.f32.partialorder %v2185_v12, 8.507059e+37 }
 0xe4c   :  { %v2845_v5 = vpop.eup %2844 }
 0xe4d   :  { %v2177_v28 = vmul.f32 %v2845_v5, %v2175_v19  ;;  %vm2182_vm4 = vweird.f32 %v2845_v5  ;;  %v2847_v61 = vpop.eup %2846 }
 0xe4e   :  { %vm2183_vm2 = vmor %vm2181_vm3, %vm2182_vm4 }
 0xe4f   :  { %v2178_v26 = vsub.f32 1.0, %v2177_v28 }
 0xe51   :  { %v2179_v8 = vmul.f32 %v2845_v5, %v2178_v26 }
 0xe53   :  { %v2180_v58 = vadd.f32 %v2845_v5, %v2179_v8 }
 0xe55   :  { %v2184_v52 = vsel %vm2183_vm2, %v2845_v5, %v2180_v58 }
 0xe56   :  { %v2189_v10 = vsel %vm2186_vm5, %v2188_v47, %v2184_v52  ;;  %v2650_v52 = vld [vmem:[%s4327_s12 + $0x70] sm:$0xff] }
 0xe57   :  { %v2192_v25 = vmul.f32 %v2847_v61, %v2189_v10  ;;  %v2651_v61 = vld [vmem:[%s4327_s12 + $0x78] sm:$0xff]  ;;  %v1254_v10 = vpop.permute.xlu2 %1253  ;;  %s2904_s12 = smov 127  }
 0xe59   :  { %2225 = vmatpush.msra.mxu2 %v2192_v25  ;;  %v1578_v25 = vpop.permute.xlu1 %1577 }
 0xe5a   :  { %2641 = vmatmul.msk.f32.vlgmr.msra.gmra.mxu2 %vm4392_vm6, %v2639_v4  ;;  %v1422_v4 = vpop.permute.xlu0 %1421 }
 0xe5b   :  { %2277 = vmatpush.msrb.mxu2 %v2864_v54 }
 0xe5d   :  { %2278 = vmatpush.msrb.mxu2 %v2865_v49  ;;  %v1451_v49 = vadd.f32 %v4081_v30, %v1422_v4 }
 0xe5f   :  { %2279 = vmatpush.msrb.mxu2 %v2866_v60  ;;  %v1734_v54 = vpop.permute.xlu2 %1733  ;;  %v1283_v60 = vadd.f32 %v3957_v33, %v1254_v10  ;;  %vm1454_vm15 = vcmp.ge.f32.partialorder %v1451_v49, 0.0 }
 0xe61   :  { %2280 = vmatpush.msrb.mxu2 %v2867_v9  ;;  %v1607_v9 = vadd.f32 %v4121_v40, %v1578_v25  ;;  %vm1286_vm1 = vcmp.ge.f32.partialorder %v1283_v60, 0.0 }
 0xe62   :  { %2642 = vmatmul.msk.f32.gmra.mxu2 %vm4395_vm13, %v2640_v37  ;;  %v2074_v37 = vpop.f32.mrf.mxu0  ;;  %v2202_v43 = vpop.permute.xlu0 %2201 }
 0xe63   :  { %2281 = vmatpush.msrb.mxu2 %v2868_v57  ;;  %v1890_v57 = vpop.permute.xlu1 %1889  ;;  %vm1610_vm4 = vcmp.ge.f32.partialorder %v1607_v9, 0.0 }
 0xedd   :  { %v2227_v41 = vpop.f32.mrf.mxu2 }
 0xede   :  { %v2228_v21 = vadd.f32 %v2227_v41, %v2198_v46  ;;  %v1456_v46 = vmul.f32 0.4, %v1451_v49  ;;  %v1763_v41 = vadd.f32 %v4181_v56, %v1734_v54 }
 0xee0   :  { %vm2233_vm14 = vcmp.ge.f32.partialorder %v2228_v21, 0.0  ;;  %v2235_v0 = vmul.f32 0.4, %v2228_v21  ;;  %v1458_v53 = vsel %vm1454_vm15, %v1451_v49, %v1456_v46  ;;  %v1768_v30 = vmul.f32 0.4, %v1763_v41 }
 0xee1   :  { %vm1766_vm3 = vcmp.ge.f32.partialorder %v1763_v41, 0.0  ;;  %vm2495_vm15 = vcmask 253952  }
 0xee2   :  { %v2237_v39 = vsel %vm2233_vm14, %v2228_v21, %v2235_v0  ;;  %v2046_v21 = vpop.permute.xlu2 %2045  ;;  %v1288_v0 = vmul.f32 0.4, %v1283_v60  ;;  %vm4398_vm14 = vcmask 146432  }
 0xee3   :  { %v2239_v35 = vadd.f32 %v2237_v39, %v4209_v31  ;;  %v1612_v39 = vmul.f32 0.4, %v1607_v9 }
 0xee5   :  { %v2240_v27 = vmul.f32 0.70710677, %v2239_v35  ;;  %v4257_v24 = vpop.f32.mrf.mxu2  ;;  %v1919_v35 = vadd.f32 %v4216_v7, %v1890_v57  ;;  %v1614_v40 = vsel %vm1610_vm4, %v1607_v9, %v1612_v39 }
 0xee7   :  { %v2242_v44 = vadd.f32 %v2240_v27, %v855_v23  ;;  %v2075_v27 = vadd.f32 %v2074_v37, %v2046_v21  ;;  %v1290_v23 = vsel %vm1286_vm1, %v1283_v60, %v1288_v0  ;;  %vm1922_vm2 = vcmp.ge.f32.partialorder %v1919_v35, 0.0 }
 0xee8   :  { %v1461_v56 = vadd.f32 %v1458_v53, %v1290_v23 }
 0xee9   :  { %2643 = vmatmul.msk.f32.vlgmr.msra.gmra.mxu3 %vm1133_vm0, %v2242_v44  ;;  %2644 = vmatmul.msk.f32.vlgmr.msrb.gmra.mxu2 %vm1133_vm0, %v2242_v44  ;;  %vm2078_vm5 = vcmp.ge.f32.partialorder %v2075_v27, 0.0 }
 0xf6c   :  { %v2283_v48 = vpop.f32.mrf.mxu2  ;;  %v2263_v31 = vpop.f32.mrf.mxu3 }
 0xf6d   :  { %2316 = vmatpush.msrb.mxu3 %v2283_v48  ;;  %v2231_v48 = vadd.f32 %v4257_v24, %v2202_v43 }
 0xf6f   :  { %2317 = vmatpush.msrb.mxu3 %v2242_v44  ;;  %v1924_v44 = vmul.f32 0.4, %v1919_v35  ;;  %v2236_v29 = vmul.f32 0.4, %v2231_v48  ;;  %vm2234_vm6 = vcmp.ge.f32.partialorder %v2231_v48, 0.0 }
 0xf71   :  { %2318 = vmatpush.msrb.mxu3 %v2263_v31  ;;  %v2080_v31 = vmul.f32 0.4, %v2075_v27  ;;  %v1926_v7 = vsel %vm1922_vm2, %v1919_v35, %v1924_v44 }
 0xf72   :  { %2647 = vmatmul.msk.f32.vlgmr.msrb.gmra.mxu3 %vm1193_vm10, %v2645_v11  ;;  %v1770_v11 = vsel %vm1766_vm3, %v1763_v41, %v1768_v30 }
 0xf73   :  { %v2082_v14 = vsel %vm2078_vm5, %v2075_v27, %v2080_v31 }
 0xf7a   :  { %2648 = vmatmul.msk.f32.gmra.mxu3 %vm1193_vm10, %v2646_v36  ;;  %v1617_v36 = vadd.f32 %v1614_v40, %v1461_v56 }
 0xf7c   :  { %v1773_v32 = vadd.f32 %v1770_v11, %v1617_v36 }
 0xff5   :  { %v2320_v62 = vpop.f32.mrf.mxu3 }
 0xff6   :  { %v2321_v2 = vadd.f32 %v2320_v62, %v2291_v6  ;;  %v1929_v6 = vadd.f32 %v1926_v7, %v1773_v32  ;;  %v2357_v62 = vpop.permute.xlu1 %2356 }
 0xff8   :  { %v2326_v20 = vadd.f32 %v2321_v2, %v1125_v17  ;;  %v2238_v2 = vsel %vm2234_vm6, %v2231_v48, %v2236_v29 }
 0xffa   :  { %v2649_v50 = vmul.f32 -1.442695, %v2326_v20 }
 0xffc   :  { %2848 = vpow2.f32 %v2649_v50  ;;  %v2085_v50 = vadd.f32 %v2082_v14, %v1929_v6 }
 0xffd   :  { %v2323_v59 = vpop.f32.mrf.mxu3 }
 0xffe   :  { %v2324_v19 = vadd.f32 %v2323_v59, %v2295_v16  ;;  %v2241_v24 = vadd.f32 %v2238_v2, %v2085_v50  ;;  %v2908_v16 = vmov 24  }
 0xfff   :  { %2735 = vset.pattern.permute.xlu0 %v2908_v16 }
0x1000   :  { %v2327_v45 = vadd.f32 %v2324_v19, %v1126_v22 }
0x1002   :  { %v2849_v3 = vpop.eup %2848 }
0x1003   :  { %v2331_v18 = vadd.f32 1.0, %v2849_v3 }
0x1005   :  { %2850 = vrcp.f32 %v2331_v18  ;;  %v2343_v13 = vand.u32 2147483648, %v2331_v18  ;;  %v2341_v26 = vand.u32 2147483647, %v2331_v18  ;;  %vm2337_vm0 = vweird.f32 %v2331_v18 }
0x1006   :  { %2852 = vtanh.f32 %v2327_v45 }
0x1007   :  { %v2344_v8 = vor.u32 1.1754944e-38, %v2343_v13  ;;  %vm2342_vm12 = vcmp.eq.f32.partialorder %v2341_v26, 8.507059e+37  ;;  %v2456_v13 = vld [vmem:[%s4332_s17] sm:$0xff] }
0x100b   :  { %v2851_v34 = vpop.eup %2850 }
0x100c   :  { %v2333_v42 = vmul.f32 %v2851_v34, %v2331_v18  ;;  %vm2338_vm7 = vweird.f32 %v2851_v34  ;;  %v2853_v63 = vpop.eup %2852 }
0x100d   :  { %vm2339_vm8 = vmor %vm2337_vm0, %vm2338_vm7 }
0x100e   :  { %v2334_v5 = vsub.f32 1.0, %v2333_v42  ;;  %vm4399_vm7 = vmmov %vm4398_vm14 }
0x100f   :  { %vm4400_vm0 = vmmov %vm4399_vm7 }
0x1010   :  { %v2335_v28 = vmul.f32 %v2851_v34, %v2334_v5 }
0x1012   :  { %v2336_v51 = vadd.f32 %v2851_v34, %v2335_v28 }
0x1014   :  { %v2340_v12 = vsel %vm2339_vm8, %v2851_v34, %v2336_v51 }
0x1015   :  { %v2345_v58 = vsel %vm2342_vm12, %v2344_v8, %v2340_v12  ;;  %vm4401_vm12 = vcmask 261120  }
0x1016   :  { %v2348_v47 = vmul.f32 %v2853_v63, %v2345_v58  ;;  %v2458_v63 = vld [vmem:[%s4332_s17 + $0x10] sm:$0xff]  ;;  %v2488_v58 = vld [vmem:[%s4332_s17 + $0x18] sm:$0x1] }
0x1018   :  { %2380 = vmatpush.msrb.mxu0 %v2348_v47 }
0x1019   :  { %2652 = vmatmul.msk.f32.vlgmr.msrb.gmra.mxu0 %vm4396_vm11, %v2650_v52  ;;  %vm4402_vm11 = vmmov %vm4401_vm12 }
0x1021   :  { %2653 = vmatmul.msk.f32.gmra.mxu0 %vm4397_vm9, %v2651_v61  ;;  %vm4403_vm9 = vmmov %vm4402_vm11 }
0x1096   :  { %v2382_v33 = vpop.f32.mrf.mxu0 }
0x109e   :  { %v2384_v17 = vpop.f32.mrf.mxu0 }
0x109f   :  { %v2385_v20 = vadd.f32 %v2384_v17, %v2357_v62 }
0x10a1   :  { %vm2387_vm13 = vcmp.ge.f32.partialorder %v2385_v20, 0.0  ;;  %v2388_v38 = vmul.f32 0.4, %v2385_v20 }
0x10a3   :  { %v2389_v3 = vsel %vm2387_vm13, %v2385_v20, %v2388_v38 }
0x10a4   :  { %v2390_v18 = vadd.f32 %v2389_v3, %v2241_v24 }
0x10a6   :  { %v2391_v59 = vmul.f32 0.35355338, %v2390_v18 }
0x10a8   :  { %2397 = vrot.lane.b32.xlu1 %v2391_v59, %s2904_s12  ;;  %2404 = vrot.lane.b32.xlu0 %v2391_v59, %s2905_s19 }
0x10a9   :  { %2393 = vrot.lane.b32.xlu2 %v2391_v59, %s2906_s25 }
0x10b0   :  { %2411 = vperm.xlu0 %2735, %v2408_v15  }
0x10b1   :  { %2400 = vrot.lane.b32.xlu2 %v2391_v59, %s2907_s27 }
0x10b8   :  { %2737 = vset.pattern.permute.xlu0 %v4385_v55  ;;  %v2457_v55 = vld [vmem:[%s4332_s17 + $0x8] sm:$0xff]  ;;  %s2909_s17 = smov [#allocation2]  }
0x10b9   :  { %2461 = vperm.xlu2 %2736, %v2456_v13   ;;  %2466 = vperm.xlu0 %2737, %v2457_v55   ;;  %s2502_s2 = sshll.u32 %s2909_s17, 4  ;;  %s2503_s2 = int_to_ptr.vmem [resolvable:$true] %s2502_s2 }
0x1103   :  { %v2394_v19 = vpop.permute.xlu2 %2393 }
0x1104   :  { %v2396_v5 = vsel %vm4400_vm0, %v2391_v59, %v2394_v19 }
0x110b   :  { %v2401_v45 = vpop.permute.xlu2 %2400 }
0x1113   :  { %v2462_v47 = vpop.permute.xlu2 %2461 }
0x111a   :  { %v2398_v1 = vpop.permute.xlu1 %2397  ;;  %v2405_v22 = vpop.permute.xlu0 %2404 }
0x111b   :  { %v2407_v34 = vsel %vm4398_vm14, %v2394_v19, %v2405_v22  ;;  %v2403_v42 = vsel %vm4399_vm7, %v2398_v1, %v2401_v45 }
0x111c   :  { %2429 = vmatpush.msrb.mxu1 %v2407_v34 }
0x111e   :  { %2430 = vmatpush.msrb.mxu1 %v2403_v42 }
0x1120   :  { %2431 = vmatpush.msrb.mxu1 %v2396_v5 }
0x1121   :  { %2654 = vmatmul.msk.f32.vlgmr.msrb.gmra.mxu1 %vm1193_vm10, %v2408_v15  ;;  %vm2443_vm10 = vcmask 130048  }
0x1122   :  { %v2412_v28 = vpop.permute.xlu0 %2411 }
0x112b   :  { %v2467_v25 = vpop.permute.xlu0 %2466 }
0x119e   :  { %v2433_v26 = vpop.f32.mrf.mxu1 }
0x119f   :  { %v2434_v51 = vadd.f32 %v2433_v26, %v2412_v28 }
0x11a1   :  { %vm2436_vm8 = vcmp.ge.f32.partialorder %v2434_v51, 0.0  ;;  %v2437_v8 = vmul.f32 0.4, %v2434_v51 }
0x11a3   :  { %v2438_v12 = vsel %vm2436_vm8, %v2434_v51, %v2437_v8 }
0x11a4   :  { %2440 = vrot.lane.b32.xlu1 %v2438_v12, %s2906_s25  ;;  %2445 = vrot.lane.b32.xlu2 %v2438_v12, %s2904_s12 }
0x11ac   :  { %2448 = vrot.lane.b32.xlu1 %v2438_v12, %s2907_s27  ;;  %2471 = vperm.xlu2 %2736, %v2458_v63  }
0x11b4   :  { %2452 = vrot.lane.b32.xlu1 %v2438_v12, %s2905_s19 }
0x11bc   :  { %2491 = vperm.xlu1 %2738, %v2488_v58  }
0x11fe   :  { %v2446_v61 = vpop.permute.xlu2 %2445 }
0x1206   :  { %v2472_v46 = vpop.permute.xlu2 %2471 }
0x1216   :  { %v2441_v52 = vpop.permute.xlu1 %2440 }
0x1217   :  { %v2444_v54 = vsel %vm2443_vm10, %v2438_v12, %v2441_v52 }
0x1218   :  { %v2474_v37 = vmul.f32 %v2462_v47, %v2444_v54 }
0x121a   :  { %v2477_v41 = vsel %vm4402_vm11, %v2474_v37, 0.0 }
0x121e   :  { %v2449_v10 = vpop.permute.xlu1 %2448 }
0x121f   :  { %v2451_v4 = vsel %vm2443_vm10, %v2446_v61, %v2449_v10 }
0x1220   :  { %v2475_v49 = vmul.f32 %v2467_v25, %v2451_v4 }
0x1222   :  { %v2478_v60 = vsel %vm4401_vm12, %v2475_v49, 0.0 }
0x1223   :  { %v2479_v0 = vadd.f32 %v2478_v60, %v2477_v41 }
0x1226   :  { %v2453_v9 = vpop.permute.xlu1 %2452 }
0x1227   :  { %v2455_v57 = vsel %vm2443_vm10, %v2441_v52, %v2453_v9 }
0x1228   :  { %v2476_v21 = vmul.f32 %v2472_v46, %v2455_v57 }
0x122a   :  { %v2480_v39 = vsel %vm4403_vm9, %v2476_v21, 0.0 }
0x122b   :  { %v2481_v35 = vadd.f32 %v2480_v39, %v2479_v0 }
0x122d   :  { %v2482_v43 = vrot.slane %v2481_v35, 4 }
0x122e   :  { %v2492_v23 = vpop.permute.xlu1 %2491 }
0x122f   :  { %v2483_v53 = vadd.f32 %v2482_v43, %v2481_v35 }
0x1231   :  { %v2484_v30 = vrot.slane %v2483_v53, 2 }
0x1233   :  { %v2485_v27 = vadd.f32 %v2484_v30, %v2483_v53 }
0x1235   :  { %v2486_v33 = vrot.slane %v2485_v27, 1 }
0x1237   :  { %v2487_v40 = vadd.f32 %v2486_v33, %v2485_v27 }
0x1239   :  { %v2494_v44 = vadd.f32 %v2492_v23, %v2487_v40 }
0x123b   :  { %2496 = vst.msk [vmem:[#allocation2] sm:$0x1] %vm2495_vm15, %v2494_v44 }
0x123c   :  { %2507 = dma.vmem_to_hbm [thread:$0]  %s2503_s2, 16, %s2505_s24, [#allocation3]  }
0x123d   :  { %2893 = dma.done.wait [#allocation3], 16  }
0x123e   :  { %2894 = vsyncadd [#allocation3], 4294967280 }
0x123f   :  { %2512 = vsyncpa [#allocation3], 1 }

</bundles_post_ra>
